<compile_context>
chip_gen: v5e
topology: v5e:2x2
jax: 0.10.0
libtpu: 0.0.40
codegen_flags: <defaults>
</compile_context>

<pallas_src>
import jax
import jax.numpy as jnp
import numpy as np
from jax.experimental import pallas as pl
from jax.experimental.pallas import tpu as pltpu

NUM_BINS = 256
NUM_LAYERS = 16          # 8 from self.mlp + 8 from self.final_mlp
LANES = 128              # TPU lane width
MAX_BLOCK_ROWS = 512     # rows of 128 pixels per histogram grid step (256 KiB)


# ----------------------------------------------------------------------------
# Kernel 1: per-channel histc(256 bins over [0, 1]) with chunked accumulation.
# ----------------------------------------------------------------------------
def _hist_kernel(x_ref, o_ref):
    # x_ref: (1, S, 128) f32 chunk of one (batch, channel) slice.
    # o_ref: (1, 256, 1) f32 histogram column for the current channel,
    #        resident across the (batch, chunk) reduction grid axes.
    first_chunk = jnp.logical_and(pl.program_id(1) == 0, pl.program_id(2) == 0)

    @pl.when(first_chunk)
    def _():
        o_ref[...] = jnp.zeros_like(o_ref)

    s_rows = x_ref.shape[1]
    bins = jax.lax.broadcasted_iota(jnp.int32, (NUM_BINS, LANES), 0)

    def accumulate_row(i, acc):
        v = x_ref[0, pl.ds(i, 1), :]                        # (1, 128)
        in_range = jnp.logical_and(v >= 0.0, v <= 1.0)      # histc ignores out-of-range
        idx = jnp.floor(v * float(NUM_BINS)).astype(jnp.int32)
        idx = jnp.clip(idx, 0, NUM_BINS - 1)                # v == 1.0 -> last bin
        idx = jnp.where(in_range, idx, jnp.int32(-1))       # -1 never matches a bin
        return acc + (idx == bins).astype(jnp.float32)      # (256, 128)

    acc0 = jnp.zeros((NUM_BINS, LANES), jnp.float32)
    if s_rows <= 8:
        acc = acc0
        for i in range(s_rows):
            acc = accumulate_row(i, acc)
    else:
        acc = jax.lax.fori_loop(0, s_rows, accumulate_row, acc0, unroll=8)

    # Reduce the 128 lane positions on the otherwise-idle MXU: (256,128)@(128,1).
    partial = jnp.dot(acc, jnp.ones((LANES, 1), jnp.float32),
                      preferred_element_type=jnp.float32)    # (256, 1)
    o_ref[0] = o_ref[0] + partial


def histc_rgb(x3, block_rows, num_chunks, batch):
    """x3: (B*3, rows, 128) f32 -> (3, 256, 1) f32 per-channel histograms."""
    return pl.pallas_call(
        _hist_kernel,
        out_shape=jax.ShapeDtypeStruct((3, NUM_BINS, 1), jnp.float32),
        grid_spec=pltpu.PrefetchScalarGridSpec(
            num_scalar_prefetch=0,
            grid=(3, batch, num_chunks),
            in_specs=[pl.BlockSpec((1, block_rows, LANES),
                                   lambda c, b, k: (b * 3 + c, k, 0))],
            out_specs=pl.BlockSpec((1, NUM_BINS, 1), lambda c, b, k: (c, 0, 0)),
        ),
        compiler_params=pltpu.CompilerParams(
            dimension_semantics=("parallel", "arbitrary", "arbitrary")),
    )(x3)


# ----------------------------------------------------------------------------
# Kernel 2: 16 stacked Linear(256, 256) in ONE kernel invocation.
# All weights (16 x 128 KiB bf16 = 2 MiB) are resident in VMEM; the layer loop
# is unrolled so the tiny (3, 256) activation never leaves registers/VMEM.
# ----------------------------------------------------------------------------
def _mlp_kernel(h_ref, w_ref, b_ref, o_ref):
    # h_ref: (3, 256) f32 histograms.
    # w_ref: (16, 256, 256) bf16 weights, stored as W_torch.T (in, out).
    # b_ref: (16, 256) f32 biases (lane-dense).
    # o_ref: (3, 256) f32 output.
    x = h_ref[...]                                          # (3, 256) f32
    b_all = b_ref[...]                                      # (16, 256) f32
    for i in range(NUM_LAYERS):
        y = jnp.dot(x.astype(jnp.bfloat16), w_ref[i],
                    preferred_element_type=jnp.float32) + b_all[i:i + 1, :]
        x = jnp.maximum(y, 0.0) if i < NUM_LAYERS - 1 else y
    o_ref[...] = x


def mlp_stack(hist, weights_bf16, biases_f32):
    """hist: (3, 256) f32; weights: (16, 256, 256) bf16; biases: (16, 256) f32."""
    return pl.pallas_call(
        _mlp_kernel,
        out_shape=jax.ShapeDtypeStruct((3, NUM_BINS), jnp.float32),
    )(hist, weights_bf16, biases_f32)


# ----------------------------------------------------------------------------
# Wrapper
# ----------------------------------------------------------------------------
def _prepare_channels(style_img):
    """(B, 3, H, W) -> (B*3, rows, 128); free when H*W is a multiple of 128
    (no transpose, no copy).  Padding uses -1.0 which histc ignores."""
    b, c, h, w = style_img.shape
    assert c == 3
    n = h * w
    flat = style_img.reshape(b * 3, n)
    n_pad = -(-n // LANES) * LANES
    if n_pad != n:
        flat = jnp.pad(flat, ((0, 0), (0, n_pad - n)), constant_values=-1.0)
    rows = n_pad // LANES
    x3 = flat.reshape(b * 3, rows, LANES)
    if rows <= MAX_BLOCK_ROWS:
        block_rows = rows
    else:
        block_rows = MAX_BLOCK_ROWS
        rows_pad = -(-rows // block_rows) * block_rows
        if rows_pad != rows:
            x3 = jnp.pad(x3, ((0, 0), (0, rows_pad - rows), (0, 0)),
                         constant_values=-1.0)
            rows = rows_pad
    return x3, block_rows, rows // block_rows


@jax.jit
def style_transfer3_forward(style_img, weights_bf16, biases_f32):
    """style_img: (B, 3, H, W) f32 in [0, 1] -> (3, 256) f32."""
    batch = style_img.shape[0]
    x3, block_rows, num_chunks = _prepare_channels(style_img)
    hist = histc_rgb(x3, block_rows, num_chunks, batch)       # (3, 256, 1)
    hist = hist.reshape(3, NUM_BINS)                          # free (squeeze)
    return mlp_stack(hist, weights_bf16, biases_f32)          # (3, 256)


# ----------------------------------------------------------------------------
# Parameter init (deterministic, mirrors nn.Linear's +/- 1/sqrt(fan_in) uniform)
# Weights are stored as (in_features, out_features) = W_torch.T and cast to
# bf16 (matmuls accumulate in f32), biases stay f32 and lane-dense (16, 256).
# ----------------------------------------------------------------------------
def init_params(key):
    bound = 1.0 / np.sqrt(NUM_BINS)
    kw, kb = jax.random.split(key)
    weights = jax.random.uniform(
        kw, (NUM_LAYERS, NUM_BINS, NUM_BINS), jnp.float32, -bound, bound)
    biases = jax.random.uniform(
        kb, (NUM_LAYERS, NUM_BINS), jnp.float32, -bound, bound)
    return weights.astype(jnp.bfloat16), biases


# ----------------------------------------------------------------------------
# Pure-JAX reference (same bf16 weights, f32 accumulation) for correctness.
# ----------------------------------------------------------------------------
def reference_forward(style_img, weights_bf16, biases_f32):
    chans = jnp.transpose(style_img, (1, 0, 2, 3)).reshape(3, -1)

    def histc(v):
        idx = jnp.clip(jnp.floor(v * NUM_BINS).astype(jnp.int32), 0, NUM_BINS - 1)
        valid = jnp.logical_and(v >= 0.0, v <= 1.0).astype(jnp.float32)
        return jnp.zeros(NUM_BINS, jnp.float32).at[idx].add(valid)

    x = jnp.stack([histc(chans[i]) for i in range(3)])
    for i in range(NUM_LAYERS):
        x = jnp.dot(x.astype(jnp.bfloat16), weights_bf16[i],
                    preferred_element_type=jnp.float32) + biases_f32[i]
        if i < NUM_LAYERS - 1:
            x = jnp.maximum(x, 0.0)
    return x


if __name__ == "__main__":
    key = jax.random.PRNGKey(0)
    k_img, k_params = jax.random.split(key)

    # Small NCHW style image: batch=2, channels=3, spatial=16x16, values in [0, 1)
    style_img = jax.random.uniform(k_img, (2, 3, 16, 16), dtype=jnp.float32)
    weights, biases = init_params(k_params)

    out = jax.block_until_ready(style_transfer3_forward(style_img, weights, biases))
    ref = jax.block_until_ready(reference_forward(style_img, weights, biases))

    assert out.shape == (3, NUM_BINS) and out.dtype == jnp.float32
    np.testing.assert_allclose(np.asarray(out), np.asarray(ref), rtol=2e-3, atol=2e-3)

    print("KERNEL_OK")
</pallas_src>

<mosaic_0001>
module attributes {stable_mosaic.version = 11 : i64} {
  func.func @_hist_kernel(%arg0: i32, %arg1: i32, %arg2: i32, %arg3: memref<1x2x128xf32, #tpu.memory_space<vmem>>, %arg4: memref<1x256x1xf32, #tpu.memory_space<vmem>>) attributes {dimension_semantics = [#tpu.dimension_semantics<parallel>, #tpu.dimension_semantics<arbitrary>, #tpu.dimension_semantics<arbitrary>], iteration_bounds = array<i64: 3, 2, 1>, scalar_prefetch = 0 : i64, scratch_operands = 0 : i64, tpu.core_type = #tpu.core_type<tc>, window_params = [{transform_indices = @transform_0, window_bounds = array<i64: 1, 2, 128>}, {transform_indices = @transform_1, window_bounds = array<i64: 1, 256, 1>}]} {
    %c0_i32 = arith.constant 0 : i32
    %0 = arith.cmpi eq, %arg1, %c0_i32 : i32
    %c0_i32_0 = arith.constant 0 : i32
    %1 = arith.cmpi eq, %arg2, %c0_i32_0 : i32
    %2 = arith.andi %0, %1 : i1
    %3 = arith.extui %2 : i1 to i32
    %c0_i32_1 = arith.constant 0 : i32
    %4 = arith.cmpi ne, %3, %c0_i32_1 : i32
    scf.if %4 {
      %cst_24 = arith.constant 0.000000e+00 : f32
      %59 = vector.broadcast %cst_24 : f32 to vector<1x256x1xf32>
      %c0_25 = arith.constant 0 : index
      %c0_26 = arith.constant 0 : index
      %c0_27 = arith.constant 0 : index
      %60 = vector.load %arg4[%c0_25, %c0_26, %c0_27] : memref<1x256x1xf32, #tpu.memory_space<vmem>>, vector<1x256x1xf32>
      tpu.vector_store %arg4[%c0_25, %c0_26, %c0_27], %59 {strides = array<i32>} : memref<1x256x1xf32, #tpu.memory_space<vmem>>, vector<1x256x1xf32>,
    } else {
    }
    %5 = tpu.iota {dimensions = array<i32: 0>} : vector<256x128xi32>
    %cst = arith.constant 0.000000e+00 : f32
    %6 = vector.broadcast %cst : f32 to vector<256x128xf32>
    %c0 = arith.constant 0 : index
    %c0_2 = arith.constant 0 : index
    %c0_3 = arith.constant 0 : index
    %7 = vector.load %arg3[%c0, %c0_2, %c0_3] : memref<1x2x128xf32, #tpu.memory_space<vmem>>, vector<1x1x128xf32>
    %8 = vector.shape_cast %7 : vector<1x1x128xf32> to vector<1x128xf32>
    %cst_4 = arith.constant 0.000000e+00 : f32
    %9 = vector.broadcast %cst_4 : f32 to vector<1x128xf32>
    %10 = arith.cmpf oge, %8, %9 : vector<1x128xf32>
    %cst_5 = arith.constant 1.000000e+00 : f32
    %11 = vector.broadcast %cst_5 : f32 to vector<1x128xf32>
    %12 = arith.cmpf ole, %8, %11 : vector<1x128xf32>
    %13 = arith.andi %10, %12 : vector<1x128xi1>
    %cst_6 = arith.constant 2.560000e+02 : f32
    %14 = vector.broadcast %cst_6 : f32 to vector<1x128xf32>
    %15 = arith.mulf %8, %14 : vector<1x128xf32>
    %16 = math.floor %15 : vector<1x128xf32>
    %17 = arith.fptosi %16 : vector<1x128xf32> to vector<1x128xi32>
    %c0_i32_7 = arith.constant 0 : i32
    %c255_i32 = arith.constant 255 : i32
    %18 = vector.broadcast %c0_i32_7 : i32 to vector<1x128xi32>
    %19 = arith.maxsi %18, %17 : vector<1x128xi32>
    %20 = vector.broadcast %c255_i32 : i32 to vector<1x128xi32>
    %21 = arith.minsi %20, %19 : vector<1x128xi32>
    %c-1_i32 = arith.constant -1 : i32
    %22 = vector.broadcast %c-1_i32 : i32 to vector<1x128xi32>
    %23 = arith.select %13, %21, %22 : vector<1x128xi1>, vector<1x128xi32>
    %24 = vector.broadcast %23 : vector<1x128xi32> to vector<256x128xi32>
    %25 = arith.cmpi eq, %24, %5 : vector<256x128xi32>
    %26 = arith.extui %25 : vector<256x128xi1> to vector<256x128xi32>
    %27 = arith.sitofp %26 : vector<256x128xi32> to vector<256x128xf32>
    %28 = arith.addf %6, %27 : vector<256x128xf32>
    %c0_8 = arith.constant 0 : index
    %c1 = arith.constant 1 : index
    %c0_9 = arith.constant 0 : index
    %29 = vector.load %arg3[%c0_8, %c1, %c0_9] : memref<1x2x128xf32, #tpu.memory_space<vmem>>, vector<1x1x128xf32>
    %30 = vector.shape_cast %29 : vector<1x1x128xf32> to vector<1x128xf32>
    %cst_10 = arith.constant 0.000000e+00 : f32
    %31 = vector.broadcast %cst_10 : f32 to vector<1x128xf32>
    %32 = arith.cmpf oge, %30, %31 : vector<1x128xf32>
    %cst_11 = arith.constant 1.000000e+00 : f32
    %33 = vector.broadcast %cst_11 : f32 to vector<1x128xf32>
    %34 = arith.cmpf ole, %30, %33 : vector<1x128xf32>
    %35 = arith.andi %32, %34 : vector<1x128xi1>
    %cst_12 = arith.constant 2.560000e+02 : f32
    %36 = vector.broadcast %cst_12 : f32 to vector<1x128xf32>
    %37 = arith.mulf %30, %36 : vector<1x128xf32>
    %38 = math.floor %37 : vector<1x128xf32>
    %39 = arith.fptosi %38 : vector<1x128xf32> to vector<1x128xi32>
    %c0_i32_13 = arith.constant 0 : i32
    %c255_i32_14 = arith.constant 255 : i32
    %40 = vector.broadcast %c0_i32_13 : i32 to vector<1x128xi32>
    %41 = arith.maxsi %40, %39 : vector<1x128xi32>
    %42 = vector.broadcast %c255_i32_14 : i32 to vector<1x128xi32>
    %43 = arith.minsi %42, %41 : vector<1x128xi32>
    %c-1_i32_15 = arith.constant -1 : i32
    %44 = vector.broadcast %c-1_i32_15 : i32 to vector<1x128xi32>
    %45 = arith.select %35, %43, %44 : vector<1x128xi1>, vector<1x128xi32>
    %46 = vector.broadcast %45 : vector<1x128xi32> to vector<256x128xi32>
    %47 = arith.cmpi eq, %46, %5 : vector<256x128xi32>
    %48 = arith.extui %47 : vector<256x128xi1> to vector<256x128xi32>
    %49 = arith.sitofp %48 : vector<256x128xi32> to vector<256x128xf32>
    %50 = arith.addf %28, %49 : vector<256x128xf32>
    %cst_16 = arith.constant 1.000000e+00 : f32
    %51 = vector.broadcast %cst_16 : f32 to vector<128x1xf32>
    %cst_17 = arith.constant dense<0.000000e+00> : vector<256x1xf32>
    %52 = tpu.matmul %50, %51, %cst_17 {dimension_numbers = #tpu.dot_dimension_numbers<[1], [0], [0], [1], [0, 0, 1, 1], [], []>} : vector<256x128xf32>, vector<128x1xf32>, vector<256x1xf32> -> vector<256x1xf32>
    %c0_18 = arith.constant 0 : index
    %c0_19 = arith.constant 0 : index
    %c0_20 = arith.constant 0 : index
    %53 = vector.load %arg4[%c0_18, %c0_19, %c0_20] : memref<1x256x1xf32, #tpu.memory_space<vmem>>, vector<1x256x1xf32>
    %54 = vector.shape_cast %53 : vector<1x256x1xf32> to vector<256x1xf32>
    %55 = arith.addf %54, %52 : vector<256x1xf32>
    %c0_21 = arith.constant 0 : index
    %c0_22 = arith.constant 0 : index
    %c0_23 = arith.constant 0 : index
    %56 = vector.load %arg4[%c0_21, %c0_22, %c0_23] : memref<1x256x1xf32, #tpu.memory_space<vmem>>, vector<1x256x1xf32>
    %57 = vector.shape_cast %56 : vector<1x256x1xf32> to vector<256x1xf32>
    %58 = vector.shape_cast %55 : vector<256x1xf32> to vector<1x256x1xf32>
    tpu.vector_store %arg4[%c0_21, %c0_22, %c0_23], %58 {strides = array<i32>} : memref<1x256x1xf32, #tpu.memory_space<vmem>>, vector<1x256x1xf32>,
    return
  }
  func.func @transform_0(%arg0: i32, %arg1: i32, %arg2: i32) -> (i32, i32, i32) {
    %c3_i32 = arith.constant 3 : i32
    %0 = arith.muli %arg1, %c3_i32 : i32
    %1 = arith.addi %0, %arg0 : i32
    %c0_i32 = arith.constant 0 : i32
    %c0_i32_0 = arith.constant 0 : i32
    return %1, %arg2, %c0_i32 : i32, i32, i32
  }
  func.func @transform_1(%arg0: i32, %arg1: i32, %arg2: i32) -> (i32, i32, i32) {
    %c0_i32 = arith.constant 0 : i32
    %c0_i32_0 = arith.constant 0 : i32
    %c0_i32_1 = arith.constant 0 : i32
    return %arg0, %c0_i32, %c0_i32_0 : i32, i32, i32
  }
}

module attributes {stable_mosaic.version = 11 : i64} {
  func.func @_mlp_kernel(%arg0: memref<3x256xf32, #tpu.memory_space<vmem>>, %arg1: memref<16x256x256xbf16, #tpu.memory_space<vmem>>, %arg2: memref<16x256xf32, #tpu.memory_space<vmem>>, %arg3: memref<3x256xf32, #tpu.memory_space<vmem>>) attributes {dimension_semantics = [], scalar_prefetch = 0 : i64, scratch_operands = 0 : i64, tpu.core_type = #tpu.core_type<tc>} {
    %c0 = arith.constant 0 : index
    %c0_0 = arith.constant 0 : index
    %0 = vector.load %arg0[%c0, %c0_0] : memref<3x256xf32, #tpu.memory_space<vmem>>, vector<3x256xf32>
    %c0_1 = arith.constant 0 : index
    %c0_2 = arith.constant 0 : index
    %1 = vector.load %arg2[%c0_1, %c0_2] : memref<16x256xf32, #tpu.memory_space<vmem>>, vector<16x256xf32>
    %2 = arith.truncf %0 : vector<3x256xf32> to vector<3x256xbf16>
    %c0_3 = arith.constant 0 : index
    %c0_4 = arith.constant 0 : index
    %c0_5 = arith.constant 0 : index
    %3 = vector.load %arg1[%c0_3, %c0_4, %c0_5] : memref<16x256x256xbf16, #tpu.memory_space<vmem>>, vector<1x256x256xbf16>
    %4 = vector.shape_cast %3 : vector<1x256x256xbf16> to vector<256x256xbf16>
    %cst = arith.constant dense<0.000000e+00> : vector<3x256xf32>
    %5 = tpu.matmul %2, %4, %cst {dimension_numbers = #tpu.dot_dimension_numbers<[1], [0], [0], [1], [0, 0, 1, 1], [], []>} : vector<3x256xbf16>, vector<256x256xbf16>, vector<3x256xf32> -> vector<3x256xf32>
    %6 = vector.extract_strided_slice %1 {offsets = [0, 0], sizes = [1, 256], strides = [1, 1]} : vector<16x256xf32> to vector<1x256xf32>
    %7 = vector.broadcast %6 : vector<1x256xf32> to vector<3x256xf32>
    %8 = arith.addf %5, %7 : vector<3x256xf32>
    %cst_6 = arith.constant 0.000000e+00 : f32
    %9 = vector.broadcast %cst_6 : f32 to vector<3x256xf32>
    %10 = arith.maximumf %8, %9 : vector<3x256xf32>
    %11 = arith.truncf %10 : vector<3x256xf32> to vector<3x256xbf16>
    %c1 = arith.constant 1 : index
    %c0_7 = arith.constant 0 : index
    %c0_8 = arith.constant 0 : index
    %12 = vector.load %arg1[%c1, %c0_7, %c0_8] : memref<16x256x256xbf16, #tpu.memory_space<vmem>>, vector<1x256x256xbf16>
    %13 = vector.shape_cast %12 : vector<1x256x256xbf16> to vector<256x256xbf16>
    %cst_9 = arith.constant dense<0.000000e+00> : vector<3x256xf32>
    %14 = tpu.matmul %11, %13, %cst_9 {dimension_numbers = #tpu.dot_dimension_numbers<[1], [0], [0], [1], [0, 0, 1, 1], [], []>} : vector<3x256xbf16>, vector<256x256xbf16>, vector<3x256xf32> -> vector<3x256xf32>
    %15 = vector.extract_strided_slice %1 {offsets = [1, 0], sizes = [1, 256], strides = [1, 1]} : vector<16x256xf32> to vector<1x256xf32>
    %16 = vector.broadcast %15 : vector<1x256xf32> to vector<3x256xf32>
    %17 = arith.addf %14, %16 : vector<3x256xf32>
    %cst_10 = arith.constant 0.000000e+00 : f32
    %18 = vector.broadcast %cst_10 : f32 to vector<3x256xf32>
    %19 = arith.maximumf %17, %18 : vector<3x256xf32>
    %20 = arith.truncf %19 : vector<3x256xf32> to vector<3x256xbf16>
    %c2 = arith.constant 2 : index
    %c0_11 = arith.constant 0 : index
    %c0_12 = arith.constant 0 : index
    %21 = vector.load %arg1[%c2, %c0_11, %c0_12] : memref<16x256x256xbf16, #tpu.memory_space<vmem>>, vector<1x256x256xbf16>
    %22 = vector.shape_cast %21 : vector<1x256x256xbf16> to vector<256x256xbf16>
    %cst_13 = arith.constant dense<0.000000e+00> : vector<3x256xf32>
    %23 = tpu.matmul %20, %22, %cst_13 {dimension_numbers = #tpu.dot_dimension_numbers<[1], [0], [0], [1], [0, 0, 1, 1], [], []>} : vector<3x256xbf16>, vector<256x256xbf16>, vector<3x256xf32> -> vector<3x256xf32>
    %24 = vector.extract_strided_slice %1 {offsets = [2, 0], sizes = [1, 256], strides = [1, 1]} : vector<16x256xf32> to vector<1x256xf32>
    %25 = vector.broadcast %24 : vector<1x256xf32> to vector<3x256xf32>
    %26 = arith.addf %23, %25 : vector<3x256xf32>
    %cst_14 = arith.constant 0.000000e+00 : f32
    %27 = vector.broadcast %cst_14 : f32 to vector<3x256xf32>
    %28 = arith.maximumf %26, %27 : vector<3x256xf32>
    %29 = arith.truncf %28 : vector<3x256xf32> to vector<3x256xbf16>
    %c3 = arith.constant 3 : index
    %c0_15 = arith.constant 0 : index
    %c0_16 = arith.constant 0 : index
    %30 = vector.load %arg1[%c3, %c0_15, %c0_16] : memref<16x256x256xbf16, #tpu.memory_space<vmem>>, vector<1x256x256xbf16>
    %31 = vector.shape_cast %30 : vector<1x256x256xbf16> to vector<256x256xbf16>
    %cst_17 = arith.constant dense<0.000000e+00> : vector<3x256xf32>
    %32 = tpu.matmul %29, %31, %cst_17 {dimension_numbers = #tpu.dot_dimension_numbers<[1], [0], [0], [1], [0, 0, 1, 1], [], []>} : vector<3x256xbf16>, vector<256x256xbf16>, vector<3x256xf32> -> vector<3x256xf32>
    %33 = vector.extract_strided_slice %1 {offsets = [3, 0], sizes = [1, 256], strides = [1, 1]} : vector<16x256xf32> to vector<1x256xf32>
    %34 = vector.broadcast %33 : vector<1x256xf32> to vector<3x256xf32>
    %35 = arith.addf %32, %34 : vector<3x256xf32>
    %cst_18 = arith.constant 0.000000e+00 : f32
    %36 = vector.broadcast %cst_18 : f32 to vector<3x256xf32>
    %37 = arith.maximumf %35, %36 : vector<3x256xf32>
    %38 = arith.truncf %37 : vector<3x256xf32> to vector<3x256xbf16>
    %c4 = arith.constant 4 : index
    %c0_19 = arith.constant 0 : index
    %c0_20 = arith.constant 0 : index
    %39 = vector.load %arg1[%c4, %c0_19, %c0_20] : memref<16x256x256xbf16, #tpu.memory_space<vmem>>, vector<1x256x256xbf16>
    %40 = vector.shape_cast %39 : vector<1x256x256xbf16> to vector<256x256xbf16>
    %cst_21 = arith.constant dense<0.000000e+00> : vector<3x256xf32>
    %41 = tpu.matmul %38, %40, %cst_21 {dimension_numbers = #tpu.dot_dimension_numbers<[1], [0], [0], [1], [0, 0, 1, 1], [], []>} : vector<3x256xbf16>, vector<256x256xbf16>, vector<3x256xf32> -> vector<3x256xf32>
    %42 = vector.extract_strided_slice %1 {offsets = [4, 0], sizes = [1, 256], strides = [1, 1]} : vector<16x256xf32> to vector<1x256xf32>
    %43 = vector.broadcast %42 : vector<1x256xf32> to vector<3x256xf32>
    %44 = arith.addf %41, %43 : vector<3x256xf32>
    %cst_22 = arith.constant 0.000000e+00 : f32
    %45 = vector.broadcast %cst_22 : f32 to vector<3x256xf32>
    %46 = arith.maximumf %44, %45 : vector<3x256xf32>
    %47 = arith.truncf %46 : vector<3x256xf32> to vector<3x256xbf16>
    %c5 = arith.constant 5 : index
    %c0_23 = arith.constant 0 : index
    %c0_24 = arith.constant 0 : index
    %48 = vector.load %arg1[%c5, %c0_23, %c0_24] : memref<16x256x256xbf16, #tpu.memory_space<vmem>>, vector<1x256x256xbf16>
    %49 = vector.shape_cast %48 : vector<1x256x256xbf16> to vector<256x256xbf16>
    %cst_25 = arith.constant dense<0.000000e+00> : vector<3x256xf32>
    %50 = tpu.matmul %47, %49, %cst_25 {dimension_numbers = #tpu.dot_dimension_numbers<[1], [0], [0], [1], [0, 0, 1, 1], [], []>} : vector<3x256xbf16>, vector<256x256xbf16>, vector<3x256xf32> -> vector<3x256xf32>
    %51 = vector.extract_strided_slice %1 {offsets = [5, 0], sizes = [1, 256], strides = [1, 1]} : vector<16x256xf32> to vector<1x256xf32>
    %52 = vector.broadcast %51 : vector<1x256xf32> to vector<3x256xf32>
    %53 = arith.addf %50, %52 : vector<3x256xf32>
    %cst_26 = arith.constant 0.000000e+00 : f32
    %54 = vector.broadcast %cst_26 : f32 to vector<3x256xf32>
    %55 = arith.maximumf %53, %54 : vector<3x256xf32>
    %56 = arith.truncf %55 : vector<3x256xf32> to vector<3x256xbf16>
    %c6 = arith.constant 6 : index
    %c0_27 = arith.constant 0 : index
    %c0_28 = arith.constant 0 : index
    %57 = vector.load %arg1[%c6, %c0_27, %c0_28] : memref<16x256x256xbf16, #tpu.memory_space<vmem>>, vector<1x256x256xbf16>
    %58 = vector.shape_cast %57 : vector<1x256x256xbf16> to vector<256x256xbf16>
    %cst_29 = arith.constant dense<0.000000e+00> : vector<3x256xf32>
    %59 = tpu.matmul %56, %58, %cst_29 {dimension_numbers = #tpu.dot_dimension_numbers<[1], [0], [0], [1], [0, 0, 1, 1], [], []>} : vector<3x256xbf16>, vector<256x256xbf16>, vector<3x256xf32> -> vector<3x256xf32>
    %60 = vector.extract_strided_slice %1 {offsets = [6, 0], sizes = [1, 256], strides = [1, 1]} : vector<16x256xf32> to vector<1x256xf32>
    %61 = vector.broadcast %60 : vector<1x256xf32> to vector<3x256xf32>
    %62 = arith.addf %59, %61 : vector<3x256xf32>
    %cst_30 = arith.constant 0.000000e+00 : f32
    %63 = vector.broadcast %cst_30 : f32 to vector<3x256xf32>
    %64 = arith.maximumf %62, %63 : vector<3x256xf32>
    %65 = arith.truncf %64 : vector<3x256xf32> to vector<3x256xbf16>
    %c7 = arith.constant 7 : index
    %c0_31 = arith.constant 0 : index
    %c0_32 = arith.constant 0 : index
    %66 = vector.load %arg1[%c7, %c0_31, %c0_32] : memref<16x256x256xbf16, #tpu.memory_space<vmem>>, vector<1x256x256xbf16>
    %67 = vector.shape_cast %66 : vector<1x256x256xbf16> to vector<256x256xbf16>
    %cst_33 = arith.constant dense<0.000000e+00> : vector<3x256xf32>
    %68 = tpu.matmul %65, %67, %cst_33 {dimension_numbers = #tpu.dot_dimension_numbers<[1], [0], [0], [1], [0, 0, 1, 1], [], []>} : vector<3x256xbf16>, vector<256x256xbf16>, vector<3x256xf32> -> vector<3x256xf32>
    %69 = vector.extract_strided_slice %1 {offsets = [7, 0], sizes = [1, 256], strides = [1, 1]} : vector<16x256xf32> to vector<1x256xf32>
    %70 = vector.broadcast %69 : vector<1x256xf32> to vector<3x256xf32>
    %71 = arith.addf %68, %70 : vector<3x256xf32>
    %cst_34 = arith.constant 0.000000e+00 : f32
    %72 = vector.broadcast %cst_34 : f32 to vector<3x256xf32>
    %73 = arith.maximumf %71, %72 : vector<3x256xf32>
    %74 = arith.truncf %73 : vector<3x256xf32> to vector<3x256xbf16>
    %c8 = arith.constant 8 : index
    %c0_35 = arith.constant 0 : index
    %c0_36 = arith.constant 0 : index
    %75 = vector.load %arg1[%c8, %c0_35, %c0_36] : memref<16x256x256xbf16, #tpu.memory_space<vmem>>, vector<1x256x256xbf16>
    %76 = vector.shape_cast %75 : vector<1x256x256xbf16> to vector<256x256xbf16>
    %cst_37 = arith.constant dense<0.000000e+00> : vector<3x256xf32>
    %77 = tpu.matmul %74, %76, %cst_37 {dimension_numbers = #tpu.dot_dimension_numbers<[1], [0], [0], [1], [0, 0, 1, 1], [], []>} : vector<3x256xbf16>, vector<256x256xbf16>, vector<3x256xf32> -> vector<3x256xf32>
    %78 = vector.extract_strided_slice %1 {offsets = [8, 0], sizes = [1, 256], strides = [1, 1]} : vector<16x256xf32> to vector<1x256xf32>
    %79 = vector.broadcast %78 : vector<1x256xf32> to vector<3x256xf32>
    %80 = arith.addf %77, %79 : vector<3x256xf32>
    %cst_38 = arith.constant 0.000000e+00 : f32
    %81 = vector.broadcast %cst_38 : f32 to vector<3x256xf32>
    %82 = arith.maximumf %80, %81 : vector<3x256xf32>
    %83 = arith.truncf %82 : vector<3x256xf32> to vector<3x256xbf16>
    %c9 = arith.constant 9 : index
    %c0_39 = arith.constant 0 : index
    %c0_40 = arith.constant 0 : index
    %84 = vector.load %arg1[%c9, %c0_39, %c0_40] : memref<16x256x256xbf16, #tpu.memory_space<vmem>>, vector<1x256x256xbf16>
    %85 = vector.shape_cast %84 : vector<1x256x256xbf16> to vector<256x256xbf16>
    %cst_41 = arith.constant dense<0.000000e+00> : vector<3x256xf32>
    %86 = tpu.matmul %83, %85, %cst_41 {dimension_numbers = #tpu.dot_dimension_numbers<[1], [0], [0], [1], [0, 0, 1, 1], [], []>} : vector<3x256xbf16>, vector<256x256xbf16>, vector<3x256xf32> -> vector<3x256xf32>
    %87 = vector.extract_strided_slice %1 {offsets = [9, 0], sizes = [1, 256], strides = [1, 1]} : vector<16x256xf32> to vector<1x256xf32>
    %88 = vector.broadcast %87 : vector<1x256xf32> to vector<3x256xf32>
    %89 = arith.addf %86, %88 : vector<3x256xf32>
    %cst_42 = arith.constant 0.000000e+00 : f32
    %90 = vector.broadcast %cst_42 : f32 to vector<3x256xf32>
    %91 = arith.maximumf %89, %90 : vector<3x256xf32>
    %92 = arith.truncf %91 : vector<3x256xf32> to vector<3x256xbf16>
    %c10 = arith.constant 10 : index
    %c0_43 = arith.constant 0 : index
    %c0_44 = arith.constant 0 : index
    %93 = vector.load %arg1[%c10, %c0_43, %c0_44] : memref<16x256x256xbf16, #tpu.memory_space<vmem>>, vector<1x256x256xbf16>
    %94 = vector.shape_cast %93 : vector<1x256x256xbf16> to vector<256x256xbf16>
    %cst_45 = arith.constant dense<0.000000e+00> : vector<3x256xf32>
    %95 = tpu.matmul %92, %94, %cst_45 {dimension_numbers = #tpu.dot_dimension_numbers<[1], [0], [0], [1], [0, 0, 1, 1], [], []>} : vector<3x256xbf16>, vector<256x256xbf16>, vector<3x256xf32> -> vector<3x256xf32>
    %96 = vector.extract_strided_slice %1 {offsets = [10, 0], sizes = [1, 256], strides = [1, 1]} : vector<16x256xf32> to vector<1x256xf32>
    %97 = vector.broadcast %96 : vector<1x256xf32> to vector<3x256xf32>
    %98 = arith.addf %95, %97 : vector<3x256xf32>
    %cst_46 = arith.constant 0.000000e+00 : f32
    %99 = vector.broadcast %cst_46 : f32 to vector<3x256xf32>
    %100 = arith.maximumf %98, %99 : vector<3x256xf32>
    %101 = arith.truncf %100 : vector<3x256xf32> to vector<3x256xbf16>
    %c11 = arith.constant 11 : index
    %c0_47 = arith.constant 0 : index
    %c0_48 = arith.constant 0 : index
    %102 = vector.load %arg1[%c11, %c0_47, %c0_48] : memref<16x256x256xbf16, #tpu.memory_space<vmem>>, vector<1x256x256xbf16>
    %103 = vector.shape_cast %102 : vector<1x256x256xbf16> to vector<256x256xbf16>
    %cst_49 = arith.constant dense<0.000000e+00> : vector<3x256xf32>
    %104 = tpu.matmul %101, %103, %cst_49 {dimension_numbers = #tpu.dot_dimension_numbers<[1], [0], [0], [1], [0, 0, 1, 1], [], []>} : vector<3x256xbf16>, vector<256x256xbf16>, vector<3x256xf32> -> vector<3x256xf32>
    %105 = vector.extract_strided_slice %1 {offsets = [11, 0], sizes = [1, 256], strides = [1, 1]} : vector<16x256xf32> to vector<1x256xf32>
    %106 = vector.broadcast %105 : vector<1x256xf32> to vector<3x256xf32>
    %107 = arith.addf %104, %106 : vector<3x256xf32>
    %cst_50 = arith.constant 0.000000e+00 : f32
    %108 = vector.broadcast %cst_50 : f32 to vector<3x256xf32>
    %109 = arith.maximumf %107, %108 : vector<3x256xf32>
    %110 = arith.truncf %109 : vector<3x256xf32> to vector<3x256xbf16>
    %c12 = arith.constant 12 : index
    %c0_51 = arith.constant 0 : index
    %c0_52 = arith.constant 0 : index
    %111 = vector.load %arg1[%c12, %c0_51, %c0_52] : memref<16x256x256xbf16, #tpu.memory_space<vmem>>, vector<1x256x256xbf16>
    %112 = vector.shape_cast %111 : vector<1x256x256xbf16> to vector<256x256xbf16>
    %cst_53 = arith.constant dense<0.000000e+00> : vector<3x256xf32>
    %113 = tpu.matmul %110, %112, %cst_53 {dimension_numbers = #tpu.dot_dimension_numbers<[1], [0], [0], [1], [0, 0, 1, 1], [], []>} : vector<3x256xbf16>, vector<256x256xbf16>, vector<3x256xf32> -> vector<3x256xf32>
    %114 = vector.extract_strided_slice %1 {offsets = [12, 0], sizes = [1, 256], strides = [1, 1]} : vector<16x256xf32> to vector<1x256xf32>
    %115 = vector.broadcast %114 : vector<1x256xf32> to vector<3x256xf32>
    %116 = arith.addf %113, %115 : vector<3x256xf32>
    %cst_54 = arith.constant 0.000000e+00 : f32
    %117 = vector.broadcast %cst_54 : f32 to vector<3x256xf32>
    %118 = arith.maximumf %116, %117 : vector<3x256xf32>
    %119 = arith.truncf %118 : vector<3x256xf32> to vector<3x256xbf16>
    %c13 = arith.constant 13 : index
    %c0_55 = arith.constant 0 : index
    %c0_56 = arith.constant 0 : index
    %120 = vector.load %arg1[%c13, %c0_55, %c0_56] : memref<16x256x256xbf16, #tpu.memory_space<vmem>>, vector<1x256x256xbf16>
    %121 = vector.shape_cast %120 : vector<1x256x256xbf16> to vector<256x256xbf16>
    %cst_57 = arith.constant dense<0.000000e+00> : vector<3x256xf32>
    %122 = tpu.matmul %119, %121, %cst_57 {dimension_numbers = #tpu.dot_dimension_numbers<[1], [0], [0], [1], [0, 0, 1, 1], [], []>} : vector<3x256xbf16>, vector<256x256xbf16>, vector<3x256xf32> -> vector<3x256xf32>
    %123 = vector.extract_strided_slice %1 {offsets = [13, 0], sizes = [1, 256], strides = [1, 1]} : vector<16x256xf32> to vector<1x256xf32>
    %124 = vector.broadcast %123 : vector<1x256xf32> to vector<3x256xf32>
    %125 = arith.addf %122, %124 : vector<3x256xf32>
    %cst_58 = arith.constant 0.000000e+00 : f32
    %126 = vector.broadcast %cst_58 : f32 to vector<3x256xf32>
    %127 = arith.maximumf %125, %126 : vector<3x256xf32>
    %128 = arith.truncf %127 : vector<3x256xf32> to vector<3x256xbf16>
    %c14 = arith.constant 14 : index
    %c0_59 = arith.constant 0 : index
    %c0_60 = arith.constant 0 : index
    %129 = vector.load %arg1[%c14, %c0_59, %c0_60] : memref<16x256x256xbf16, #tpu.memory_space<vmem>>, vector<1x256x256xbf16>
    %130 = vector.shape_cast %129 : vector<1x256x256xbf16> to vector<256x256xbf16>
    %cst_61 = arith.constant dense<0.000000e+00> : vector<3x256xf32>
    %131 = tpu.matmul %128, %130, %cst_61 {dimension_numbers = #tpu.dot_dimension_numbers<[1], [0], [0], [1], [0, 0, 1, 1], [], []>} : vector<3x256xbf16>, vector<256x256xbf16>, vector<3x256xf32> -> vector<3x256xf32>
    %132 = vector.extract_strided_slice %1 {offsets = [14, 0], sizes = [1, 256], strides = [1, 1]} : vector<16x256xf32> to vector<1x256xf32>
    %133 = vector.broadcast %132 : vector<1x256xf32> to vector<3x256xf32>
    %134 = arith.addf %131, %133 : vector<3x256xf32>
    %cst_62 = arith.constant 0.000000e+00 : f32
    %135 = vector.broadcast %cst_62 : f32 to vector<3x256xf32>
    %136 = arith.maximumf %134, %135 : vector<3x256xf32>
    %137 = arith.truncf %136 : vector<3x256xf32> to vector<3x256xbf16>
    %c15 = arith.constant 15 : index
    %c0_63 = arith.constant 0 : index
    %c0_64 = arith.constant 0 : index
    %138 = vector.load %arg1[%c15, %c0_63, %c0_64] : memref<16x256x256xbf16, #tpu.memory_space<vmem>>, vector<1x256x256xbf16>
    %139 = vector.shape_cast %138 : vector<1x256x256xbf16> to vector<256x256xbf16>
    %cst_65 = arith.constant dense<0.000000e+00> : vector<3x256xf32>
    %140 = tpu.matmul %137, %139, %cst_65 {dimension_numbers = #tpu.dot_dimension_numbers<[1], [0], [0], [1], [0, 0, 1, 1], [], []>} : vector<3x256xbf16>, vector<256x256xbf16>, vector<3x256xf32> -> vector<3x256xf32>
    %141 = vector.extract_strided_slice %1 {offsets = [15, 0], sizes = [1, 256], strides = [1, 1]} : vector<16x256xf32> to vector<1x256xf32>
    %142 = vector.broadcast %141 : vector<1x256xf32> to vector<3x256xf32>
    %143 = arith.addf %140, %142 : vector<3x256xf32>
    %c0_66 = arith.constant 0 : index
    %c0_67 = arith.constant 0 : index
    %144 = vector.load %arg3[%c0_66, %c0_67] : memref<3x256xf32, #tpu.memory_space<vmem>>, vector<3x256xf32>
    tpu.vector_store %arg3[%c0_66, %c0_67], %143 {strides = array<i32>} : memref<3x256xf32, #tpu.memory_space<vmem>>, vector<3x256xf32>,
    return
  }
}

</mosaic_0001>

<bundles_post_ra>
// kernel: style_transfer3_forward.2
= control target key start
LH: loop header
LB: loop body
LE: loop exit
PB: predicated region body
PF: predicated region fallthrough
CT: control target
= control target key end

     0   :  { %s1019_s6 = smov 0   ;;  %s1021_s7 = smov 0   ;;  %s1510_s0 = inlined_call_operand.vmem [shape: f32[6,2,128], index: 0, kind: input, shape index: {}]   ;;  %s1511_s1 = inlined_call_operand.vmem [shape: f32[3,256,1], index: 1, kind: output, shape index: {}]  }
   0x1   :  { %s1023_s8 = smov 0   ;;  %s1025_s9 = smov 0  }
   0x2   :  { %s1027_s10 = smov 0  }
   0x3 LB: > { %s26_s11 = sadd.s32 1, %s996_s8  ;;  %s30_s12 = sadd.s32 1, %s1000_s9  ;;  %s1004_s10 = sphi %s1027_s10, %s11_s10   ;;  %s1000_s9 = sphi %s1025_s9, %s1519_s9   ;;  %s996_s8 = sphi %s1023_s8, %s1518_s8   ;;  %s992_s7 = sphi %s1021_s7, %s1517_s7   ;;  %s988_s6 = sphi %s1019_s6, %s1516_s6  }
   0x4   : > { %p28_p0 = scmp.ge.s32.totalorder %s26_s11, 2  ;;  %p798_p1 = scmp.ge.s32.totalorder %s1004_s10, 1 }
   0x5   : > { %p118_p2 = scmp.lt.s32.totalorder %s1004_s10, 7 }
   0x6   : > { %s1521_s11 = smov (%p28_p0, %s26_s11), 0  ;;  %s1523_s12 = smov (!%p28_p0, %s30_s12), %s1000_s9 }
   0x7   : > { %p119_p3 = pnand %p798_p1, %p118_p2  ;;  %p32_p4 = scmp.ge.s32.totalorder %s1523_s12, 3 }
   0x8   : > { %s142_s13 = smul.u32 (!%p119_p3), 3, %s988_s6  ;;  %p153_p5 = scmp.lt.s32.totalorder (!%p119_p3), %s992_s7, 2 }
   0x9   : > { %s1525_s12 = smov (%p32_p4, %s1523_s12), 0  ;;  %122 = sbr.rel (%p119_p3) target bundleno = 273 (0x111), region = 24 }
   0xa   : > { %p158_p6 = scmp.eq.s32.totalorder (!%p119_p3), %s988_s6, 0  ;;  %s143_s14 = sadd.s32 (!%p119_p3), %s992_s7, %s142_s13 }
   0xb   : > { %p144_p7 = scmp.lt.s32.totalorder (!%p119_p3), %s143_s14, 5 }
   0xe   : > { %s1527_s7 = smov (!%p153_p5, %s992_s7), 2  ;;  %s1529_s14 = smov (!%p144_p7, %s143_s14), 5  ;;  %vm164_vm0 = vcmask (%p158_p6), 7168   ;;  %v1006_v0 = vmov (%p158_p6), 0.0  }
   0xf   : > { %s869_s15 = sshll.u32 %s1527_s7, 8  ;;  %s799_s16 = sshll.u32 %s1529_s14, 1 }
  0x10   : > { %s1052_s19 = scalar_lea.vmem %s1511_s1, %s869_s15  ;;  %s1057_s22 = scalar_lea.vmem %s1510_s0, %s799_s16 }
  0x11   : > { %163 = sbr.rel (!%p158_p6) target bundleno = 49 (0x31), region = 28  ;;  %165 = vst.msk [vmem:[%s1052_s19] sm:$0xff] (%p158_p6), %vm164_vm0, %v1006_v0 }
  0x12   : > { %166 = vst.msk [vmem:[%s1052_s19 + $0x8] sm:$0xff] (%p158_p6), %vm164_vm0, %v1006_v0 }
  0x13   : > { %167 = vst.msk [vmem:[%s1052_s19 + $0x10] sm:$0xff] (%p158_p6), %vm164_vm0, %v1006_v0 }
  0x14   : > { %168 = vst.msk [vmem:[%s1052_s19 + $0x18] sm:$0xff] (%p158_p6), %vm164_vm0, %v1006_v0 }
  0x15   : > { %169 = vst.msk [vmem:[%s1052_s19 + $0x20] sm:$0xff] (%p158_p6), %vm164_vm0, %v1006_v0 }
  0x16   : > { %170 = vst.msk [vmem:[%s1052_s19 + $0x28] sm:$0xff] %vm164_vm0, %v1006_v0 }
  0x17   : > { %171 = vst.msk [vmem:[%s1052_s19 + $0x30] sm:$0xff] %vm164_vm0, %v1006_v0 }
  0x18   : > { %172 = vst.msk [vmem:[%s1052_s19 + $0x38] sm:$0xff] %vm164_vm0, %v1006_v0 }
  0x19   : > { %173 = vst.msk [vmem:[%s1052_s19 + $0x40] sm:$0xff] %vm164_vm0, %v1006_v0 }
  0x1a   : > { %174 = vst.msk [vmem:[%s1052_s19 + $0x48] sm:$0xff] %vm164_vm0, %v1006_v0 }
  0x1b   : > { %175 = vst.msk [vmem:[%s1052_s19 + $0x50] sm:$0xff] %vm164_vm0, %v1006_v0 }
  0x1c   : > { %176 = vst.msk [vmem:[%s1052_s19 + $0x58] sm:$0xff] %vm164_vm0, %v1006_v0 }
  0x1d   : > { %177 = vst.msk [vmem:[%s1052_s19 + $0x60] sm:$0xff] %vm164_vm0, %v1006_v0 }
  0x1e   : > { %178 = vst.msk [vmem:[%s1052_s19 + $0x68] sm:$0xff] %vm164_vm0, %v1006_v0 }
  0x1f   : > { %179 = vst.msk [vmem:[%s1052_s19 + $0x70] sm:$0xff] %vm164_vm0, %v1006_v0 }
  0x20   : > { %180 = vst.msk [vmem:[%s1052_s19 + $0x78] sm:$0xff] %vm164_vm0, %v1006_v0 }
  0x21   : > { %181 = vst.msk [vmem:[%s1052_s19 + $0x80] sm:$0xff] %vm164_vm0, %v1006_v0 }
  0x22   : > { %182 = vst.msk [vmem:[%s1052_s19 + $0x88] sm:$0xff] %vm164_vm0, %v1006_v0 }
  0x23   : > { %183 = vst.msk [vmem:[%s1052_s19 + $0x90] sm:$0xff] %vm164_vm0, %v1006_v0 }
  0x24   : > { %184 = vst.msk [vmem:[%s1052_s19 + $0x98] sm:$0xff] %vm164_vm0, %v1006_v0 }
  0x25   : > { %185 = vst.msk [vmem:[%s1052_s19 + $0xa0] sm:$0xff] %vm164_vm0, %v1006_v0 }
  0x26   : > { %186 = vst.msk [vmem:[%s1052_s19 + $0xa8] sm:$0xff] %vm164_vm0, %v1006_v0 }
  0x27   : > { %187 = vst.msk [vmem:[%s1052_s19 + $0xb0] sm:$0xff] %vm164_vm0, %v1006_v0 }
  0x28   : > { %188 = vst.msk [vmem:[%s1052_s19 + $0xb8] sm:$0xff] %vm164_vm0, %v1006_v0 }
  0x29   : > { %189 = vst.msk [vmem:[%s1052_s19 + $0xc0] sm:$0xff] %vm164_vm0, %v1006_v0 }
  0x2a   : > { %190 = vst.msk [vmem:[%s1052_s19 + $0xc8] sm:$0xff] %vm164_vm0, %v1006_v0 }
  0x2b   : > { %191 = vst.msk [vmem:[%s1052_s19 + $0xd0] sm:$0xff] %vm164_vm0, %v1006_v0 }
  0x2c   : > { %192 = vst.msk [vmem:[%s1052_s19 + $0xd8] sm:$0xff] %vm164_vm0, %v1006_v0 }
  0x2d   : > { %193 = vst.msk [vmem:[%s1052_s19 + $0xe0] sm:$0xff] %vm164_vm0, %v1006_v0 }
  0x2e   : > { %194 = vst.msk [vmem:[%s1052_s19 + $0xe8] sm:$0xff] %vm164_vm0, %v1006_v0 }
  0x2f   : > { %195 = vst.msk [vmem:[%s1052_s19 + $0xf0] sm:$0xff] %vm164_vm0, %v1006_v0 }
  0x30   : > { %196 = vst.msk [vmem:[%s1052_s19 + $0xf8] sm:$0xff] %vm164_vm0, %v1006_v0 }
  0x31 PF: > { %v230_v1 = vld [vmem:[%s1057_s22] sm:$0x1]  ;;  %v371_v2 = vld [vmem:[%s1057_s22 + $0x1] sm:$0x1]  ;;  %v1007_v3 = vmov 1.0   ;;  %v197_v10 = vlaneseq  ;;  %v1008_v26 = vmov 0.0  }
  0x32   : > { %872 = vmatpush.msra.mxu2 %v1007_v3  ;;  %873 = vmatpush.msra.mxu3 %v1007_v3  ;;  %v234_v4 = vmul.f32 256.0, %v230_v1  ;;  %v375_v5 = vmul.f32 256.0, %v371_v2  ;;  %vm231_vm2 = vcmp.ge.f32.partialorder %v230_v1, 0.0  ;;  %vm232_vm3 = vcmp.le.f32.partialorder %v230_v1, 1.0 }
  0x33   : > { %512 = vmatpush.msra.mxu0 %v1007_v3  ;;  %871 = vmatpush.msra.mxu1 %v1007_v3  ;;  %vm372_vm6 = vcmp.ge.f32.partialorder %v371_v2, 0.0  ;;  %vm373_vm7 = vcmp.le.f32.partialorder %v371_v2, 1.0  ;;  %vm1148_vm9 = vmand %vm231_vm2, %vm232_vm3  ;;  %v1160_v17 = vshrl.u32 %v197_v10, 7 }
  0x34   : > { %875 = vmatpush.msra.mxu2 %v1007_v3  ;;  %876 = vmatpush.msra.mxu3 %v1007_v3  ;;  %v235_v6 = vfloor.f32 %v234_v4  ;;  %v376_v7 = vfloor.f32 %v375_v5  ;;  %vm1154_vm10 = vmand %vm372_vm6, %vm373_vm7 }
  0x35   : > { %513 = vmatpush.msra.mxu0 %v1007_v3  ;;  %874 = vmatpush.msra.mxu1 %v1007_v3  ;;  %v214_v20 = vadd.s32 128, %v1160_v17  ;;  %v222_v23 = vadd.s32 192, %v1160_v17  ;;  %v206_v24 = vadd.s32 64, %v1160_v17  ;;  %v215_v25 = vadd.s32 136, %v1160_v17 }
  0x36   : > { %878 = vmatpush.msra.mxu2 %v1007_v3  ;;  %879 = vmatpush.msra.mxu3 %v1007_v3  ;;  %v920_v8 = vcvt.f32.s32 %v235_v6  ;;  %v922_v9 = vcvt.f32.s32 %v376_v7  ;;  %v223_v33 = vadd.s32 200, %v1160_v17  ;;  %v199_v36 = vadd.s32 8, %v1160_v17 }
  0x37   : > { %514 = vmatpush.msra.mxu0 %v1007_v3  ;;  %877 = vmatpush.msra.mxu1 %v1007_v3  ;;  %v207_v39 = vadd.s32 72, %v1160_v17  ;;  %v216_v42 = vadd.s32 144, %v1160_v17  ;;  %v224_v43 = vadd.s32 208, %v1160_v17  ;;  %v200_v52 = vadd.s32 16, %v1160_v17 }
  0x38   : > { %881 = vmatpush.msra.mxu2 %v1007_v3  ;;  %882 = vmatpush.msra.mxu3 %v1007_v3  ;;  %vm237_vm1 = vcmp.gt.s32.totalorder %v920_v8, 0  ;;  %vm378_vm4 = vcmp.gt.s32.totalorder %v922_v9, 0  ;;  %v208_v53 = vadd.s32 80, %v1160_v17  ;;  %v217_v62 = vadd.s32 152, %v1160_v17 }
  0x39   : > { %515 = vmatpush.msra.mxu0 %v1007_v3  ;;  %880 = vmatpush.msra.mxu1 %v1007_v3  ;;  %v238_v11 = vsel %vm237_vm1, %v920_v8, 0  ;;  %v379_v12 = vsel %vm378_vm4, %v922_v9, 0  ;;  %v225_v63 = vadd.s32 216, %v1160_v17  ;;  %v201_v0 = vadd.s32 24, %v1160_v17 }
  0x3a   : > { %884 = vmatpush.msra.mxu2 %v1007_v3  ;;  %885 = vmatpush.msra.mxu3 %v1007_v3  ;;  %vm239_vm5 = vcmp.lt.s32.totalorder %v238_v11, 255  ;;  %vm380_vm8 = vcmp.lt.s32.totalorder %v379_v12, 255  ;;  %v209_v5 = vadd.s32 88, %v1160_v17 }
  0x3b   : > { %516 = vmatpush.msra.mxu0 %v1007_v3  ;;  %883 = vmatpush.msra.mxu1 %v1007_v3  ;;  %v240_v14 = vsel %vm239_vm5, %v238_v11, 255  ;;  %v381_v16 = vsel %vm380_vm8, %v379_v12, 255 }
  0x3c   : > { %887 = vmatpush.msra.mxu2 %v1007_v3  ;;  %888 = vmatpush.msra.mxu3 %v1007_v3  ;;  %v241_v18 = vsel %vm1148_vm9, %v240_v14, 4294967295  ;;  %v382_v19 = vsel %vm1154_vm10, %v381_v16, 4294967295 }
  0x3d   : > { %517 = vmatpush.msra.mxu0 %v1007_v3  ;;  %886 = vmatpush.msra.mxu1 %v1007_v3  ;;  %v1175_v21 = vperm.slane %v241_v18, 0  ;;  %v1179_v22 = vperm.slane %v382_v19, 0  ;;  %v218_v19 = vadd.s32 160, %v1160_v17 }
  0x3e   : > { %890 = vmatpush.msra.mxu2 %v1007_v3  ;;  %891 = vmatpush.msra.mxu3 %v1007_v3 }
  0x3f   : > { %518 = vmatpush.msra.mxu0 %v1007_v3  ;;  %889 = vmatpush.msra.mxu1 %v1007_v3  ;;  %vm259_vm11 = vcmp.eq.s32.totalorder %v1175_v21, %v214_v20  ;;  %vm400_vm12 = vcmp.eq.s32.totalorder %v1179_v22, %v214_v20  ;;  %vm267_vm13 = vcmp.eq.s32.totalorder %v1175_v21, %v222_v23  ;;  %v226_v20 = vadd.s32 224, %v1160_v17 }
  0x40   : > { %893 = vmatpush.msra.mxu2 %v1007_v3  ;;  %894 = vmatpush.msra.mxu3 %v1007_v3  ;;  %vm408_vm14 = vcmp.eq.s32.totalorder %v1179_v22, %v222_v23  ;;  %vm243_vm15 = vcmp.eq.s32.totalorder %v1175_v21, %v1160_v17  ;;  %vm384_vm0 = vcmp.eq.s32.totalorder %v1179_v22, %v1160_v17  ;;  %v819_v27 = vsel %vm259_vm11, 1.0, %v1008_v26 }
  0x41   : > { %519 = vmatpush.msra.mxu0 %v1007_v3  ;;  %892 = vmatpush.msra.mxu1 %v1007_v3  ;;  %vm251_vm1 = vcmp.eq.s32.totalorder %v1175_v21, %v206_v24  ;;  %vm392_vm2 = vcmp.eq.s32.totalorder %v1179_v22, %v206_v24  ;;  %v851_v28 = vsel %vm400_vm12, 1.0, %v1008_v26  ;;  %v827_v29 = vsel %vm267_vm13, 1.0, %v1008_v26 }
  0x42   : > { %896 = vmatpush.msra.mxu2 %v1007_v3  ;;  %897 = vmatpush.msra.mxu3 %v1007_v3  ;;  %v859_v30 = vsel %vm408_vm14, 1.0, %v1008_v26  ;;  %v803_v31 = vsel %vm243_vm15, 1.0, %v1008_v26  ;;  %v835_v32 = vsel %vm384_vm0, 1.0, %v1008_v26  ;;  %v811_v34 = vsel %vm251_vm1, 1.0, %v1008_v26 }
  0x43   : > { %520 = vmatpush.msra.mxu0 %v1007_v3  ;;  %895 = vmatpush.msra.mxu1 %v1007_v3  ;;  %v843_v35 = vsel %vm392_vm2, 1.0, %v1008_v26  ;;  %v496_v37 = vadd.f32 %v851_v28, %v819_v27  ;;  %v504_v38 = vadd.f32 %v859_v30, %v827_v29  ;;  %v480_v40 = vadd.f32 %v835_v32, %v803_v31 }
  0x44   : > { %899 = vmatpush.msra.mxu2 %v1007_v3  ;;  %900 = vmatpush.msra.mxu3 %v1007_v3  ;;  %vm260_vm3 = vcmp.eq.s32.totalorder %v1175_v21, %v215_v25  ;;  %vm401_vm4 = vcmp.eq.s32.totalorder %v1179_v22, %v215_v25  ;;  %v488_v41 = vadd.f32 %v843_v35, %v811_v34  ;;  %v202_v23 = vadd.s32 32, %v1160_v17 }
  0x45   : > { %521 = vmatpush.msra.mxu0 %v1007_v3  ;;  %898 = vmatpush.msra.mxu1 %v1007_v3  ;;  %vm268_vm5 = vcmp.eq.s32.totalorder %v1175_v21, %v223_v33  ;;  %vm409_vm6 = vcmp.eq.s32.totalorder %v1179_v22, %v223_v33  ;;  %vm244_vm7 = vcmp.eq.s32.totalorder %v1175_v21, %v199_v36  ;;  %v820_v44 = vsel %vm260_vm3, 1.0, %v1008_v26 }
  0x46   : > { %902 = vmatpush.msra.mxu2 %v1007_v3  ;;  %903 = vmatpush.msra.mxu3 %v1007_v3  ;;  %vm385_vm8 = vcmp.eq.s32.totalorder %v1179_v22, %v199_v36  ;;  %vm252_vm9 = vcmp.eq.s32.totalorder %v1175_v21, %v207_v39  ;;  %vm393_vm10 = vcmp.eq.s32.totalorder %v1179_v22, %v207_v39  ;;  %v852_v45 = vsel %vm401_vm4, 1.0, %v1008_v26 }
  0x47   : > { %522 = vmatpush.msra.mxu0 %v1007_v3  ;;  %901 = vmatpush.msra.mxu1 %v1007_v3  ;;  %v828_v46 = vsel %vm268_vm5, 1.0, %v1008_v26  ;;  %v860_v47 = vsel %vm409_vm6, 1.0, %v1008_v26  ;;  %v804_v48 = vsel %vm244_vm7, 1.0, %v1008_v26  ;;  %v836_v49 = vsel %vm385_vm8, 1.0, %v1008_v26 }
  0x48   : > { %905 = vmatpush.msra.mxu2 %v1007_v3  ;;  %906 = vmatpush.msra.mxu3 %v1007_v3  ;;  %v812_v50 = vsel %vm252_vm9, 1.0, %v1008_v26  ;;  %v844_v51 = vsel %vm393_vm10, 1.0, %v1008_v26  ;;  %v497_v54 = vadd.f32 %v852_v45, %v820_v44  ;;  %v505_v55 = vadd.f32 %v860_v47, %v828_v46 }
  0x49   : > { %523 = vmatpush.msra.mxu0 %v1007_v3  ;;  %904 = vmatpush.msra.mxu1 %v1007_v3  ;;  %vm261_vm11 = vcmp.eq.s32.totalorder %v1175_v21, %v216_v42  ;;  %vm402_vm12 = vcmp.eq.s32.totalorder %v1179_v22, %v216_v42  ;;  %vm269_vm13 = vcmp.eq.s32.totalorder %v1175_v21, %v224_v43  ;;  %v210_v27 = vadd.s32 96, %v1160_v17 }
  0x4a   : > { %908 = vmatpush.msra.mxu2 %v1007_v3  ;;  %909 = vmatpush.msra.mxu3 %v1007_v3  ;;  %v481_v56 = vadd.f32 %v836_v49, %v804_v48  ;;  %v489_v57 = vadd.f32 %v844_v51, %v812_v50  ;;  %vm410_vm14 = vcmp.eq.s32.totalorder %v1179_v22, %v224_v43  ;;  %v821_v58 = vsel %vm261_vm11, 1.0, %v1008_v26 }
  0x4b   : > { %524 = vmatpush.msra.mxu0 %v1007_v3  ;;  %907 = vmatpush.msra.mxu1 %v1007_v3  ;;  %vm245_vm15 = vcmp.eq.s32.totalorder %v1175_v21, %v200_v52  ;;  %vm386_vm0 = vcmp.eq.s32.totalorder %v1179_v22, %v200_v52  ;;  %vm253_vm1 = vcmp.eq.s32.totalorder %v1175_v21, %v208_v53  ;;  %v853_v59 = vsel %vm402_vm12, 1.0, %v1008_v26 }
  0x4c   : > { %911 = vmatpush.msra.mxu2 %v1007_v3  ;;  %912 = vmatpush.msra.mxu3 %v1007_v3  ;;  %vm394_vm2 = vcmp.eq.s32.totalorder %v1179_v22, %v208_v53  ;;  %v829_v60 = vsel %vm269_vm13, 1.0, %v1008_v26  ;;  %v861_v61 = vsel %vm410_vm14, 1.0, %v1008_v26  ;;  %v805_v1 = vsel %vm245_vm15, 1.0, %v1008_v26 }
  0x4d   : > { %525 = vmatpush.msra.mxu0 %v1007_v3  ;;  %910 = vmatpush.msra.mxu1 %v1007_v3  ;;  %v837_v2 = vsel %vm386_vm0, 1.0, %v1008_v26  ;;  %v845_v4 = vsel %vm394_vm2, 1.0, %v1008_v26  ;;  %v498_v6 = vadd.f32 %v853_v59, %v821_v58  ;;  %v506_v7 = vadd.f32 %v861_v61, %v829_v60 }
  0x4e   : > { %914 = vmatpush.msra.mxu2 %v1007_v3  ;;  %915 = vmatpush.msra.mxu3 %v1007_v3  ;;  %v482_v8 = vadd.f32 %v837_v2, %v805_v1  ;;  %vm262_vm3 = vcmp.eq.s32.totalorder %v1175_v21, %v217_v62  ;;  %vm403_vm4 = vcmp.eq.s32.totalorder %v1179_v22, %v217_v62  ;;  %v219_v30 = vadd.s32 168, %v1160_v17 }
  0x4f   : > { %526 = vmatpush.msra.mxu0 %v1007_v3  ;;  %913 = vmatpush.msra.mxu1 %v1007_v3  ;;  %vm270_vm5 = vcmp.eq.s32.totalorder %v1175_v21, %v225_v63  ;;  %vm411_vm6 = vcmp.eq.s32.totalorder %v1179_v22, %v225_v63  ;;  %vm246_vm7 = vcmp.eq.s32.totalorder %v1175_v21, %v201_v0  ;;  %v822_v10 = vsel %vm262_vm3, 1.0, %v1008_v26 }
  0x50   : > { %917 = vmatpush.msra.mxu2 %v1007_v3  ;;  %918 = vmatpush.msra.mxu3 %v1007_v3  ;;  %vm387_vm8 = vcmp.eq.s32.totalorder %v1179_v22, %v201_v0  ;;  %vm254_vm9 = vcmp.eq.s32.totalorder %v1175_v21, %v209_v5  ;;  %vm395_vm10 = vcmp.eq.s32.totalorder %v1179_v22, %v209_v5  ;;  %v854_v11 = vsel %vm403_vm4, 1.0, %v1008_v26 }
  0x51   : > { %576 = vmatmul.f32.vlgmr.msra.gmra.mxu2 %v496_v37  ;;  %600 = vmatmul.f32.vlgmr.msra.gmra.mxu3 %v504_v38  ;;  %v830_v12 = vsel %vm270_vm5, 1.0, %v1008_v26  ;;  %v862_v13 = vsel %vm411_vm6, 1.0, %v1008_v26  ;;  %v806_v14 = vsel %vm246_vm7, 1.0, %v1008_v26  ;;  %v838_v15 = vsel %vm387_vm8, 1.0, %v1008_v26 }
  0x52   : > { %527 = vmatpush.msra.mxu0 %v1007_v3  ;;  %916 = vmatpush.msra.mxu1 %v1007_v3  ;;  %v813_v3 = vsel %vm253_vm1, 1.0, %v1008_v26  ;;  %v814_v16 = vsel %vm254_vm9, 1.0, %v1008_v26  ;;  %v846_v18 = vsel %vm395_vm10, 1.0, %v1008_v26  ;;  %v499_v24 = vadd.f32 %v854_v11, %v822_v10 }
  0x53   : > { %528 = vmatmul.f32.vlgmr.msra.gmra.mxu0 %v480_v40  ;;  %552 = vmatmul.f32.vlgmr.msra.gmra.mxu1 %v488_v41  ;;  %v490_v9 = vadd.f32 %v845_v4, %v813_v3  ;;  %v507_v25 = vadd.f32 %v862_v13, %v830_v12  ;;  %v483_v28 = vadd.f32 %v838_v15, %v806_v14  ;;  %v227_v37 = vadd.s32 232, %v1160_v17 }
  0x54   : > { %v491_v29 = vadd.f32 %v846_v18, %v814_v16  ;;  %vm263_vm11 = vcmp.eq.s32.totalorder %v1175_v21, %v218_v19  ;;  %vm404_vm12 = vcmp.eq.s32.totalorder %v1179_v22, %v218_v19  ;;  %vm271_vm13 = vcmp.eq.s32.totalorder %v1175_v21, %v226_v20 }
  0x55   : > { %vm412_vm14 = vcmp.eq.s32.totalorder %v1179_v22, %v226_v20  ;;  %vm247_vm15 = vcmp.eq.s32.totalorder %v1175_v21, %v202_v23  ;;  %vm388_vm0 = vcmp.eq.s32.totalorder %v1179_v22, %v202_v23  ;;  %vm255_vm1 = vcmp.eq.s32.totalorder %v1175_v21, %v210_v27 }
  0x56   : > { %vm396_vm2 = vcmp.eq.s32.totalorder %v1179_v22, %v210_v27  ;;  %v823_v31 = vsel %vm263_vm11, 1.0, %v1008_v26  ;;  %v855_v32 = vsel %vm404_vm12, 1.0, %v1008_v26  ;;  %v831_v33 = vsel %vm271_vm13, 1.0, %v1008_v26  ;;  %v625_v27 = vld [vmem:[%s1052_s19] sm:$0xff] }
  0x57   : > { %v863_v34 = vsel %vm412_vm14, 1.0, %v1008_v26  ;;  %v807_v35 = vsel %vm247_vm15, 1.0, %v1008_v26  ;;  %v839_v36 = vsel %vm388_vm0, 1.0, %v1008_v26  ;;  %v815_v38 = vsel %vm255_vm1, 1.0, %v1008_v26 }
  0x58   : > { %v847_v39 = vsel %vm396_vm2, 1.0, %v1008_v26  ;;  %v203_v40 = vadd.s32 40, %v1160_v17  ;;  %v500_v41 = vadd.f32 %v855_v32, %v823_v31  ;;  %v508_v42 = vadd.f32 %v863_v34, %v831_v33  ;;  %v641_v32 = vld [vmem:[%s1052_s19 + $0x80] sm:$0xff] }
  0x59   : > { %579 = vmatmul.f32.gmra.mxu2 %v497_v54  ;;  %603 = vmatmul.f32.gmra.mxu3 %v505_v55  ;;  %v211_v43 = vadd.s32 104, %v1160_v17  ;;  %v484_v44 = vadd.f32 %v839_v36, %v807_v35  ;;  %vm264_vm3 = vcmp.eq.s32.totalorder %v1175_v21, %v219_v30  ;;  %v492_v45 = vadd.f32 %v847_v39, %v815_v38  ;;  %v649_v33 = vld [vmem:[%s1052_s19 + $0xc0] sm:$0xff]  ;;  %v626_v38 = vld [vmem:[%s1052_s19 + $0x8] sm:$0xff] }
  0x5a   : > { %vm405_vm4 = vcmp.eq.s32.totalorder %v1179_v22, %v219_v30  ;;  %vm272_vm5 = vcmp.eq.s32.totalorder %v1175_v21, %v227_v37  ;;  %vm413_vm6 = vcmp.eq.s32.totalorder %v1179_v22, %v227_v37  ;;  %vm248_vm7 = vcmp.eq.s32.totalorder %v1175_v21, %v203_v40  ;;  %v634_v39 = vld [vmem:[%s1052_s19 + $0x48] sm:$0xff] }
  0x5b   : > { %531 = vmatmul.f32.gmra.mxu0 %v481_v56  ;;  %555 = vmatmul.f32.gmra.mxu1 %v489_v57  ;;  %vm389_vm8 = vcmp.eq.s32.totalorder %v1179_v22, %v203_v40  ;;  %v824_v46 = vsel %vm264_vm3, 1.0, %v1008_v26  ;;  %vm256_vm9 = vcmp.eq.s32.totalorder %v1175_v21, %v211_v43  ;;  %vm397_vm10 = vcmp.eq.s32.totalorder %v1179_v22, %v211_v43 }
  0x5c   : > { %v856_v47 = vsel %vm405_vm4, 1.0, %v1008_v26  ;;  %v832_v48 = vsel %vm272_vm5, 1.0, %v1008_v26  ;;  %v864_v49 = vsel %vm413_vm6, 1.0, %v1008_v26  ;;  %v220_v50 = vadd.s32 176, %v1160_v17 }
  0x5d   : > { %v808_v51 = vsel %vm248_vm7, 1.0, %v1008_v26  ;;  %v840_v52 = vsel %vm389_vm8, 1.0, %v1008_v26  ;;  %v228_v53 = vadd.s32 240, %v1160_v17  ;;  %v816_v54 = vsel %vm256_vm9, 1.0, %v1008_v26 }
  0x5e   : > { %v848_v55 = vsel %vm397_vm10, 1.0, %v1008_v26  ;;  %v204_v56 = vadd.s32 48, %v1160_v17  ;;  %v212_v57 = vadd.s32 112, %v1160_v17  ;;  %v501_v58 = vadd.f32 %v856_v47, %v824_v46 }
  0x5f   : > { %v509_v59 = vadd.f32 %v864_v49, %v832_v48  ;;  %vm265_vm11 = vcmp.eq.s32.totalorder %v1175_v21, %v220_v50  ;;  %vm406_vm12 = vcmp.eq.s32.totalorder %v1179_v22, %v220_v50  ;;  %v485_v60 = vadd.f32 %v840_v52, %v808_v51  ;;  %v627_v50 = vld [vmem:[%s1052_s19 + $0x10] sm:$0xff] }
  0x60   : > { %v493_v61 = vadd.f32 %v848_v55, %v816_v54  ;;  %vm273_vm13 = vcmp.eq.s32.totalorder %v1175_v21, %v228_v53  ;;  %vm414_vm14 = vcmp.eq.s32.totalorder %v1179_v22, %v228_v53  ;;  %vm249_vm15 = vcmp.eq.s32.totalorder %v1175_v21, %v204_v56  ;;  %v635_v51 = vld [vmem:[%s1052_s19 + $0x50] sm:$0xff] }
  0x61   : > { %582 = vmatmul.f32.gmra.mxu2 %v498_v6  ;;  %606 = vmatmul.f32.gmra.mxu3 %v506_v7  ;;  %vm390_vm0 = vcmp.eq.s32.totalorder %v1179_v22, %v204_v56  ;;  %vm257_vm1 = vcmp.eq.s32.totalorder %v1175_v21, %v212_v57  ;;  %vm398_vm2 = vcmp.eq.s32.totalorder %v1179_v22, %v212_v57  ;;  %v825_v62 = vsel %vm265_vm11, 1.0, %v1008_v26  ;;  %v643_v56 = vld [vmem:[%s1052_s19 + $0x90] sm:$0xff] }
  0x62   : > { %v857_v63 = vsel %vm406_vm12, 1.0, %v1008_v26  ;;  %v833_v0 = vsel %vm273_vm13, 1.0, %v1008_v26  ;;  %v865_v1 = vsel %vm414_vm14, 1.0, %v1008_v26  ;;  %v221_v2 = vadd.s32 184, %v1160_v17  ;;  %v651_v57 = vld [vmem:[%s1052_s19 + $0xd0] sm:$0xff] }
  0x63   : > { %534 = vmatmul.f32.gmra.mxu0 %v482_v8  ;;  %558 = vmatmul.f32.gmra.mxu1 %v490_v9  ;;  %v229_v3 = vadd.s32 248, %v1160_v17  ;;  %v809_v4 = vsel %vm249_vm15, 1.0, %v1008_v26  ;;  %v841_v5 = vsel %vm390_vm0, 1.0, %v1008_v26  ;;  %v817_v6 = vsel %vm257_vm1, 1.0, %v1008_v26 }
  0x64   : > { %v849_v7 = vsel %vm398_vm2, 1.0, %v1008_v26  ;;  %v205_v8 = vadd.s32 56, %v1160_v17  ;;  %v502_v9 = vadd.f32 %v857_v63, %v825_v62  ;;  %v510_v10 = vadd.f32 %v865_v1, %v833_v0  ;;  %v628_v62 = vld [vmem:[%s1052_s19 + $0x18] sm:$0xff] }
  0x65   : > { %v213_v11 = vadd.s32 120, %v1160_v17  ;;  %v486_v12 = vadd.f32 %v841_v5, %v809_v4  ;;  %v494_v13 = vadd.f32 %v849_v7, %v817_v6  ;;  %vm266_vm3 = vcmp.eq.s32.totalorder %v1175_v21, %v221_v2  ;;  %v636_v63 = vld [vmem:[%s1052_s19 + $0x58] sm:$0xff] }
  0x66   : > { %vm407_vm4 = vcmp.eq.s32.totalorder %v1179_v22, %v221_v2  ;;  %vm274_vm5 = vcmp.eq.s32.totalorder %v1175_v21, %v229_v3  ;;  %vm415_vm6 = vcmp.eq.s32.totalorder %v1179_v22, %v229_v3  ;;  %vm250_vm7 = vcmp.eq.s32.totalorder %v1175_v21, %v205_v8  ;;  %v644_v4 = vld [vmem:[%s1052_s19 + $0x98] sm:$0xff] }
  0x67   : > { %vm391_vm8 = vcmp.eq.s32.totalorder %v1179_v22, %v205_v8  ;;  %vm258_vm9 = vcmp.eq.s32.totalorder %v1175_v21, %v213_v11  ;;  %vm399_vm10 = vcmp.eq.s32.totalorder %v1179_v22, %v213_v11  ;;  %v826_v17 = vsel %vm266_vm3, 1.0, %v1008_v26  ;;  %v652_v5 = vld [vmem:[%s1052_s19 + $0xd8] sm:$0xff]  ;;  %v637_v11 = vld [vmem:[%s1052_s19 + $0x60] sm:$0xff] }
  0x68   : > { %v858_v14 = vsel %vm407_vm4, 1.0, %v1008_v26  ;;  %v834_v15 = vsel %vm274_vm5, 1.0, %v1008_v26  ;;  %v866_v16 = vsel %vm415_vm6, 1.0, %v1008_v26  ;;  %v810_v18 = vsel %vm250_vm7, 1.0, %v1008_v26 }
  0x69   : > { %585 = vmatmul.f32.gmra.mxu2 %v499_v24  ;;  %609 = vmatmul.f32.gmra.mxu3 %v507_v25  ;;  %v842_v19 = vsel %vm391_vm8, 1.0, %v1008_v26  ;;  %v818_v21 = vsel %vm258_vm9, 1.0, %v1008_v26  ;;  %v850_v22 = vsel %vm399_vm10, 1.0, %v1008_v26  ;;  %v503_v20 = vadd.f32 %v858_v14, %v826_v17 }
  0x6a   : > { %v511_v23 = vadd.f32 %v866_v16, %v834_v15  ;;  %v487_v24 = vadd.f32 %v842_v19, %v810_v18  ;;  %v495_v25 = vadd.f32 %v850_v22, %v818_v21  ;;  %vm689_vm11 = vcmask 7168   ;;  %v645_v15 = vld [vmem:[%s1052_s19 + $0xa0] sm:$0xff] }
  0x6b   : > { %537 = vmatmul.f32.gmra.mxu0 %v483_v28  ;;  %561 = vmatmul.f32.gmra.mxu1 %v491_v29  ;;  %v633_v28 = vld [vmem:[%s1052_s19 + $0x40] sm:$0xff] }
  0x6c   : > { %v653_v16 = vld [vmem:[%s1052_s19 + $0xe0] sm:$0xff] }
  0x71   : > { %588 = vmatmul.f32.gmra.mxu2 %v500_v41  ;;  %612 = vmatmul.f32.gmra.mxu3 %v508_v42 }
  0x73   : > { %540 = vmatmul.f32.gmra.mxu0 %v484_v44  ;;  %564 = vmatmul.f32.gmra.mxu1 %v492_v45  ;;  %v642_v44 = vld [vmem:[%s1052_s19 + $0x88] sm:$0xff] }
  0x74   : > { %v650_v45 = vld [vmem:[%s1052_s19 + $0xc8] sm:$0xff] }
  0x79   : > { %591 = vmatmul.f32.gmra.mxu2 %v501_v58  ;;  %615 = vmatmul.f32.gmra.mxu3 %v509_v59 }
  0x7b   : > { %543 = vmatmul.f32.gmra.mxu0 %v485_v60  ;;  %567 = vmatmul.f32.gmra.mxu1 %v493_v61 }
  0x81   : > { %594 = vmatmul.f32.gmra.mxu2 %v502_v9  ;;  %618 = vmatmul.f32.gmra.mxu3 %v510_v10  ;;  %v629_v10 = vld [vmem:[%s1052_s19 + $0x20] sm:$0xff] }
  0x83   : > { %546 = vmatmul.f32.gmra.mxu0 %v486_v12  ;;  %570 = vmatmul.f32.gmra.mxu1 %v494_v13 }
  0x89   : > { %597 = vmatmul.f32.gmra.mxu2 %v503_v20  ;;  %621 = vmatmul.f32.gmra.mxu3 %v511_v23  ;;  %v630_v20 = vld [vmem:[%s1052_s19 + $0x28] sm:$0xff] }
  0x8a   : > { %v638_v23 = vld [vmem:[%s1052_s19 + $0x68] sm:$0xff] }
  0x8b   : > { %549 = vmatmul.f32.gmra.mxu0 %v487_v24  ;;  %573 = vmatmul.f32.gmra.mxu1 %v495_v25 }
  0xd0   : > { %v529_v29 = vpop.f32.mrf.mxu0  ;;  %v553_v26 = vpop.f32.mrf.mxu1 }
  0xd1   : > { %v657_v30 = vadd.f32 %v625_v27, %v529_v29  ;;  %v665_v31 = vadd.f32 %v633_v28, %v553_v26  ;;  %v646_v29 = vld [vmem:[%s1052_s19 + $0xa8] sm:$0xff] }
  0xd2   : > { %v654_v26 = vld [vmem:[%s1052_s19 + $0xe8] sm:$0xff] }
  0xd3   : > { %690 = vst.msk [vmem:[%s1052_s19] sm:$0xff] %vm689_vm11, %v657_v30 }
  0xd4   : > { %698 = vst.msk [vmem:[%s1052_s19 + $0x40] sm:$0xff] %vm689_vm11, %v665_v31  ;;  %v577_v34 = vpop.f32.mrf.mxu2  ;;  %v601_v35 = vpop.f32.mrf.mxu3 }
  0xd5   : > { %v673_v36 = vadd.f32 %v641_v32, %v577_v34  ;;  %v681_v37 = vadd.f32 %v649_v33, %v601_v35  ;;  %v631_v34 = vld [vmem:[%s1052_s19 + $0x30] sm:$0xff] }
  0xd6   : > { %v639_v35 = vld [vmem:[%s1052_s19 + $0x70] sm:$0xff] }
  0xd7   : > { %706 = vst.msk [vmem:[%s1052_s19 + $0x80] sm:$0xff] %vm689_vm11, %v673_v36 }
  0xd8   : > { %714 = vst.msk [vmem:[%s1052_s19 + $0xc0] sm:$0xff] %vm689_vm11, %v681_v37  ;;  %v532_v40 = vpop.f32.mrf.mxu0  ;;  %v556_v41 = vpop.f32.mrf.mxu1 }
  0xd9   : > { %v658_v42 = vadd.f32 %v626_v38, %v532_v40  ;;  %v666_v43 = vadd.f32 %v634_v39, %v556_v41  ;;  %v647_v40 = vld [vmem:[%s1052_s19 + $0xb0] sm:$0xff] }
  0xda   : > { %v655_v41 = vld [vmem:[%s1052_s19 + $0xf0] sm:$0xff] }
  0xdb   : > { %691 = vst.msk [vmem:[%s1052_s19 + $0x8] sm:$0xff] %vm689_vm11, %v658_v42 }
  0xdc   : > { %699 = vst.msk [vmem:[%s1052_s19 + $0x48] sm:$0xff] %vm689_vm11, %v666_v43  ;;  %v580_v46 = vpop.f32.mrf.mxu2  ;;  %v604_v47 = vpop.f32.mrf.mxu3 }
  0xdd   : > { %v674_v48 = vadd.f32 %v642_v44, %v580_v46  ;;  %v682_v49 = vadd.f32 %v650_v45, %v604_v47  ;;  %v632_v46 = vld [vmem:[%s1052_s19 + $0x38] sm:$0xff] }
  0xde   : > { %v640_v47 = vld [vmem:[%s1052_s19 + $0x78] sm:$0xff] }
  0xdf   : > { %707 = vst.msk [vmem:[%s1052_s19 + $0x88] sm:$0xff] %vm689_vm11, %v674_v48 }
  0xe0   : > { %715 = vst.msk [vmem:[%s1052_s19 + $0xc8] sm:$0xff] %vm689_vm11, %v682_v49  ;;  %v535_v52 = vpop.f32.mrf.mxu0  ;;  %v559_v53 = vpop.f32.mrf.mxu1 }
  0xe1   : > { %v659_v54 = vadd.f32 %v627_v50, %v535_v52  ;;  %v667_v55 = vadd.f32 %v635_v51, %v559_v53  ;;  %v648_v52 = vld [vmem:[%s1052_s19 + $0xb8] sm:$0xff] }
  0xe2   : > { %v656_v53 = vld [vmem:[%s1052_s19 + $0xf8] sm:$0xff] }
  0xe3   : > { %692 = vst.msk [vmem:[%s1052_s19 + $0x10] sm:$0xff] %vm689_vm11, %v659_v54 }
  0xe4   : > { %700 = vst.msk [vmem:[%s1052_s19 + $0x50] sm:$0xff] %vm689_vm11, %v667_v55  ;;  %v583_v58 = vpop.f32.mrf.mxu2  ;;  %v607_v59 = vpop.f32.mrf.mxu3 }
  0xe5   : > { %v675_v60 = vadd.f32 %v643_v56, %v583_v58  ;;  %v683_v61 = vadd.f32 %v651_v57, %v607_v59 }
  0xe7   : > { %708 = vst.msk [vmem:[%s1052_s19 + $0x90] sm:$0xff] %vm689_vm11, %v675_v60 }
  0xe8   : > { %716 = vst.msk [vmem:[%s1052_s19 + $0xd0] sm:$0xff] %vm689_vm11, %v683_v61  ;;  %v538_v0 = vpop.f32.mrf.mxu0  ;;  %v562_v1 = vpop.f32.mrf.mxu1 }
  0xe9   : > { %v660_v2 = vadd.f32 %v628_v62, %v538_v0  ;;  %v668_v3 = vadd.f32 %v636_v63, %v562_v1 }
  0xeb   : > { %693 = vst.msk [vmem:[%s1052_s19 + $0x18] sm:$0xff] %vm689_vm11, %v660_v2 }
  0xec   : > { %701 = vst.msk [vmem:[%s1052_s19 + $0x58] sm:$0xff] %vm689_vm11, %v668_v3  ;;  %v586_v6 = vpop.f32.mrf.mxu2  ;;  %v610_v7 = vpop.f32.mrf.mxu3 }
  0xed   : > { %v676_v8 = vadd.f32 %v644_v4, %v586_v6  ;;  %v684_v9 = vadd.f32 %v652_v5, %v610_v7 }
  0xef   : > { %709 = vst.msk [vmem:[%s1052_s19 + $0x98] sm:$0xff] %vm689_vm11, %v676_v8 }
  0xf0   : > { %717 = vst.msk [vmem:[%s1052_s19 + $0xd8] sm:$0xff] %vm689_vm11, %v684_v9  ;;  %v541_v12 = vpop.f32.mrf.mxu0  ;;  %v565_v13 = vpop.f32.mrf.mxu1 }
  0xf1   : > { %v661_v17 = vadd.f32 %v629_v10, %v541_v12  ;;  %v669_v14 = vadd.f32 %v637_v11, %v565_v13 }
  0xf3   : > { %694 = vst.msk [vmem:[%s1052_s19 + $0x20] sm:$0xff] %vm689_vm11, %v661_v17 }
  0xf4   : > { %702 = vst.msk [vmem:[%s1052_s19 + $0x60] sm:$0xff] %vm689_vm11, %v669_v14  ;;  %v589_v18 = vpop.f32.mrf.mxu2  ;;  %v613_v19 = vpop.f32.mrf.mxu3 }
  0xf5   : > { %v677_v21 = vadd.f32 %v645_v15, %v589_v18  ;;  %v685_v22 = vadd.f32 %v653_v16, %v613_v19 }
  0xf7   : > { %710 = vst.msk [vmem:[%s1052_s19 + $0xa0] sm:$0xff] %vm689_vm11, %v677_v21 }
  0xf8   : > { %718 = vst.msk [vmem:[%s1052_s19 + $0xe0] sm:$0xff] %vm689_vm11, %v685_v22  ;;  %v544_v24 = vpop.f32.mrf.mxu0  ;;  %v568_v25 = vpop.f32.mrf.mxu1 }
  0xf9   : > { %v662_v27 = vadd.f32 %v630_v20, %v544_v24  ;;  %v670_v28 = vadd.f32 %v638_v23, %v568_v25 }
  0xfb   : > { %695 = vst.msk [vmem:[%s1052_s19 + $0x28] sm:$0xff] %vm689_vm11, %v662_v27 }
  0xfc   : > { %703 = vst.msk [vmem:[%s1052_s19 + $0x68] sm:$0xff] %vm689_vm11, %v670_v28  ;;  %v592_v30 = vpop.f32.mrf.mxu2  ;;  %v616_v31 = vpop.f32.mrf.mxu3 }
  0xfd   : > { %v678_v32 = vadd.f32 %v646_v29, %v592_v30  ;;  %v686_v33 = vadd.f32 %v654_v26, %v616_v31 }
  0xff   : > { %711 = vst.msk [vmem:[%s1052_s19 + $0xa8] sm:$0xff] %vm689_vm11, %v678_v32 }
 0x100   : > { %719 = vst.msk [vmem:[%s1052_s19 + $0xe8] sm:$0xff] %vm689_vm11, %v686_v33  ;;  %v547_v36 = vpop.f32.mrf.mxu0  ;;  %v571_v37 = vpop.f32.mrf.mxu1 }
 0x101   : > { %v663_v38 = vadd.f32 %v631_v34, %v547_v36  ;;  %v671_v39 = vadd.f32 %v639_v35, %v571_v37 }
 0x103   : > { %696 = vst.msk [vmem:[%s1052_s19 + $0x30] sm:$0xff] %vm689_vm11, %v663_v38 }
 0x104   : > { %704 = vst.msk [vmem:[%s1052_s19 + $0x70] sm:$0xff] %vm689_vm11, %v671_v39  ;;  %v595_v42 = vpop.f32.mrf.mxu2  ;;  %v619_v43 = vpop.f32.mrf.mxu3 }
 0x105   : > { %v679_v44 = vadd.f32 %v647_v40, %v595_v42  ;;  %v687_v45 = vadd.f32 %v655_v41, %v619_v43 }
 0x107   : > { %712 = vst.msk [vmem:[%s1052_s19 + $0xb0] sm:$0xff] %vm689_vm11, %v679_v44 }
 0x108   : > { %720 = vst.msk [vmem:[%s1052_s19 + $0xf0] sm:$0xff] %vm689_vm11, %v687_v45  ;;  %v550_v48 = vpop.f32.mrf.mxu0  ;;  %v574_v49 = vpop.f32.mrf.mxu1 }
 0x109   : > { %v664_v50 = vadd.f32 %v632_v46, %v550_v48  ;;  %v672_v51 = vadd.f32 %v640_v47, %v574_v49 }
 0x10b   : > { %697 = vst.msk [vmem:[%s1052_s19 + $0x38] sm:$0xff] %vm689_vm11, %v664_v50 }
 0x10c   : > { %705 = vst.msk [vmem:[%s1052_s19 + $0x78] sm:$0xff] %vm689_vm11, %v672_v51  ;;  %v598_v54 = vpop.f32.mrf.mxu2  ;;  %v622_v55 = vpop.f32.mrf.mxu3 }
 0x10d   : > { %v680_v56 = vadd.f32 %v648_v52, %v598_v54  ;;  %v688_v57 = vadd.f32 %v656_v53, %v622_v55 }
 0x10f   : > { %713 = vst.msk [vmem:[%s1052_s19 + $0xb8] sm:$0xff] %vm689_vm11, %v680_v56 }
 0x110   : > { %721 = vst.msk [vmem:[%s1052_s19 + $0xf8] sm:$0xff] %vm689_vm11, %v688_v57 }
 0x111 PF: > { %s11_s10 = sadd.s32 1, %s1004_s10   ;;  %s1516_s6 = smov %s996_s8 }
 0x112   : > { %p8_p8 = scmp.ge.s32.totalorder %s11_s10, 8   ;;  %s1517_s7 = smov %s1000_s9 }
 0x113   : > { %s1518_s8 = smov %s1521_s11  ;;  %s1519_s9 = smov %s1525_s12 }
 0x114   :  { %10 = sbr.rel (!%p8_p8) target bundleno = 3 (0x3), region = 58 }

// kernel: style_transfer3_forward.3
= control target key start
LH: loop header
LB: loop body
LE: loop exit
PB: predicated region body
PF: predicated region fallthrough
CT: control target
= control target key end

     0   :  { %8 = vsyncpa [#allocation3], 0  ;;  %s6832_s0 = inlined_call_operand.vmem [shape: f32[3,256], index: 0, kind: input, shape index: {}]   ;;  %s6833_s1 = inlined_call_operand.hbm [shape: bf16[16,256,256], index: 1, kind: input, shape index: {}]   ;;  %s6834_s2 = inlined_call_operand.hbm [shape: f32[16,256], index: 2, kind: input, shape index: {}]   ;;  %s6835_s3 = inlined_call_operand.hbm [shape: f32[3,256], index: 3, kind: output, shape index: {}]  }
   0x1   :  { %9 = vsyncpa [#allocation6], 0 }
   0x2   :  { %10 = vsyncpa [#allocation4], 0  ;;  %s17_s14 = sshll.u32 %s6833_s1, 4  ;;  %s6745_s15 = smov [#allocation2]   ;;  %s18_s14 = int_to_ptr.hbm [resolvable:$true] %s17_s14 }
   0x3   :  { %s19_s16 = sshll.u32 %s6745_s15, 4  ;;  %s30_s19 = sshll.u32 %s6834_s2, 4  ;;  %s20_s16 = int_to_ptr.vmem [resolvable:$true] %s19_s16  ;;  %s31_s19 = int_to_ptr.hbm [resolvable:$true] %s30_s19 }
   0x4   :  { %s6746_s20 = smov 128   ;;  %s6747_s21 = smov 8  }
   0x5   :  { %25 = dma.hbm_to_vmem [thread:$0]  %s18_s14, 65536, %s20_s16, [#allocation3], %s6746_s20, %s6746_s20, %s6747_s21  }
   0x6   :  { %s6748_s22 = smov [#allocation5]   ;;  %s6749_s24 = smov 256  }
   0x7   :  { %s32_s23 = sshll.u32 %s6748_s22, 4  ;;  %s6750_s25 = smov 16   ;;  %s33_s23 = int_to_ptr.vmem [resolvable:$true] %s32_s23 }
   0x8   :  { %38 = dma.hbm_to_vmem [thread:$0]  %s31_s19, 512, %s33_s23, [#allocation6], %s6749_s24, %s6749_s24, %s6750_s25  }
   0x9   :  { %6739 = dma.done.wait [#allocation3], 65536  }
   0xa   :  { %6740 = vsyncadd [#allocation3], 4294901760 }
   0xb   :  { %6741 = dma.done.wait [#allocation6], 512  }
   0xc   :  { %6742 = vsyncadd [#allocation6], 4294966784  ;;  %v4154_v0 = vld [vmem:[#allocation2 + $0x70] sm:$0xf]  ;;  %v6159_v1 = vld [vmem:[#allocation2 + $0x74] sm:$0xf0] }
   0xd   :  { %v4218_v2 = vld [vmem:[#allocation2 + $0xf0] sm:$0xf]  ;;  %v4155_v3 = vor.u32 %v6159_v1, %v4154_v0  ;;  %v6175_v4 = vld [vmem:[#allocation2 + $0xf4] sm:$0xf0]  ;;  %v6158_v5 = vld [vmem:[#allocation2 + $0x74] sm:$0xf] }
   0xe   :  { %v4156_v6 = vld [vmem:[#allocation2 + $0x78] sm:$0xf0]  ;;  %v4219_v7 = vor.u32 %v6175_v4, %v4218_v2  ;;  %v6174_v9 = vld [vmem:[#allocation2 + $0xf4] sm:$0xf]  ;;  %v4146_v11 = vld [vmem:[#allocation2 + $0x60] sm:$0xf] }
   0xf   :  { %v4159_v8 = vor.u32 %v6158_v5, %v4156_v6  ;;  %v4220_v10 = vld [vmem:[#allocation2 + $0xf8] sm:$0xf0]  ;;  %254 = vmatpush.bf16.msra.mxu0 %v4155_v3  ;;  %v6157_v13 = vld [vmem:[#allocation2 + $0x64] sm:$0xf0]  ;;  %v4210_v14 = vld [vmem:[#allocation2 + $0xe0] sm:$0xf] }
  0x10   :  { %v4223_v12 = vor.u32 %v6174_v9, %v4220_v10  ;;  %v6173_v15 = vld [vmem:[#allocation2 + $0xe4] sm:$0xf0]  ;;  %267 = vmatpush.bf16.msra.mxu1 %v4219_v7  ;;  %v4147_v16 = vor.u32 %v6157_v13, %v4146_v11  ;;  %v6156_v18 = vld [vmem:[#allocation2 + $0x64] sm:$0xf]  ;;  %v4148_v19 = vld [vmem:[#allocation2 + $0x68] sm:$0xf0] }
  0x11   :  { %280 = vmatpush.bf16.msra.mxu2 %v4159_v8  ;;  %v4211_v17 = vor.u32 %v6173_v15, %v4210_v14  ;;  %v6172_v20 = vld [vmem:[#allocation2 + $0xe4] sm:$0xf]  ;;  %v4151_v21 = vor.u32 %v6156_v18, %v4148_v19  ;;  %v4212_v22 = vld [vmem:[#allocation2 + $0xe8] sm:$0xf0]  ;;  %v4138_v23 = vld [vmem:[#allocation2 + $0x50] sm:$0xf] }
  0x12   :  { %293 = vmatpush.bf16.msra.mxu3 %v4223_v12  ;;  %v6155_v24 = vld [vmem:[#allocation2 + $0x54] sm:$0xf0]  ;;  %v4215_v25 = vor.u32 %v6172_v20, %v4212_v22  ;;  %v4202_v26 = vld [vmem:[#allocation2 + $0xd0] sm:$0xf]  ;;  %v6154_v28 = vld [vmem:[#allocation2 + $0x54] sm:$0xf] }
  0x13   :  { %v6171_v27 = vld [vmem:[#allocation2 + $0xd4] sm:$0xf0]  ;;  %255 = vmatpush.bf16.msra.mxu0 %v4147_v16  ;;  %v4139_v29 = vor.u32 %v6155_v24, %v4138_v23  ;;  %v4140_v30 = vld [vmem:[#allocation2 + $0x58] sm:$0xf0]  ;;  %v6170_v31 = vld [vmem:[#allocation2 + $0xd4] sm:$0xf] }
  0x14   :  { %v4204_v32 = vld [vmem:[#allocation2 + $0xd8] sm:$0xf0]  ;;  %268 = vmatpush.bf16.msra.mxu1 %v4211_v17  ;;  %v4203_v33 = vor.u32 %v6171_v27, %v4202_v26  ;;  %v4143_v34 = vor.u32 %v6154_v28, %v4140_v30  ;;  %v4130_v35 = vld [vmem:[#allocation2 + $0x40] sm:$0xf]  ;;  %v6153_v36 = vld [vmem:[#allocation2 + $0x44] sm:$0xf0] }
  0x15   :  { %281 = vmatpush.bf16.msra.mxu2 %v4151_v21  ;;  %v4194_v37 = vld [vmem:[#allocation2 + $0xc0] sm:$0xf]  ;;  %v4207_v38 = vor.u32 %v6170_v31, %v4204_v32  ;;  %v6169_v39 = vld [vmem:[#allocation2 + $0xc4] sm:$0xf0]  ;;  %v6152_v40 = vld [vmem:[#allocation2 + $0x44] sm:$0xf]  ;;  %v4131_v44 = vor.u32 %v6153_v36, %v4130_v35 }
  0x16   :  { %294 = vmatpush.bf16.msra.mxu3 %v4215_v25  ;;  %v4132_v41 = vld [vmem:[#allocation2 + $0x48] sm:$0xf0]  ;;  %v6168_v42 = vld [vmem:[#allocation2 + $0xc4] sm:$0xf]  ;;  %v4195_v45 = vor.u32 %v6169_v39, %v4194_v37  ;;  %v4122_v47 = vld [vmem:[#allocation2 + $0x30] sm:$0xf] }
  0x17   :  { %v4196_v43 = vld [vmem:[#allocation2 + $0xc8] sm:$0xf0]  ;;  %256 = vmatpush.bf16.msra.mxu0 %v4139_v29  ;;  %v4135_v46 = vor.u32 %v6152_v40, %v4132_v41  ;;  %v6151_v48 = vld [vmem:[#allocation2 + $0x34] sm:$0xf0]  ;;  %v4186_v49 = vld [vmem:[#allocation2 + $0xb0] sm:$0xf] }
  0x18   :  { %269 = vmatpush.bf16.msra.mxu1 %v4203_v33  ;;  %v4199_v50 = vor.u32 %v6168_v42, %v4196_v43  ;;  %v6167_v51 = vld [vmem:[#allocation2 + $0xb4] sm:$0xf0]  ;;  %v6150_v52 = vld [vmem:[#allocation2 + $0x34] sm:$0xf]  ;;  %v4124_v53 = vld [vmem:[#allocation2 + $0x38] sm:$0xf0]  ;;  %v4123_v56 = vor.u32 %v6151_v48, %v4122_v47 }
  0x19   :  { %282 = vmatpush.bf16.msra.mxu2 %v4143_v34  ;;  %v6166_v54 = vld [vmem:[#allocation2 + $0xb4] sm:$0xf]  ;;  %v4188_v55 = vld [vmem:[#allocation2 + $0xb8] sm:$0xf0]  ;;  %v4187_v57 = vor.u32 %v6167_v51, %v4186_v49  ;;  %v4127_v58 = vor.u32 %v6150_v52, %v4124_v53  ;;  %v4114_v59 = vld [vmem:[#allocation2 + $0x20] sm:$0xf] }
  0x1a   :  { %295 = vmatpush.bf16.msra.mxu3 %v4207_v38  ;;  %v6149_v60 = vld [vmem:[#allocation2 + $0x24] sm:$0xf0]  ;;  %v4178_v61 = vld [vmem:[#allocation2 + $0xa0] sm:$0xf]  ;;  %v4191_v62 = vor.u32 %v6166_v54, %v4188_v55  ;;  %v6148_v0 = vld [vmem:[#allocation2 + $0x24] sm:$0xf] }
  0x1b   :  { %257 = vmatpush.bf16.msra.mxu0 %v4131_v44  ;;  %v6165_v63 = vld [vmem:[#allocation2 + $0xa4] sm:$0xf0]  ;;  %v4116_v1 = vld [vmem:[#allocation2 + $0x28] sm:$0xf0]  ;;  %v6164_v2 = vld [vmem:[#allocation2 + $0xa4] sm:$0xf]  ;;  %v4115_v4 = vor.u32 %v6149_v60, %v4114_v59 }
  0x1c   :  { %270 = vmatpush.bf16.msra.mxu1 %v4195_v45  ;;  %v4180_v3 = vld [vmem:[#allocation2 + $0xa8] sm:$0xf0]  ;;  %v4106_v5 = vld [vmem:[#allocation2 + $0x10] sm:$0xf]  ;;  %v4179_v6 = vor.u32 %v6165_v63, %v4178_v61  ;;  %v4119_v7 = vor.u32 %v6148_v0, %v4116_v1  ;;  %v6147_v8 = vld [vmem:[#allocation2 + $0x14] sm:$0xf0] }
  0x1d   :  { %283 = vmatpush.bf16.msra.mxu2 %v4135_v46  ;;  %v4170_v9 = vld [vmem:[#allocation2 + $0x90] sm:$0xf]  ;;  %v6163_v10 = vld [vmem:[#allocation2 + $0x94] sm:$0xf0]  ;;  %v4183_v11 = vor.u32 %v6164_v2, %v4180_v3  ;;  %v6146_v12 = vld [vmem:[#allocation2 + $0x14] sm:$0xf]  ;;  %v4107_v17 = vor.u32 %v6147_v8, %v4106_v5 }
  0x1e   :  { %296 = vmatpush.bf16.msra.mxu3 %v4199_v50  ;;  %v4108_v13 = vld [vmem:[#allocation2 + $0x18] sm:$0xf0]  ;;  %v6162_v15 = vld [vmem:[#allocation2 + $0x94] sm:$0xf]  ;;  %v4098_v18 = vld [vmem:[#allocation2] sm:$0xf]  ;;  %v4171_v19 = vor.u32 %v6163_v10, %v4170_v9 }
  0x1f   :  { %258 = vmatpush.bf16.msra.mxu0 %v4123_v56  ;;  %v47_v14 = vld [vmem:[%s6832_s0] sm:$0x77]  ;;  %v4111_v20 = vor.u32 %v6146_v12, %v4108_v13  ;;  %v6145_v21 = vld [vmem:[#allocation2 + $0x4] sm:$0xf0]  ;;  %v4162_v22 = vld [vmem:[#allocation2 + $0x80] sm:$0xf] }
  0x20   :  { %271 = vmatpush.bf16.msra.mxu1 %v4187_v57  ;;  %v4172_v16 = vld [vmem:[#allocation2 + $0x98] sm:$0xf0]  ;;  %53 = vst [vmem:[#allocation1] ss:$2 sm:$0xff] %v47_v14  ;;  %v6161_v23 = vld [vmem:[#allocation2 + $0x84] sm:$0xf0]  ;;  %v4099_v31 = vor.u32 %v6145_v21, %v4098_v18 }
  0x21   :  { %284 = vmatpush.bf16.msra.mxu2 %v4127_v58  ;;  %v4175_v24 = vor.u32 %v6162_v15, %v4172_v16  ;;  %v6144_v25 = vld [vmem:[#allocation2 + $0x4] sm:$0xf]  ;;  %v4100_v26 = vld [vmem:[#allocation2 + $0x8] sm:$0xf0]  ;;  %v4282_v29 = vld [vmem:[#allocation2 + $0x170] sm:$0xf]  ;;  %v4163_v34 = vor.u32 %v6161_v23, %v4162_v22 }
  0x22   :  { %297 = vmatpush.bf16.msra.mxu3 %v4191_v62  ;;  %v6160_v27 = vld [vmem:[#allocation2 + $0x84] sm:$0xf]  ;;  %v4164_v28 = vld [vmem:[#allocation2 + $0x88] sm:$0xf0]  ;;  %v6191_v30 = vld [vmem:[#allocation2 + $0x174] sm:$0xf0]  ;;  %v4103_v35 = vor.u32 %v6144_v25, %v4100_v26 }
  0x23   :  { %259 = vmatpush.bf16.msra.mxu0 %v4115_v4  ;;  %v6190_v32 = vld [vmem:[#allocation2 + $0x174] sm:$0xf]  ;;  %v4284_v33 = vld [vmem:[#allocation2 + $0x178] sm:$0xf0]  ;;  %v4274_v36 = vld [vmem:[#allocation2 + $0x160] sm:$0xf]  ;;  %v4167_v39 = vor.u32 %v6160_v27, %v4164_v28  ;;  %v4283_v42 = vor.u32 %v6191_v30, %v4282_v29 }
  0x24   :  { %272 = vmatpush.bf16.msra.mxu1 %v4179_v6  ;;  %v4346_v37 = vld [vmem:[#allocation2 + $0x1f0] sm:$0xf]  ;;  %v6207_v38 = vld [vmem:[#allocation2 + $0x1f4] sm:$0xf0]  ;;  %v4287_v44 = vor.u32 %v6190_v32, %v4284_v33  ;;  %v6189_v45 = vld [vmem:[#allocation2 + $0x164] sm:$0xf0] }
  0x25   :  { %285 = vmatpush.bf16.msra.mxu2 %v4119_v7  ;;  %v6206_v46 = vld [vmem:[#allocation2 + $0x1f4] sm:$0xf]  ;;  %v4348_v47 = vld [vmem:[#allocation2 + $0x1f8] sm:$0xf0]  ;;  %v6188_v49 = vld [vmem:[#allocation2 + $0x164] sm:$0xf]  ;;  %v4347_v51 = vor.u32 %v6207_v38, %v4346_v37  ;;  %v4275_v52 = vor.u32 %v6189_v45, %v4274_v36 }
  0x26   :  { %298 = vmatpush.bf16.msra.mxu3 %v4183_v11  ;;  %v4276_v50 = vld [vmem:[#allocation2 + $0x168] sm:$0xf0]  ;;  %v4351_v53 = vor.u32 %v6206_v46, %v4348_v47  ;;  %v4266_v54 = vld [vmem:[#allocation2 + $0x150] sm:$0xf]  ;;  %v4338_v55 = vld [vmem:[#allocation2 + $0x1e0] sm:$0xf] }
  0x27   :  { %260 = vmatpush.bf16.msra.mxu0 %v4107_v17  ;;  %v54_v40 = vld.sshfl [vmem:[#allocation1] sm:$0xff pattern:$0x75316420]  ;;  %v55_v41 = vld.sshfl [vmem:[#allocation1 + $0x8] sm:$0xff pattern:$0x75316420]  ;;  %v4279_v57 = vor.u32 %v6188_v49, %v4276_v50 }
  0x28   :  { %273 = vmatpush.bf16.msra.mxu1 %v4171_v19  ;;  %v58_v43 = vpack.c.bf16 %v54_v40, %v54_v40  ;;  %v59_v48 = vpack.c.bf16 %v55_v41, %v55_v41  ;;  %v6205_v56 = vld [vmem:[#allocation2 + $0x1e4] sm:$0xf0]  ;;  %v6187_v58 = vld [vmem:[#allocation2 + $0x154] sm:$0xf0]  ;;  %v6204_v59 = vld [vmem:[#allocation2 + $0x1e4] sm:$0xf] }
  0x29   :  { %286 = vmatpush.bf16.msra.mxu2 %v4111_v20  ;;  %v4340_v60 = vld [vmem:[#allocation2 + $0x1e8] sm:$0xf0]  ;;  %v6186_v61 = vld [vmem:[#allocation2 + $0x154] sm:$0xf]  ;;  %v4268_v62 = vld [vmem:[#allocation2 + $0x158] sm:$0xf0]  ;;  %v4339_v63 = vor.u32 %v6205_v56, %v4338_v55  ;;  %v4267_v0 = vor.u32 %v6187_v58, %v4266_v54 }
  0x2a   :  { %299 = vmatpush.bf16.msra.mxu3 %v4175_v24  ;;  %v4343_v1 = vor.u32 %v6204_v59, %v4340_v60  ;;  %v4258_v2 = vld [vmem:[#allocation2 + $0x140] sm:$0xf]  ;;  %v4330_v3 = vld [vmem:[#allocation2 + $0x1d0] sm:$0xf]  ;;  %v6203_v4 = vld [vmem:[#allocation2 + $0x1d4] sm:$0xf0]  ;;  %v4271_v5 = vor.u32 %v6186_v61, %v4268_v62 }
  0x2b   :  { %261 = vmatpush.bf16.msra.mxu0 %v4099_v31  ;;  %v6185_v6 = vld [vmem:[#allocation2 + $0x144] sm:$0xf0]  ;;  %v6202_v7 = vld [vmem:[#allocation2 + $0x1d4] sm:$0xf]  ;;  %v4332_v8 = vld [vmem:[#allocation2 + $0x1d8] sm:$0xf0]  ;;  %v4331_v11 = vor.u32 %v6203_v4, %v4330_v3 }
  0x2c   :  { %274 = vmatpush.bf16.msra.mxu1 %v4163_v34  ;;  %v6184_v9 = vld [vmem:[#allocation2 + $0x144] sm:$0xf]  ;;  %v4260_v10 = vld [vmem:[#allocation2 + $0x148] sm:$0xf0]  ;;  %v4259_v12 = vor.u32 %v6185_v6, %v4258_v2  ;;  %v4335_v13 = vor.u32 %v6202_v7, %v4332_v8  ;;  %v4250_v14 = vld [vmem:[#allocation2 + $0x130] sm:$0xf] }
  0x2d   :  { %287 = vmatpush.bf16.msra.mxu2 %v4103_v35  ;;  %v4322_v15 = vld [vmem:[#allocation2 + $0x1c0] sm:$0xf]  ;;  %v6201_v16 = vld [vmem:[#allocation2 + $0x1c4] sm:$0xf0]  ;;  %v4263_v17 = vor.u32 %v6184_v9, %v4260_v10  ;;  %v6183_v18 = vld [vmem:[#allocation2 + $0x134] sm:$0xf0] }
  0x2e   :  { %300 = vmatpush.bf16.msra.mxu3 %v4167_v39  ;;  %262 = vmatmul.bf16.vlgmr.msra.gmra.mxu0 %v58_v43  ;;  %v6200_v19 = vld [vmem:[#allocation2 + $0x1c4] sm:$0xf]  ;;  %v4324_v20 = vld [vmem:[#allocation2 + $0x1c8] sm:$0xf0]  ;;  %v6182_v21 = vld [vmem:[#allocation2 + $0x134] sm:$0xf]  ;;  %v4323_v23 = vor.u32 %v6201_v16, %v4322_v15  ;;  %v4251_v24 = vor.u32 %v6183_v18, %v4250_v14 }
  0x2f   :  { %505 = vmatpush.bf16.msrb.mxu0 %v4283_v42  ;;  %275 = vmatmul.bf16.vlgmr.msra.gmra.mxu1 %v59_v48  ;;  %v4252_v22 = vld [vmem:[#allocation2 + $0x138] sm:$0xf0]  ;;  %v4327_v25 = vor.u32 %v6200_v19, %v4324_v20  ;;  %v4242_v27 = vld [vmem:[#allocation2 + $0x120] sm:$0xf]  ;;  %v6181_v28 = vld [vmem:[#allocation2 + $0x124] sm:$0xf0] }
  0x30   :  { %288 = vmatmul.bf16.vlgmr.msra.gmra.mxu2 %v58_v43  ;;  %518 = vmatpush.bf16.msrb.mxu1 %v4347_v51  ;;  %v4255_v26 = vor.u32 %v6182_v21, %v4252_v22  ;;  %v6180_v29 = vld [vmem:[#allocation2 + $0x124] sm:$0xf]  ;;  %v4244_v30 = vld [vmem:[#allocation2 + $0x128] sm:$0xf0]  ;;  %v4243_v31 = vor.u32 %v6181_v28, %v4242_v27  ;;  %v4314_v33 = vld [vmem:[#allocation2 + $0x1b0] sm:$0xf] }
  0x31   :  { %531 = vmatpush.bf16.msrb.mxu2 %v4287_v44  ;;  %301 = vmatmul.bf16.vlgmr.msra.gmra.mxu3 %v59_v48  ;;  %v4247_v32 = vor.u32 %v6180_v29, %v4244_v30  ;;  %v6199_v34 = vld [vmem:[#allocation2 + $0x1b4] sm:$0xf0]  ;;  %v6198_v35 = vld [vmem:[#allocation2 + $0x1b4] sm:$0xf]  ;;  %v4316_v37 = vld [vmem:[#allocation2 + $0x1b8] sm:$0xf0] }
  0x32   :  { %544 = vmatpush.bf16.msrb.mxu3 %v4351_v53  ;;  %v4315_v36 = vor.u32 %v6199_v34, %v4314_v33  ;;  %v4319_v38 = vor.u32 %v6198_v35, %v4316_v37  ;;  %v4234_v39 = vld [vmem:[#allocation2 + $0x110] sm:$0xf]  ;;  %v6179_v40 = vld [vmem:[#allocation2 + $0x114] sm:$0xf0]  ;;  %v6178_v41 = vld [vmem:[#allocation2 + $0x114] sm:$0xf] }
  0x33   :  { %506 = vmatpush.bf16.msrb.mxu0 %v4275_v52  ;;  %v4235_v42 = vor.u32 %v6179_v40, %v4234_v39  ;;  %v4236_v43 = vld [vmem:[#allocation2 + $0x118] sm:$0xf0]  ;;  %v4306_v45 = vld [vmem:[#allocation2 + $0x1a0] sm:$0xf]  ;;  %v6197_v46 = vld [vmem:[#allocation2 + $0x1a4] sm:$0xf0] }
  0x34   :  { %519 = vmatpush.bf16.msrb.mxu1 %v4339_v63  ;;  %v4239_v44 = vor.u32 %v6178_v41, %v4236_v43  ;;  %v6196_v47 = vld [vmem:[#allocation2 + $0x1a4] sm:$0xf]  ;;  %v4307_v48 = vor.u32 %v6197_v46, %v4306_v45  ;;  %v4308_v49 = vld [vmem:[#allocation2 + $0x1a8] sm:$0xf0]  ;;  %v4226_v51 = vld [vmem:[#allocation2 + $0x100] sm:$0xf] }
  0x35   :  { %532 = vmatpush.bf16.msrb.mxu2 %v4279_v57  ;;  %v4311_v50 = vor.u32 %v6196_v47, %v4308_v49  ;;  %v6177_v52 = vld [vmem:[#allocation2 + $0x104] sm:$0xf0]  ;;  %v6176_v53 = vld [vmem:[#allocation2 + $0x104] sm:$0xf]  ;;  %v4228_v55 = vld [vmem:[#allocation2 + $0x108] sm:$0xf0] }
  0x36   :  { %545 = vmatpush.bf16.msrb.mxu3 %v4343_v1  ;;  %v4227_v54 = vor.u32 %v6177_v52, %v4226_v51  ;;  %v4231_v56 = vor.u32 %v6176_v53, %v4228_v55  ;;  %v4298_v57 = vld [vmem:[#allocation2 + $0x190] sm:$0xf]  ;;  %v6195_v58 = vld [vmem:[#allocation2 + $0x194] sm:$0xf0]  ;;  %v6194_v60 = vld [vmem:[#allocation2 + $0x194] sm:$0xf] }
  0x37   :  { %507 = vmatpush.bf16.msrb.mxu0 %v4267_v0  ;;  %v4299_v59 = vor.u32 %v6195_v58, %v4298_v57  ;;  %v4300_v61 = vld [vmem:[#allocation2 + $0x198] sm:$0xf0]  ;;  %v4290_v63 = vld [vmem:[#allocation2 + $0x180] sm:$0xf]  ;;  %v6193_v0 = vld [vmem:[#allocation2 + $0x184] sm:$0xf0] }
  0x38   :  { %520 = vmatpush.bf16.msrb.mxu1 %v4331_v11  ;;  %v4303_v62 = vor.u32 %v6194_v60, %v4300_v61  ;;  %v6192_v1 = vld [vmem:[#allocation2 + $0x184] sm:$0xf]  ;;  %v4291_v2 = vor.u32 %v6193_v0, %v4290_v63  ;;  %v4292_v3 = vld [vmem:[#allocation2 + $0x188] sm:$0xf0]  ;;  %v6223_v6 = vld [vmem:[#allocation2 + $0x274] sm:$0xf0] }
  0x39   :  { %533 = vmatpush.bf16.msrb.mxu2 %v4271_v5  ;;  %v4295_v4 = vor.u32 %v6192_v1, %v4292_v3  ;;  %v4410_v5 = vld [vmem:[#allocation2 + $0x270] sm:$0xf]  ;;  %v6222_v7 = vld [vmem:[#allocation2 + $0x274] sm:$0xf]  ;;  %v4412_v9 = vld [vmem:[#allocation2 + $0x278] sm:$0xf0] }
  0x3a   :  { %546 = vmatpush.bf16.msrb.mxu3 %v4335_v13  ;;  %v4411_v8 = vor.u32 %v6223_v6, %v4410_v5  ;;  %v4402_v10 = vld [vmem:[#allocation2 + $0x260] sm:$0xf]  ;;  %v6221_v11 = vld [vmem:[#allocation2 + $0x264] sm:$0xf0]  ;;  %v6220_v13 = vld [vmem:[#allocation2 + $0x264] sm:$0xf] }
  0x3b   :  { %508 = vmatpush.bf16.msrb.mxu0 %v4259_v12  ;;  %v4415_v12 = vor.u32 %v6222_v7, %v4412_v9  ;;  %v4404_v14 = vld [vmem:[#allocation2 + $0x268] sm:$0xf0]  ;;  %v4474_v15 = vld [vmem:[#allocation2 + $0x2f0] sm:$0xf]  ;;  %v4403_v16 = vor.u32 %v6221_v11, %v4402_v10  ;;  %v6238_v18 = vld [vmem:[#allocation2 + $0x2f4] sm:$0xf] }
  0x3c   :  { %521 = vmatpush.bf16.msrb.mxu1 %v4323_v23  ;;  %v4476_v19 = vld [vmem:[#allocation2 + $0x2f8] sm:$0xf0]  ;;  %v4407_v20 = vor.u32 %v6220_v13, %v4404_v14  ;;  %v4394_v23 = vld [vmem:[#allocation2 + $0x250] sm:$0xf]  ;;  %v4466_v27 = vld [vmem:[#allocation2 + $0x2e0] sm:$0xf] }
  0x3d   :  { %534 = vmatpush.bf16.msrb.mxu2 %v4263_v17  ;;  %v6239_v17 = vld [vmem:[#allocation2 + $0x2f4] sm:$0xf0]  ;;  %v4479_v22 = vor.u32 %v6238_v18, %v4476_v19  ;;  %v6237_v28 = vld [vmem:[#allocation2 + $0x2e4] sm:$0xf0]  ;;  %v6236_v30 = vld [vmem:[#allocation2 + $0x2e4] sm:$0xf] }
  0x3e   :  { %547 = vmatpush.bf16.msrb.mxu3 %v4327_v25  ;;  %v4475_v21 = vor.u32 %v6239_v17, %v4474_v15  ;;  %v6218_v25 = vld [vmem:[#allocation2 + $0x254] sm:$0xf]  ;;  %v4467_v29 = vor.u32 %v6237_v28, %v4466_v27  ;;  %v4386_v34 = vld [vmem:[#allocation2 + $0x240] sm:$0xf]  ;;  %v6217_v35 = vld [vmem:[#allocation2 + $0x244] sm:$0xf0] }
  0x3f   :  { %509 = vmatpush.bf16.msrb.mxu0 %v4251_v24  ;;  %v6219_v24 = vld [vmem:[#allocation2 + $0x254] sm:$0xf0]  ;;  %v4458_v37 = vld [vmem:[#allocation2 + $0x2d0] sm:$0xf]  ;;  %v6234_v39 = vld [vmem:[#allocation2 + $0x2d4] sm:$0xf]  ;;  %v4387_v46 = vor.u32 %v6217_v35, %v4386_v34 }
  0x40   :  { %522 = vmatpush.bf16.msrb.mxu1 %v4315_v36  ;;  %v6216_v40 = vld [vmem:[#allocation2 + $0x244] sm:$0xf]  ;;  %v4388_v41 = vld [vmem:[#allocation2 + $0x248] sm:$0xf0]  ;;  %v6215_v49 = vld [vmem:[#allocation2 + $0x234] sm:$0xf0] }
  0x41   :  { %535 = vmatpush.bf16.msrb.mxu2 %v4255_v26  ;;  %v4396_v26 = vld [vmem:[#allocation2 + $0x258] sm:$0xf0]  ;;  %v6781_v43 = vld [vmem:[#allocation5] sm:$0xff]  ;;  %v4391_v47 = vor.u32 %v6216_v40, %v4388_v41  ;;  %v6214_v51 = vld [vmem:[#allocation2 + $0x234] sm:$0xf]  ;;  %s6751_s0 = smov [#allocation7]  }
  0x42   :  { %548 = vmatpush.bf16.msrb.mxu3 %v4319_v38  ;;  %v4399_v36 = vor.u32 %v6218_v25, %v4396_v26  ;;  %v6235_v38 = vld [vmem:[#allocation2 + $0x2d4] sm:$0xf0]  ;;  %v4380_v52 = vld [vmem:[#allocation2 + $0x238] sm:$0xf0]  ;;  %v6784_v58 = vld [vmem:[#allocation5 + $0x8] sm:$0xff]  ;;  %s4083_s26 = sshll.u32 %s6751_s0, 4  ;;  %s4084_s26 = int_to_ptr.vmem [resolvable:$true] %s4083_s26 }
  0x43   :  { %510 = vmatpush.bf16.msrb.mxu0 %v4243_v31  ;;  %v4468_v31 = vld [vmem:[#allocation2 + $0x2e8] sm:$0xf0]  ;;  %v4383_v55 = vor.u32 %v6214_v51, %v4380_v52  ;;  %v93_v60 = vperm.slane %v6784_v58, 0  ;;  %v4450_v9 = vld [vmem:[#allocation2 + $0x2c0] sm:$0xf]  ;;  %s4085_s29 = sshll.u32 %s6835_s3, 4  ;;  %s4086_s29 = int_to_ptr.hbm [resolvable:$true] %s4085_s29 }
  0x44   :  { %523 = vmatpush.bf16.msrb.mxu1 %v4307_v48  ;;  %v4471_v33 = vor.u32 %v6236_v30, %v4468_v31  ;;  %v4378_v48 = vld [vmem:[#allocation2 + $0x230] sm:$0xf]  ;;  %v6233_v10 = vld [vmem:[#allocation2 + $0x2c4] sm:$0xf0]  ;;  %v6232_v11 = vld [vmem:[#allocation2 + $0x2c4] sm:$0xf] }
  0x45   :  { %536 = vmatpush.bf16.msrb.mxu2 %v4247_v32  ;;  %v4395_v32 = vor.u32 %v6219_v24, %v4394_v23  ;;  %v4379_v53 = vor.u32 %v6215_v49, %v4378_v48  ;;  %v4452_v13 = vld [vmem:[#allocation2 + $0x2c8] sm:$0xf0]  ;;  %v4370_v15 = vld [vmem:[#allocation2 + $0x220] sm:$0xf]  ;;  %v6212_v17 = vld [vmem:[#allocation2 + $0x224] sm:$0xf] }
  0x46   :  { %549 = vmatpush.bf16.msrb.mxu3 %v4311_v50  ;;  %v92_v50 = vperm.slane %v6781_v43, 0  ;;  %v4455_v14 = vor.u32 %v6232_v11, %v4452_v13  ;;  %v4372_v19 = vld [vmem:[#allocation2 + $0x228] sm:$0xf0]  ;;  %v6230_v24 = vld [vmem:[#allocation2 + $0x2b4] sm:$0xf]  ;;  %vm4074_vm0 = vcmask 1043456  }
  0x47   :  { %511 = vmatpush.bf16.msrb.mxu0 %v4235_v42  ;;  %v4460_v42 = vld [vmem:[#allocation2 + $0x2d8] sm:$0xf0]  ;;  %v4362_v27 = vld [vmem:[#allocation2 + $0x210] sm:$0xf]  ;;  %v6211_v28 = vld [vmem:[#allocation2 + $0x214] sm:$0xf0] }
  0x48   :  { %524 = vmatpush.bf16.msrb.mxu1 %v4299_v59  ;;  %v4463_v45 = vor.u32 %v6234_v39, %v4460_v42  ;;  %v4444_v25 = vld [vmem:[#allocation2 + $0x2b8] sm:$0xf0]  ;;  %v4363_v30 = vor.u32 %v6211_v28, %v4362_v27  ;;  %v6229_v34 = vld [vmem:[#allocation2 + $0x2a4] sm:$0xf0]  ;;  %v6228_v35 = vld [vmem:[#allocation2 + $0x2a4] sm:$0xf] }
  0x49   :  { %537 = vmatpush.bf16.msrb.mxu2 %v4239_v44  ;;  %v4459_v44 = vor.u32 %v6235_v38, %v4458_v37  ;;  %v4447_v26 = vor.u32 %v6230_v24, %v4444_v25  ;;  %v4364_v31 = vld [vmem:[#allocation2 + $0x218] sm:$0xf0]  ;;  %v4436_v37 = vld [vmem:[#allocation2 + $0x2a8] sm:$0xf0]  ;;  %v4354_v39 = vld [vmem:[#allocation2 + $0x200] sm:$0xf] }
  0x4a   :  { %550 = vmatpush.bf16.msrb.mxu3 %v4303_v62  ;;  %v4439_v38 = vor.u32 %v6228_v35, %v4436_v37  ;;  %v6209_v40 = vld [vmem:[#allocation2 + $0x204] sm:$0xf0]  ;;  %v6208_v41 = vld [vmem:[#allocation2 + $0x204] sm:$0xf]  ;;  %v6226_v49 = vld [vmem:[#allocation2 + $0x294] sm:$0xf] }
  0x4b   :  { %512 = vmatpush.bf16.msrb.mxu0 %v4227_v54  ;;  %v4355_v42 = vor.u32 %v6209_v40, %v4354_v39  ;;  %v4418_v52 = vld [vmem:[#allocation2 + $0x280] sm:$0xf]  ;;  %v4522_v13 = vld [vmem:[#allocation2 + $0x350] sm:$0xf]  ;;  %v6249_v25 = vld [vmem:[#allocation2 + $0x344] sm:$0xf0] }
  0x4c   :  { %525 = vmatpush.bf16.msrb.mxu1 %v4291_v2  ;;  %v4514_v24 = vld [vmem:[#allocation2 + $0x340] sm:$0xf]  ;;  %v4586_v27 = vld [vmem:[#allocation2 + $0x3d0] sm:$0xf]  ;;  %v6267_v28 = vld [vmem:[#allocation2 + $0x3d4] sm:$0xf0] }
  0x4d   :  { %538 = vmatpush.bf16.msrb.mxu2 %v4231_v56  ;;  %v343_v35 = vperm.slane %v6781_v43, 1  ;;  %v4515_v37 = vor.u32 %v6249_v25, %v4514_v24  ;;  %v4506_v39 = vld [vmem:[#allocation2 + $0x330] sm:$0xf]  ;;  %v6247_v40 = vld [vmem:[#allocation2 + $0x334] sm:$0xf0] }
  0x4e   :  { %551 = vmatpush.bf16.msrb.mxu3 %v4295_v4  ;;  %v6261_v24 = vld [vmem:[#allocation2 + $0x3a4] sm:$0xf0] }
  0x4f   :  { %756 = vmatpush.bf16.msra.mxu0 %v4411_v8 }
  0x50   :  { %769 = vmatpush.bf16.msra.mxu1 %v4475_v21  ;;  %v6231_v21 = vld [vmem:[#allocation2 + $0x2b4] sm:$0xf0] }
  0x51   :  { %782 = vmatpush.bf16.msra.mxu2 %v4415_v12  ;;  %v4451_v12 = vor.u32 %v6233_v10, %v4450_v9  ;;  %v4604_v9 = vld [vmem:[#allocation2 + $0x3f8] sm:$0xf0] }
  0x52   :  { %795 = vmatpush.bf16.msra.mxu3 %v4479_v22  ;;  %v4375_v22 = vor.u32 %v6212_v17, %v4372_v19  ;;  %v4594_v17 = vld [vmem:[#allocation2 + $0x3e0] sm:$0xf] }
  0x53   :  { %757 = vmatpush.bf16.msra.mxu0 %v4403_v16  ;;  %v6213_v16 = vld [vmem:[#allocation2 + $0x224] sm:$0xf0] }
  0x54   :  { %770 = vmatpush.bf16.msra.mxu1 %v4467_v29  ;;  %v4371_v18 = vor.u32 %v6213_v16, %v4370_v15  ;;  %v6210_v29 = vld [vmem:[#allocation2 + $0x214] sm:$0xf]  ;;  %v4524_v16 = vld [vmem:[#allocation2 + $0x358] sm:$0xf0] }
  0x55   :  { %783 = vmatpush.bf16.msra.mxu2 %v4407_v20  ;;  %v4442_v20 = vld [vmem:[#allocation2 + $0x2b0] sm:$0xf]  ;;  %v6250_v15 = vld [vmem:[#allocation2 + $0x354] sm:$0xf] }
  0x56   :  { %796 = vmatpush.bf16.msra.mxu3 %v4471_v33  ;;  %v4443_v23 = vor.u32 %v6231_v21, %v4442_v20  ;;  %v4434_v33 = vld [vmem:[#allocation2 + $0x2a0] sm:$0xf]  ;;  %v6268_v20 = vld [vmem:[#allocation2 + $0x3e4] sm:$0xf]  ;;  %v4596_v21 = vld [vmem:[#allocation2 + $0x3e8] sm:$0xf0] }
  0x57   :  { %758 = vmatpush.bf16.msra.mxu0 %v4395_v32  ;;  %v4367_v32 = vor.u32 %v6210_v29, %v4364_v31  ;;  %v6266_v29 = vld [vmem:[#allocation2 + $0x3d4] sm:$0xf]  ;;  %v4516_v31 = vld [vmem:[#allocation2 + $0x348] sm:$0xf0] }
  0x58   :  { %771 = vmatpush.bf16.msra.mxu1 %v4459_v44  ;;  %v4356_v44 = vld [vmem:[#allocation2 + $0x208] sm:$0xf0] }
  0x59   :  { %784 = vmatpush.bf16.msra.mxu2 %v4399_v36  ;;  %v4435_v36 = vor.u32 %v6229_v34, %v4434_v33  ;;  %v4587_v33 = vor.u32 %v6267_v28, %v4586_v27  ;;  %v4564_v27 = vld [vmem:[#allocation2 + $0x3a8] sm:$0xf0] }
  0x5a   :  { %797 = vmatpush.bf16.msra.mxu3 %v4463_v45  ;;  %v4359_v45 = vor.u32 %v6208_v41, %v4356_v44  ;;  %v6246_v41 = vld [vmem:[#allocation2 + $0x334] sm:$0xf] }
  0x5b   :  { %759 = vmatpush.bf16.msra.mxu0 %v4387_v46  ;;  %v4426_v46 = vld [vmem:[#allocation2 + $0x290] sm:$0xf] }
  0x5c   :  { %772 = vmatpush.bf16.msra.mxu1 %v4451_v12 }
  0x5d   :  { %785 = vmatpush.bf16.msra.mxu2 %v4391_v47  ;;  %v6227_v47 = vld [vmem:[#allocation2 + $0x294] sm:$0xf0] }
  0x5e   :  { %798 = vmatpush.bf16.msra.mxu3 %v4455_v14  ;;  %v4427_v48 = vor.u32 %v6227_v47, %v4426_v46  ;;  %v6251_v14 = vld [vmem:[#allocation2 + $0x354] sm:$0xf0]  ;;  %v344_v47 = vperm.slane %v6784_v58, 1 }
  0x5f   :  { %760 = vmatpush.bf16.msra.mxu0 %v4379_v53  ;;  %v6225_v53 = vld [vmem:[#allocation2 + $0x284] sm:$0xf0] }
  0x60   :  { %773 = vmatpush.bf16.msra.mxu1 %v4443_v23  ;;  %v4599_v23 = vor.u32 %v6268_v20, %v4596_v21  ;;  %v4492_v21 = vld [vmem:[#allocation2 + $0x318] sm:$0xf0] }
  0x61   :  { %786 = vmatpush.bf16.msra.mxu2 %v4383_v55  ;;  %v4419_v55 = vor.u32 %v6225_v53, %v4418_v52 }
  0x62   :  { %799 = vmatpush.bf16.msra.mxu3 %v4447_v26  ;;  %v4527_v26 = vor.u32 %v6250_v15, %v4524_v16  ;;  %v4572_v15 = vld [vmem:[#allocation2 + $0x3b8] sm:$0xf0] }
  0x63   :  { %761 = vmatpush.bf16.msra.mxu0 %v4371_v18  ;;  %v6269_v18 = vld [vmem:[#allocation2 + $0x3e4] sm:$0xf0] }
  0x64   :  { %774 = vmatpush.bf16.msra.mxu1 %v4435_v36  ;;  %v4595_v19 = vor.u32 %v6269_v18, %v4594_v17  ;;  %v4490_v17 = vld [vmem:[#allocation2 + $0x310] sm:$0xf]  ;;  %v6243_v18 = vld [vmem:[#allocation2 + $0x314] sm:$0xf0] }
  0x65   :  { %787 = vmatpush.bf16.msra.mxu2 %v4375_v22  ;;  %v4523_v22 = vor.u32 %v6251_v14, %v4522_v13  ;;  %v6262_v14 = vld [vmem:[#allocation2 + $0x3b4] sm:$0xf]  ;;  %v4491_v20 = vor.u32 %v6243_v18, %v4490_v17  ;;  %v4714_v17 = vld [vmem:[#allocation2 + $0x4d0] sm:$0xf]  ;;  %v6299_v18 = vld [vmem:[#allocation2 + $0x4d4] sm:$0xf0] }
  0x66   :  { %800 = vmatpush.bf16.msra.mxu3 %v4439_v38  ;;  %v4575_v16 = vor.u32 %v6262_v14, %v4572_v15  ;;  %v4642_v14 = vld [vmem:[#allocation2 + $0x440] sm:$0xf]  ;;  %v6281_v15 = vld [vmem:[#allocation2 + $0x444] sm:$0xf0] }
  0x67   :  { %762 = vmatpush.bf16.msra.mxu0 %v4363_v30  ;;  %v6248_v30 = vld [vmem:[#allocation2 + $0x344] sm:$0xf] }
  0x68   :  { %775 = vmatpush.bf16.msra.mxu1 %v4427_v48  ;;  %v4519_v38 = vor.u32 %v6248_v30, %v4516_v31  ;;  %v6241_v30 = vld [vmem:[#allocation2 + $0x304] sm:$0xf0]  ;;  %v6240_v31 = vld [vmem:[#allocation2 + $0x304] sm:$0xf] }
  0x69   :  { %788 = vmatpush.bf16.msra.mxu2 %v4367_v32  ;;  %v4588_v32 = vld [vmem:[#allocation2 + $0x3d8] sm:$0xf0] }
  0x6a   :  { %v4591_v34 = vor.u32 %v6266_v29, %v4588_v32  ;;  %v4482_v29 = vld [vmem:[#allocation2 + $0x300] sm:$0xf] }
  0x6b   :  { %763 = vmatpush.bf16.msra.mxu0 %v4355_v42  ;;  %v4508_v42 = vld [vmem:[#allocation2 + $0x338] sm:$0xf0]  ;;  %v4483_v32 = vor.u32 %v6241_v30, %v4482_v29  ;;  %v6279_v29 = vld [vmem:[#allocation2 + $0x434] sm:$0xf0]  ;;  %v594_v30 = vperm.slane %v6781_v43, 2 }
  0x6c   :  { %776 = vmatpush.bf16.msra.mxu1 %v4419_v55  ;;  %v4511_v46 = vor.u32 %v6246_v41, %v4508_v42  ;;  %v4546_v41 = vld [vmem:[#allocation2 + $0x380] sm:$0xf]  ;;  %v6257_v42 = vld [vmem:[#allocation2 + $0x384] sm:$0xf0] }
  0x6d   :  { %789 = vmatpush.bf16.msra.mxu2 %v4359_v45  ;;  %v4507_v45 = vor.u32 %v6247_v40, %v4506_v39  ;;  %v4556_v39 = vld [vmem:[#allocation2 + $0x398] sm:$0xf0] }
  0xab   :  { %v263_v54 = vpop.f32.mrf.mxu0 }
  0xac   :  { %v264_v56 = vadd.f32 %v263_v54, %v92_v50  ;;  %v276_v57 = vpop.f32.mrf.mxu1  ;;  %v4428_v50 = vld [vmem:[#allocation2 + $0x298] sm:$0xf0]  ;;  %v6224_v54 = vld [vmem:[#allocation2 + $0x284] sm:$0xf] }
  0xad   :  { %v4431_v51 = vor.u32 %v6226_v49, %v4428_v50 }
  0xae   :  { %v277_v59 = vadd.f32 %v276_v57, %v264_v56  ;;  %v4420_v56 = vld [vmem:[#allocation2 + $0x288] sm:$0xf0] }
  0xaf   :  { %801 = vmatpush.bf16.msra.mxu3 %v4431_v51  ;;  %v4423_v57 = vor.u32 %v6224_v54, %v4420_v56 }
  0xb0   :  { %v306_v61 = vmax.f32 %v277_v59, 0.0  ;;  %v4538_v59 = vld [vmem:[#allocation2 + $0x370] sm:$0xf] }
  0xb2   :  { %v308_v62 = vpack.c.bf16 %v306_v61, %v306_v61  ;;  %v6254_v61 = vld [vmem:[#allocation2 + $0x374] sm:$0xf] }
  0xb3   :  { %v289_v63 = vpop.f32.mrf.mxu2  ;;  %v265_v2 = vpop.f32.mrf.mxu0  ;;  %802 = vmatpush.bf16.msra.mxu3 %v4423_v57 }
  0xb4   :  { %v290_v0 = vadd.f32 %v289_v63, %v93_v60  ;;  %v302_v1 = vpop.f32.mrf.mxu3  ;;  %v278_v3 = vpop.f32.mrf.mxu1  ;;  %513 = vmatmul.bf16.vlgmr.msrb.gmra.mxu0 %v308_v62  ;;  %539 = vmatmul.bf16.vlgmr.msrb.gmra.mxu2 %v308_v62  ;;  %v6255_v60 = vld [vmem:[#allocation2 + $0x374] sm:$0xf0]  ;;  %v4540_v63 = vld [vmem:[#allocation2 + $0x378] sm:$0xf0] }
  0xb5   :  { %v4539_v62 = vor.u32 %v6255_v60, %v4538_v59  ;;  %v4543_v2 = vor.u32 %v6254_v61, %v4540_v63  ;;  %v6252_v3 = vld [vmem:[#allocation2 + $0x364] sm:$0xf]  ;;  %v4578_v63 = vld [vmem:[#allocation2 + $0x3c0] sm:$0xf] }
  0xb6   :  { %v303_v4 = vadd.f32 %v302_v1, %v290_v0  ;;  %v4530_v0 = vld [vmem:[#allocation2 + $0x360] sm:$0xf]  ;;  %v6253_v1 = vld [vmem:[#allocation2 + $0x364] sm:$0xf0] }
  0xb7   :  { %1007 = vmatpush.bf16.msrb.mxu0 %v4539_v62  ;;  %1033 = vmatpush.bf16.msrb.mxu2 %v4543_v2 }
  0xb8   :  { %v307_v5 = vmax.f32 %v303_v4, 0.0  ;;  %v4532_v4 = vld [vmem:[#allocation2 + $0x368] sm:$0xf0] }
  0xb9   :  { %v4535_v10 = vor.u32 %v6252_v3, %v4532_v4  ;;  %v4580_v3 = vld [vmem:[#allocation2 + $0x3c8] sm:$0xf0] }
  0xba   :  { %v309_v6 = vpack.c.bf16 %v307_v5, %v307_v5  ;;  %v4602_v5 = vld [vmem:[#allocation2 + $0x3f0] sm:$0xf] }
  0xbb   :  { %v291_v7 = vpop.f32.mrf.mxu2  ;;  %1034 = vmatpush.bf16.msrb.mxu2 %v4535_v10  ;;  %v4570_v10 = vld [vmem:[#allocation2 + $0x3b0] sm:$0xf] }
  0xbc   :  { %v304_v8 = vpop.f32.mrf.mxu3  ;;  %526 = vmatmul.bf16.vlgmr.msrb.gmra.mxu1 %v309_v6  ;;  %552 = vmatmul.bf16.vlgmr.msrb.gmra.mxu3 %v309_v6  ;;  %v4531_v6 = vor.u32 %v6253_v1, %v4530_v0  ;;  %v6271_v7 = vld [vmem:[#allocation2 + $0x3f4] sm:$0xf0]  ;;  %v6265_v0 = vld [vmem:[#allocation2 + $0x3c4] sm:$0xf0]  ;;  %v6264_v1 = vld [vmem:[#allocation2 + $0x3c4] sm:$0xf] }
  0xbd   :  { %v6270_v8 = vld [vmem:[#allocation2 + $0x3f4] sm:$0xf]  ;;  %v4603_v11 = vor.u32 %v6271_v7, %v4602_v5  ;;  %v4579_v2 = vor.u32 %v6265_v0, %v4578_v63  ;;  %v4583_v4 = vor.u32 %v6264_v1, %v4580_v3  ;;  %v4498_v5 = vld [vmem:[#allocation2 + $0x320] sm:$0xf]  ;;  %v6244_v7 = vld [vmem:[#allocation2 + $0x324] sm:$0xf] }
  0xbe   :  { %v4607_v12 = vor.u32 %v6270_v8, %v4604_v9  ;;  %1008 = vmatpush.bf16.msrb.mxu0 %v4531_v6  ;;  %v6245_v6 = vld [vmem:[#allocation2 + $0x324] sm:$0xf0]  ;;  %v4500_v9 = vld [vmem:[#allocation2 + $0x328] sm:$0xf0]  ;;  %v4732_v63 = vld [vmem:[#allocation2 + $0x4f8] sm:$0xf0] }
  0xbf   :  { %1020 = vmatpush.bf16.msrb.mxu1 %v4603_v11  ;;  %1035 = vmatpush.bf16.msrb.mxu2 %v4527_v26  ;;  %v4499_v8 = vor.u32 %v6245_v6, %v4498_v5  ;;  %v6263_v11 = vld [vmem:[#allocation2 + $0x3b4] sm:$0xf0]  ;;  %v6260_v26 = vld [vmem:[#allocation2 + $0x3a4] sm:$0xf]  ;;  %v4650_v3 = vld [vmem:[#allocation2 + $0x450] sm:$0xf] }
  0xc0   :  { %1046 = vmatpush.bf16.msrb.mxu3 %v4607_v12  ;;  %v4503_v12 = vor.u32 %v6244_v7, %v4500_v9  ;;  %v4571_v13 = vor.u32 %v6263_v11, %v4570_v10  ;;  %v4567_v28 = vor.u32 %v6260_v26, %v4564_v27  ;;  %v6282_v5 = vld [vmem:[#allocation2 + $0x454] sm:$0xf]  ;;  %v4652_v6 = vld [vmem:[#allocation2 + $0x458] sm:$0xf0]  ;;  %v4722_v7 = vld [vmem:[#allocation2 + $0x4e0] sm:$0xf] }
  0xc1   :  { %v6300_v10 = vld [vmem:[#allocation2 + $0x4e4] sm:$0xf]  ;;  %v4724_v11 = vld [vmem:[#allocation2 + $0x4e8] sm:$0xf0] }
  0xc2   :  { %1009 = vmatpush.bf16.msrb.mxu0 %v4523_v22 }
  0xc3   :  { %1021 = vmatpush.bf16.msrb.mxu1 %v4595_v19  ;;  %1036 = vmatpush.bf16.msrb.mxu2 %v4519_v38  ;;  %v6242_v19 = vld [vmem:[#allocation2 + $0x314] sm:$0xf] }
  0xc4   :  { %1047 = vmatpush.bf16.msrb.mxu3 %v4599_v23  ;;  %v4495_v22 = vor.u32 %v6242_v19, %v4492_v21  ;;  %v4562_v23 = vld [vmem:[#allocation2 + $0x3a0] sm:$0xf]  ;;  %v6298_v19 = vld [vmem:[#allocation2 + $0x4d4] sm:$0xf]  ;;  %v4644_v21 = vld [vmem:[#allocation2 + $0x448] sm:$0xf0] }
  0xc5   :  { %v4563_v25 = vor.u32 %v6261_v24, %v4562_v23  ;;  %v4715_v23 = vor.u32 %v6299_v18, %v4714_v17  ;;  %v4692_v17 = vld [vmem:[#allocation2 + $0x4a8] sm:$0xf0] }
  0xc6   :  { %1010 = vmatpush.bf16.msrb.mxu0 %v4515_v37  ;;  %v6258_v37 = vld [vmem:[#allocation2 + $0x394] sm:$0xf] }
  0xc7   :  { %1022 = vmatpush.bf16.msrb.mxu1 %v4587_v33  ;;  %1037 = vmatpush.bf16.msrb.mxu2 %v4511_v46  ;;  %v4484_v33 = vld [vmem:[#allocation2 + $0x308] sm:$0xf0]  ;;  %v4559_v40 = vor.u32 %v6258_v37, %v4556_v39  ;;  %v595_v39 = vperm.slane %v6784_v58, 2 }
  0xc8   :  { %1048 = vmatpush.bf16.msrb.mxu3 %v4591_v34  ;;  %v4487_v34 = vor.u32 %v6240_v31, %v4484_v33  ;;  %v4548_v46 = vld [vmem:[#allocation2 + $0x388] sm:$0xf0]  ;;  %v6278_v31 = vld [vmem:[#allocation2 + $0x434] sm:$0xf] }
  0xca   :  { %1011 = vmatpush.bf16.msrb.mxu0 %v4507_v45  ;;  %v4547_v45 = vor.u32 %v6257_v42, %v4546_v41 }
  0xcb   :  { %1023 = vmatpush.bf16.msrb.mxu1 %v4579_v2  ;;  %1038 = vmatpush.bf16.msrb.mxu2 %v4503_v12 }
  0xcc   :  { %1049 = vmatpush.bf16.msrb.mxu3 %v4583_v4  ;;  %v6283_v4 = vld [vmem:[#allocation2 + $0x454] sm:$0xf0] }
  0xcd   :  { %v4651_v12 = vor.u32 %v6283_v4, %v4650_v3  ;;  %v6294_v4 = vld [vmem:[#allocation2 + $0x4b4] sm:$0xf] }
  0xce   :  { %1012 = vmatpush.bf16.msrb.mxu0 %v4499_v8  ;;  %v6301_v8 = vld [vmem:[#allocation2 + $0x4e4] sm:$0xf0] }
  0xcf   :  { %1024 = vmatpush.bf16.msrb.mxu1 %v4571_v13  ;;  %1039 = vmatpush.bf16.msrb.mxu2 %v4495_v22  ;;  %v4723_v9 = vor.u32 %v6301_v8, %v4722_v7  ;;  %v4727_v13 = vor.u32 %v6300_v10, %v4724_v11  ;;  %v4716_v22 = vld [vmem:[#allocation2 + $0x4d8] sm:$0xf0]  ;;  %v4618_v7 = vld [vmem:[#allocation2 + $0x410] sm:$0xf]  ;;  %v6275_v8 = vld [vmem:[#allocation2 + $0x414] sm:$0xf0] }
  0xd0   :  { %1050 = vmatpush.bf16.msrb.mxu3 %v4575_v16  ;;  %v4655_v16 = vor.u32 %v6282_v5, %v4652_v6  ;;  %v4719_v24 = vor.u32 %v6298_v19, %v4716_v22  ;;  %v4700_v5 = vld [vmem:[#allocation2 + $0x4b8] sm:$0xf0]  ;;  %v4619_v10 = vor.u32 %v6275_v8, %v4618_v7  ;;  %v4610_v19 = vld [vmem:[#allocation2 + $0x400] sm:$0xf]  ;;  %v4842_v7 = vld [vmem:[#allocation2 + $0x5d0] sm:$0xf] }
  0xd1   :  { %v4703_v6 = vor.u32 %v6294_v4, %v4700_v5  ;;  %v4620_v11 = vld [vmem:[#allocation2 + $0x418] sm:$0xf0]  ;;  %v4770_v4 = vld [vmem:[#allocation2 + $0x540] sm:$0xf]  ;;  %v6313_v5 = vld [vmem:[#allocation2 + $0x544] sm:$0xf0] }
  0xd2   :  { %1013 = vmatpush.bf16.msrb.mxu0 %v4491_v20  ;;  %v6280_v20 = vld [vmem:[#allocation2 + $0x444] sm:$0xf]  ;;  %v6331_v8 = vld [vmem:[#allocation2 + $0x5d4] sm:$0xf0] }
  0xd3   :  { %1025 = vmatpush.bf16.msrb.mxu1 %v4563_v25  ;;  %1040 = vmatpush.bf16.msrb.mxu2 %v4487_v34  ;;  %v4643_v25 = vor.u32 %v6281_v15, %v4642_v14  ;;  %v4647_v27 = vor.u32 %v6280_v20, %v4644_v21  ;;  %v6293_v14 = vld [vmem:[#allocation2 + $0x4a4] sm:$0xf0]  ;;  %v6272_v21 = vld [vmem:[#allocation2 + $0x404] sm:$0xf] }
  0xd4   :  { %1051 = vmatpush.bf16.msrb.mxu3 %v4567_v28  ;;  %v4634_v28 = vld [vmem:[#allocation2 + $0x430] sm:$0xf]  ;;  %v6273_v20 = vld [vmem:[#allocation2 + $0x404] sm:$0xf0] }
  0xd5   :  { %v4635_v33 = vor.u32 %v6279_v29, %v4634_v28  ;;  %v4611_v22 = vor.u32 %v6273_v20, %v4610_v19  ;;  %v4684_v29 = vld [vmem:[#allocation2 + $0x498] sm:$0xf0]  ;;  %v6311_v19 = vld [vmem:[#allocation2 + $0x534] sm:$0xf0]  ;;  %v845_v20 = vperm.slane %v6781_v43, 3 }
  0xd6   :  { %1014 = vmatpush.bf16.msrb.mxu0 %v4483_v32  ;;  %v4636_v32 = vld [vmem:[#allocation2 + $0x438] sm:$0xf0] }
  0xd7   :  { %v4639_v34 = vor.u32 %v6278_v31, %v4636_v32  ;;  %v4674_v31 = vld [vmem:[#allocation2 + $0x480] sm:$0xf]  ;;  %v6289_v32 = vld [vmem:[#allocation2 + $0x484] sm:$0xf0] }
  0xd8   :  { %1052 = vmatpush.bf16.msrb.mxu3 %v4559_v40 }
 0x131   :  { %v514_v36 = vpop.f32.mrf.mxu0 }
 0x132   :  { %v515_v44 = vadd.f32 %v514_v36, %v343_v35  ;;  %v4554_v35 = vld [vmem:[#allocation2 + $0x390] sm:$0xf]  ;;  %v6259_v36 = vld [vmem:[#allocation2 + $0x394] sm:$0xf0] }
 0x133   :  { %v4555_v38 = vor.u32 %v6259_v36, %v4554_v35 }
 0x135   :  { %1026 = vmatpush.bf16.msrb.mxu1 %v4555_v38 }
 0x137   :  { %v540_v48 = vpop.f32.mrf.mxu2 }
 0x138   :  { %v541_v53 = vadd.f32 %v540_v48, %v344_v47  ;;  %v4666_v48 = vld [vmem:[#allocation2 + $0x470] sm:$0xf] }
 0x139   :  { %v527_v49 = vpop.f32.mrf.mxu1  ;;  %v516_v51 = vpop.f32.mrf.mxu0  ;;  %1027 = vmatpush.bf16.msrb.mxu1 %v4547_v45 }
 0x13a   :  { %v528_v50 = vadd.f32 %v527_v49, %v515_v44  ;;  %v6256_v44 = vld [vmem:[#allocation2 + $0x384] sm:$0xf]  ;;  %v6287_v49 = vld [vmem:[#allocation2 + $0x474] sm:$0xf0] }
 0x13b   :  { %v4551_v47 = vor.u32 %v6256_v44, %v4548_v46  ;;  %v4667_v51 = vor.u32 %v6287_v49, %v4666_v48 }
 0x13c   :  { %v557_v52 = vmax.f32 %v528_v50, 0.0  ;;  %v6286_v50 = vld [vmem:[#allocation2 + $0x474] sm:$0xf] }
 0x13d   :  { %1053 = vmatpush.bf16.msrb.mxu3 %v4551_v47 }
 0x13e   :  { %v559_v54 = vpack.c.bf16 %v557_v52, %v557_v52  ;;  %v4668_v52 = vld [vmem:[#allocation2 + $0x478] sm:$0xf0] }
 0x13f   :  { %v553_v55 = vpop.f32.mrf.mxu3  ;;  %v542_v57 = vpop.f32.mrf.mxu2 }
 0x140   :  { %v554_v56 = vadd.f32 %v553_v55, %v541_v53  ;;  %764 = vmatmul.bf16.vlgmr.msra.gmra.mxu0 %v559_v54  ;;  %790 = vmatmul.bf16.vlgmr.msra.gmra.mxu2 %v559_v54  ;;  %v4658_v53 = vld [vmem:[#allocation2 + $0x460] sm:$0xf]  ;;  %v6285_v54 = vld [vmem:[#allocation2 + $0x464] sm:$0xf0]  ;;  %v4671_v55 = vor.u32 %v6286_v50, %v4668_v52  ;;  %v4660_v57 = vld [vmem:[#allocation2 + $0x468] sm:$0xf0] }
 0x141   :  { %v529_v59 = vpop.f32.mrf.mxu1  ;;  %1258 = vmatpush.bf16.msra.mxu0 %v4667_v51  ;;  %v4706_v52 = vld [vmem:[#allocation2 + $0x4c0] sm:$0xf] }
 0x142   :  { %v558_v60 = vmax.f32 %v554_v56, 0.0  ;;  %v6284_v56 = vld [vmem:[#allocation2 + $0x464] sm:$0xf]  ;;  %v4730_v59 = vld [vmem:[#allocation2 + $0x4f0] sm:$0xf]  ;;  %1284 = vmatpush.bf16.msra.mxu2 %v4671_v55 }
 0x143   :  { %v4663_v0 = vor.u32 %v6284_v56, %v4660_v57  ;;  %v4708_v56 = vld [vmem:[#allocation2 + $0x4c8] sm:$0xf0] }
 0x144   :  { %v560_v61 = vpack.c.bf16 %v558_v60, %v558_v60  ;;  %v4659_v60 = vor.u32 %v6285_v54, %v4658_v53  ;;  %v6297_v53 = vld [vmem:[#allocation2 + $0x4c4] sm:$0xf0]  ;;  %v6296_v54 = vld [vmem:[#allocation2 + $0x4c4] sm:$0xf] }
 0x145   :  { %v4707_v55 = vor.u32 %v6297_v53, %v4706_v52  ;;  %v4711_v57 = vor.u32 %v6296_v54, %v4708_v56  ;;  %v4860_v52 = vld [vmem:[#allocation2 + $0x5f8] sm:$0xf0]  ;;  %v4778_v56 = vld [vmem:[#allocation2 + $0x550] sm:$0xf] }
 0x146   :  { %777 = vmatmul.bf16.vlgmr.msra.gmra.mxu1 %v560_v61  ;;  %803 = vmatmul.bf16.vlgmr.msra.gmra.mxu3 %v560_v61  ;;  %v6303_v61 = vld [vmem:[#allocation2 + $0x4f4] sm:$0xf0] }
 0x147   :  { %v555_v62 = vpop.f32.mrf.mxu3  ;;  %v4731_v1 = vor.u32 %v6303_v61, %v4730_v59  ;;  %1259 = vmatpush.bf16.msra.mxu0 %v4659_v60  ;;  %1285 = vmatpush.bf16.msra.mxu2 %v4663_v0  ;;  %v4626_v59 = vld [vmem:[#allocation2 + $0x420] sm:$0xf]  ;;  %v6277_v60 = vld [vmem:[#allocation2 + $0x424] sm:$0xf0]  ;;  %v6276_v61 = vld [vmem:[#allocation2 + $0x424] sm:$0xf] }
 0x148   :  { %v6302_v62 = vld [vmem:[#allocation2 + $0x4f4] sm:$0xf]  ;;  %v4698_v0 = vld [vmem:[#allocation2 + $0x4b0] sm:$0xf] }
 0x149   :  { %v4735_v2 = vor.u32 %v6302_v62, %v4732_v63  ;;  %1271 = vmatpush.bf16.msra.mxu1 %v4731_v1  ;;  %v4627_v62 = vor.u32 %v6277_v60, %v4626_v59  ;;  %v4628_v63 = vld [vmem:[#allocation2 + $0x428] sm:$0xf0]  ;;  %v6295_v1 = vld [vmem:[#allocation2 + $0x4b4] sm:$0xf0]  ;;  %v6314_v59 = vld [vmem:[#allocation2 + $0x554] sm:$0xf] }
 0x14a   :  { %v4699_v3 = vor.u32 %v6295_v1, %v4698_v0  ;;  %v4780_v60 = vld [vmem:[#allocation2 + $0x558] sm:$0xf0]  ;;  %v6332_v0 = vld [vmem:[#allocation2 + $0x5e4] sm:$0xf]  ;;  %v4852_v1 = vld [vmem:[#allocation2 + $0x5e8] sm:$0xf0] }
 0x14b   :  { %1297 = vmatpush.bf16.msra.mxu3 %v4735_v2  ;;  %1260 = vmatpush.bf16.msra.mxu0 %v4651_v12  ;;  %v4631_v2 = vor.u32 %v6276_v61, %v4628_v63  ;;  %v4850_v61 = vld [vmem:[#allocation2 + $0x5e0] sm:$0xf] }
 0x14c   :  { %1286 = vmatpush.bf16.msra.mxu2 %v4655_v16  ;;  %v6292_v16 = vld [vmem:[#allocation2 + $0x4a4] sm:$0xf] }
 0x14d   :  { %1272 = vmatpush.bf16.msra.mxu1 %v4723_v9  ;;  %v6274_v9 = vld [vmem:[#allocation2 + $0x414] sm:$0xf]  ;;  %v4695_v18 = vor.u32 %v6292_v16, %v4692_v17 }
 0x14e   :  { %v4623_v12 = vor.u32 %v6274_v9, %v4620_v11  ;;  %v6330_v9 = vld [vmem:[#allocation2 + $0x5d4] sm:$0xf]  ;;  %v4772_v11 = vld [vmem:[#allocation2 + $0x548] sm:$0xf0] }
 0x14f   :  { %1298 = vmatpush.bf16.msra.mxu3 %v4727_v13  ;;  %1261 = vmatpush.bf16.msra.mxu0 %v4643_v25  ;;  %v4690_v13 = vld [vmem:[#allocation2 + $0x4a0] sm:$0xf]  ;;  %v4682_v25 = vld [vmem:[#allocation2 + $0x490] sm:$0xf] }
 0x150   :  { %1287 = vmatpush.bf16.msra.mxu2 %v4647_v27  ;;  %v4691_v15 = vor.u32 %v6293_v14, %v4690_v13  ;;  %v6290_v27 = vld [vmem:[#allocation2 + $0x494] sm:$0xf]  ;;  %v4843_v13 = vor.u32 %v6331_v8, %v4842_v7  ;;  %v4738_v7 = vld [vmem:[#allocation2 + $0x500] sm:$0xf]  ;;  %v6305_v8 = vld [vmem:[#allocation2 + $0x504] sm:$0xf0] }
 0x151   :  { %1273 = vmatpush.bf16.msra.mxu1 %v4715_v23  ;;  %v4612_v23 = vld [vmem:[#allocation2 + $0x408] sm:$0xf0] }
 0x153   :  { %1299 = vmatpush.bf16.msra.mxu3 %v4719_v24  ;;  %1262 = vmatpush.bf16.msra.mxu0 %v4635_v33  ;;  %v4615_v24 = vor.u32 %v6272_v21, %v4612_v23  ;;  %v6288_v33 = vld [vmem:[#allocation2 + $0x484] sm:$0xf]  ;;  %v6310_v21 = vld [vmem:[#allocation2 + $0x534] sm:$0xf] }
 0x154   :  { %1288 = vmatpush.bf16.msra.mxu2 %v4639_v34  ;;  %v4675_v34 = vor.u32 %v6289_v32, %v4674_v31 }
 0x155   :  { %1274 = vmatpush.bf16.msra.mxu1 %v4707_v55 }
 0x157   :  { %1300 = vmatpush.bf16.msra.mxu3 %v4711_v57  ;;  %1263 = vmatpush.bf16.msra.mxu0 %v4627_v62  ;;  %v6315_v57 = vld [vmem:[#allocation2 + $0x554] sm:$0xf0]  ;;  %v6333_v62 = vld [vmem:[#allocation2 + $0x5e4] sm:$0xf0] }
 0x158   :  { %1289 = vmatpush.bf16.msra.mxu2 %v4631_v2  ;;  %v4851_v63 = vor.u32 %v6333_v62, %v4850_v61  ;;  %v4779_v2 = vor.u32 %v6315_v57, %v4778_v56  ;;  %v4828_v56 = vld [vmem:[#allocation2 + $0x5b8] sm:$0xf0]  ;;  %v6306_v61 = vld [vmem:[#allocation2 + $0x514] sm:$0xf] }
 0x159   :  { %1275 = vmatpush.bf16.msra.mxu1 %v4699_v3  ;;  %v4855_v3 = vor.u32 %v6332_v0, %v4852_v1  ;;  %v4818_v1 = vld [vmem:[#allocation2 + $0x5a0] sm:$0xf] }
 0x15b   :  { %1301 = vmatpush.bf16.msra.mxu3 %v4703_v6  ;;  %1264 = vmatpush.bf16.msra.mxu0 %v4619_v10  ;;  %v4783_v6 = vor.u32 %v6314_v59, %v4780_v60  ;;  %v6312_v10 = vld [vmem:[#allocation2 + $0x544] sm:$0xf]  ;;  %v4746_v59 = vld [vmem:[#allocation2 + $0x510] sm:$0xf]  ;;  %v6307_v60 = vld [vmem:[#allocation2 + $0x514] sm:$0xf0] }
 0x15c   :  { %1290 = vmatpush.bf16.msra.mxu2 %v4623_v12  ;;  %v4844_v12 = vld [vmem:[#allocation2 + $0x5d8] sm:$0xf0]  ;;  %v4775_v17 = vor.u32 %v6312_v10, %v4772_v11  ;;  %v4747_v62 = vor.u32 %v6307_v60, %v4746_v59  ;;  %v4739_v10 = vor.u32 %v6305_v8, %v4738_v7  ;;  %v4740_v11 = vld [vmem:[#allocation2 + $0x508] sm:$0xf0]  ;;  %v6362_v59 = vld [vmem:[#allocation2 + $0x6d4] sm:$0xf] }
 0x15d   :  { %1276 = vmatpush.bf16.msra.mxu1 %v4691_v15  ;;  %v4847_v14 = vor.u32 %v6330_v9, %v4844_v12  ;;  %v4771_v15 = vor.u32 %v6313_v5, %v4770_v4  ;;  %v6324_v4 = vld [vmem:[#allocation2 + $0x5a4] sm:$0xf]  ;;  %v4820_v5 = vld [vmem:[#allocation2 + $0x5a8] sm:$0xf0]  ;;  %v6342_v8 = vld [vmem:[#allocation2 + $0x634] sm:$0xf] }
 0x15e   :  { %v6304_v9 = vld [vmem:[#allocation2 + $0x504] sm:$0xf] }
 0x15f   :  { %1302 = vmatpush.bf16.msra.mxu3 %v4695_v18  ;;  %1265 = vmatpush.bf16.msra.mxu0 %v4611_v22  ;;  %v4762_v18 = vld [vmem:[#allocation2 + $0x530] sm:$0xf]  ;;  %v4764_v22 = vld [vmem:[#allocation2 + $0x538] sm:$0xf0]  ;;  %v4743_v12 = vor.u32 %v6304_v9, %v4740_v11  ;;  %v6344_v60 = vld [vmem:[#allocation2 + $0x644] sm:$0xf] }
 0x160   :  { %1291 = vmatpush.bf16.msra.mxu2 %v4615_v24  ;;  %v4763_v23 = vor.u32 %v6311_v19, %v4762_v18  ;;  %v4767_v24 = vor.u32 %v6310_v21, %v4764_v22  ;;  %v4802_v19 = vld [vmem:[#allocation2 + $0x580] sm:$0xf]  ;;  %v6320_v21 = vld [vmem:[#allocation2 + $0x584] sm:$0xf]  ;;  %v4892_v9 = vld [vmem:[#allocation2 + $0x638] sm:$0xf0] }
 0x161   :  { %v4895_v11 = vor.u32 %v6342_v8, %v4892_v9  ;;  %v4930_v8 = vld [vmem:[#allocation2 + $0x680] sm:$0xf]  ;;  %v6353_v9 = vld [vmem:[#allocation2 + $0x684] sm:$0xf0] }
 0x1bd   :  { %v765_v26 = vpop.f32.mrf.mxu0 }
 0x1be   :  { %v766_v35 = vadd.f32 %v765_v26, %v594_v30  ;;  %v6291_v26 = vld [vmem:[#allocation2 + $0x494] sm:$0xf0]  ;;  %v4687_v30 = vor.u32 %v6290_v27, %v4684_v29  ;;  %v846_v29 = vperm.slane %v6784_v58, 3  ;;  %v6328_v58 = vld [vmem:[#allocation2 + $0x5c4] sm:$0xf] }
 0x1bf   :  { %v4683_v28 = vor.u32 %v6291_v26, %v4682_v25 }
 0x1c0   :  { %1303 = vmatpush.bf16.msra.mxu3 %v4687_v30 }
 0x1c1   :  { %1277 = vmatpush.bf16.msra.mxu1 %v4683_v28 }
 0x1c3   :  { %v778_v36 = vpop.f32.mrf.mxu1  ;;  %v791_v37 = vpop.f32.mrf.mxu2 }
 0x1c4   :  { %v779_v38 = vadd.f32 %v778_v36, %v766_v35  ;;  %v792_v44 = vadd.f32 %v791_v37, %v595_v39  ;;  %v4676_v35 = vld [vmem:[#allocation2 + $0x488] sm:$0xf0]  ;;  %v4794_v37 = vld [vmem:[#allocation2 + $0x570] sm:$0xf]  ;;  %v6318_v39 = vld [vmem:[#allocation2 + $0x574] sm:$0xf] }
 0x1c5   :  { %v767_v40 = vpop.f32.mrf.mxu0  ;;  %v4679_v36 = vor.u32 %v6288_v33, %v4676_v35  ;;  %1278 = vmatpush.bf16.msra.mxu1 %v4675_v34 }
 0x1c6   :  { %v808_v41 = vmax.f32 %v779_v38, 0.0  ;;  %v6319_v38 = vld [vmem:[#allocation2 + $0x574] sm:$0xf0] }
 0x1c7   :  { %1304 = vmatpush.bf16.msra.mxu3 %v4679_v36  ;;  %v4795_v40 = vor.u32 %v6319_v38, %v4794_v37 }
 0x1c8   :  { %v810_v42 = vpack.c.bf16 %v808_v41, %v808_v41  ;;  %v4796_v41 = vld [vmem:[#allocation2 + $0x578] sm:$0xf0] }
 0x1c9   :  { %v804_v45 = vpop.f32.mrf.mxu3 }
 0x1ca   :  { %v805_v46 = vadd.f32 %v804_v45, %v792_v44  ;;  %1015 = vmatmul.bf16.vlgmr.msrb.gmra.mxu0 %v810_v42  ;;  %1041 = vmatmul.bf16.vlgmr.msrb.gmra.mxu2 %v810_v42  ;;  %v4786_v42 = vld [vmem:[#allocation2 + $0x560] sm:$0xf]  ;;  %v6317_v44 = vld [vmem:[#allocation2 + $0x564] sm:$0xf0]  ;;  %v4799_v45 = vor.u32 %v6318_v39, %v4796_v41 }
 0x1cb   :  { %v780_v47 = vpop.f32.mrf.mxu1  ;;  %v793_v48 = vpop.f32.mrf.mxu2  ;;  %1509 = vmatpush.bf16.msrb.mxu0 %v4795_v40  ;;  %v4834_v40 = vld [vmem:[#allocation2 + $0x5c0] sm:$0xf]  ;;  %v6329_v41 = vld [vmem:[#allocation2 + $0x5c4] sm:$0xf0] }
 0x1cc   :  { %v809_v49 = vmax.f32 %v805_v46, 0.0  ;;  %v6316_v46 = vld [vmem:[#allocation2 + $0x564] sm:$0xf]  ;;  %v4788_v47 = vld [vmem:[#allocation2 + $0x568] sm:$0xf0]  ;;  %1535 = vmatpush.bf16.msrb.mxu2 %v4799_v45 }
 0x1cd   :  { %v4858_v48 = vld [vmem:[#allocation2 + $0x5f0] sm:$0xf]  ;;  %v4791_v53 = vor.u32 %v6316_v46, %v4788_v47  ;;  %v4754_v46 = vld [vmem:[#allocation2 + $0x520] sm:$0xf]  ;;  %v6309_v47 = vld [vmem:[#allocation2 + $0x524] sm:$0xf0] }
 0x1ce   :  { %v811_v50 = vpack.c.bf16 %v809_v49, %v809_v49  ;;  %v4787_v49 = vor.u32 %v6317_v44, %v4786_v42  ;;  %v4835_v42 = vor.u32 %v6329_v41, %v4834_v40  ;;  %v4836_v44 = vld [vmem:[#allocation2 + $0x5c8] sm:$0xf0] }
 0x1cf   :  { %v4839_v45 = vor.u32 %v6328_v58, %v4836_v44  ;;  %v4906_v58 = vld [vmem:[#allocation2 + $0x650] sm:$0xf]  ;;  %v6346_v44 = vld [vmem:[#allocation2 + $0x654] sm:$0xf] }
 0x1d0   :  { %1028 = vmatmul.bf16.vlgmr.msrb.gmra.mxu1 %v811_v50  ;;  %1054 = vmatmul.bf16.vlgmr.msrb.gmra.mxu3 %v811_v50  ;;  %v6335_v50 = vld [vmem:[#allocation2 + $0x5f4] sm:$0xf0] }
 0x1d1   :  { %v806_v51 = vpop.f32.mrf.mxu3  ;;  %v4859_v54 = vor.u32 %v6335_v50, %v4858_v48  ;;  %1510 = vmatpush.bf16.msrb.mxu0 %v4787_v49  ;;  %1536 = vmatpush.bf16.msrb.mxu2 %v4791_v53  ;;  %v6308_v48 = vld [vmem:[#allocation2 + $0x524] sm:$0xf]  ;;  %v4755_v49 = vor.u32 %v6309_v47, %v4754_v46  ;;  %v4756_v50 = vld [vmem:[#allocation2 + $0x528] sm:$0xf0]  ;;  %v4978_v46 = vld [vmem:[#allocation2 + $0x6e0] sm:$0xf] }
 0x1d2   :  { %v6334_v51 = vld [vmem:[#allocation2 + $0x5f4] sm:$0xf]  ;;  %v4759_v53 = vor.u32 %v6308_v48, %v4756_v50  ;;  %v6365_v47 = vld [vmem:[#allocation2 + $0x6e4] sm:$0xf0]  ;;  %v4980_v50 = vld [vmem:[#allocation2 + $0x6e8] sm:$0xf0] }
 0x1d3   :  { %v4863_v55 = vor.u32 %v6334_v51, %v4860_v52  ;;  %1522 = vmatpush.bf16.msrb.mxu1 %v4859_v54  ;;  %v4826_v51 = vld [vmem:[#allocation2 + $0x5b0] sm:$0xf]  ;;  %v6327_v52 = vld [vmem:[#allocation2 + $0x5b4] sm:$0xf0]  ;;  %v4979_v48 = vor.u32 %v6365_v47, %v4978_v46 }
 0x1d4   :  { %v4827_v54 = vor.u32 %v6327_v52, %v4826_v51  ;;  %v4874_v46 = vld [vmem:[#allocation2 + $0x610] sm:$0xf]  ;;  %v6339_v47 = vld [vmem:[#allocation2 + $0x614] sm:$0xf0] }
 0x1d5   :  { %1548 = vmatpush.bf16.msrb.mxu3 %v4863_v55  ;;  %1511 = vmatpush.bf16.msrb.mxu0 %v4779_v2  ;;  %v6326_v55 = vld [vmem:[#allocation2 + $0x5b4] sm:$0xf]  ;;  %v6325_v2 = vld [vmem:[#allocation2 + $0x5a4] sm:$0xf0] }
 0x1d6   :  { %1537 = vmatpush.bf16.msrb.mxu2 %v4783_v6  ;;  %v4831_v57 = vor.u32 %v6326_v55, %v4828_v56  ;;  %v4823_v6 = vor.u32 %v6324_v4, %v4820_v5  ;;  %v4970_v56 = vld [vmem:[#allocation2 + $0x6d0] sm:$0xf]  ;;  %v6343_v5 = vld [vmem:[#allocation2 + $0x634] sm:$0xf0] }
 0x1d7   :  { %1523 = vmatpush.bf16.msrb.mxu1 %v4851_v63  ;;  %v4748_v63 = vld [vmem:[#allocation2 + $0x518] sm:$0xf0]  ;;  %v4890_v4 = vld [vmem:[#allocation2 + $0x630] sm:$0xf] }
 0x1d8   :  { %v4751_v0 = vor.u32 %v6306_v61, %v4748_v63  ;;  %v4900_v61 = vld [vmem:[#allocation2 + $0x648] sm:$0xf0] }
 0x1d9   :  { %1549 = vmatpush.bf16.msrb.mxu3 %v4855_v3  ;;  %1512 = vmatpush.bf16.msrb.mxu0 %v4771_v15  ;;  %v4819_v3 = vor.u32 %v6325_v2, %v4818_v1  ;;  %v6322_v15 = vld [vmem:[#allocation2 + $0x594] sm:$0xf] }
 0x1da   :  { %1538 = vmatpush.bf16.msrb.mxu2 %v4775_v17  ;;  %v4812_v17 = vld [vmem:[#allocation2 + $0x598] sm:$0xf0] }
 0x1db   :  { %1524 = vmatpush.bf16.msrb.mxu1 %v4843_v13  ;;  %v4810_v13 = vld [vmem:[#allocation2 + $0x590] sm:$0xf]  ;;  %v4815_v18 = vor.u32 %v6322_v15, %v4812_v17 }
 0x1dd   :  { %1550 = vmatpush.bf16.msrb.mxu3 %v4847_v14  ;;  %1513 = vmatpush.bf16.msrb.mxu0 %v4763_v23  ;;  %v6323_v14 = vld [vmem:[#allocation2 + $0x594] sm:$0xf0]  ;;  %v4804_v23 = vld [vmem:[#allocation2 + $0x588] sm:$0xf0] }
 0x1de   :  { %1539 = vmatpush.bf16.msrb.mxu2 %v4767_v24  ;;  %v4807_v24 = vor.u32 %v6320_v21, %v4804_v23 }
 0x1df   :  { %1525 = vmatpush.bf16.msrb.mxu1 %v4835_v42  ;;  %v6347_v42 = vld [vmem:[#allocation2 + $0x654] sm:$0xf0] }
 0x1e0   :  { %v4907_v51 = vor.u32 %v6347_v42, %v4906_v58  ;;  %v6358_v42 = vld [vmem:[#allocation2 + $0x6b4] sm:$0xf] }
 0x1e1   :  { %1551 = vmatpush.bf16.msrb.mxu3 %v4839_v45  ;;  %1514 = vmatpush.bf16.msrb.mxu0 %v4755_v49  ;;  %v4908_v45 = vld [vmem:[#allocation2 + $0x658] sm:$0xf0]  ;;  %v6364_v49 = vld [vmem:[#allocation2 + $0x6e4] sm:$0xf] }
 0x1e2   :  { %1540 = vmatpush.bf16.msrb.mxu2 %v4759_v53  ;;  %v4983_v52 = vor.u32 %v6364_v49, %v4980_v50  ;;  %v4898_v53 = vld [vmem:[#allocation2 + $0x640] sm:$0xf]  ;;  %v4911_v55 = vor.u32 %v6346_v44, %v4908_v45  ;;  %v4956_v44 = vld [vmem:[#allocation2 + $0x6b8] sm:$0xf0]  ;;  %v4875_v49 = vor.u32 %v6339_v47, %v4874_v46  ;;  %v5098_v46 = vld [vmem:[#allocation2 + $0x7d0] sm:$0xf] }
 0x1e3   :  { %1526 = vmatpush.bf16.msrb.mxu1 %v4827_v54  ;;  %v6345_v54 = vld [vmem:[#allocation2 + $0x644] sm:$0xf0]  ;;  %v4959_v45 = vor.u32 %v6358_v42, %v4956_v44  ;;  %v4876_v50 = vld [vmem:[#allocation2 + $0x618] sm:$0xf0]  ;;  %v5026_v42 = vld [vmem:[#allocation2 + $0x740] sm:$0xf] }
 0x1e4   :  { %v4899_v1 = vor.u32 %v6345_v54, %v4898_v53  ;;  %v6357_v53 = vld [vmem:[#allocation2 + $0x6a4] sm:$0xf0]  ;;  %v6395_v47 = vld [vmem:[#allocation2 + $0x7d4] sm:$0xf0] }
 0x1e5   :  { %1552 = vmatpush.bf16.msrb.mxu3 %v4831_v57  ;;  %1515 = vmatpush.bf16.msrb.mxu0 %v4747_v62  ;;  %v6363_v57 = vld [vmem:[#allocation2 + $0x6d4] sm:$0xf0]  ;;  %v4972_v62 = vld [vmem:[#allocation2 + $0x6d8] sm:$0xf0]  ;;  %v6377_v44 = vld [vmem:[#allocation2 + $0x744] sm:$0xf0] }
 0x1e6   :  { %1541 = vmatpush.bf16.msrb.mxu2 %v4751_v0  ;;  %v4971_v63 = vor.u32 %v6363_v57, %v4970_v56  ;;  %v4975_v0 = vor.u32 %v6362_v59, %v4972_v62  ;;  %v4948_v56 = vld [vmem:[#allocation2 + $0x6a8] sm:$0xf0]  ;;  %v4866_v59 = vld [vmem:[#allocation2 + $0x600] sm:$0xf] }
 0x1e7   :  { %1527 = vmatpush.bf16.msrb.mxu1 %v4819_v3  ;;  %v4903_v3 = vor.u32 %v6344_v60, %v4900_v61  ;;  %v6337_v60 = vld [vmem:[#allocation2 + $0x604] sm:$0xf0]  ;;  %v6336_v61 = vld [vmem:[#allocation2 + $0x604] sm:$0xf] }
 0x1e8   :  { %v4867_v62 = vor.u32 %v6337_v60, %v4866_v59  ;;  %v6375_v59 = vld [vmem:[#allocation2 + $0x734] sm:$0xf0] }
 0x1e9   :  { %1553 = vmatpush.bf16.msrb.mxu3 %v4823_v6  ;;  %1516 = vmatpush.bf16.msrb.mxu0 %v4739_v10  ;;  %v6793_v6 = vld [vmem:[#allocation5] sm:$0xff]  ;;  %v4891_v10 = vor.u32 %v6343_v5, %v4890_v4  ;;  %v4940_v5 = vld [vmem:[#allocation2 + $0x698] sm:$0xf0] }
 0x1ea   :  { %1542 = vmatpush.bf16.msrb.mxu2 %v4743_v12  ;;  %v1096_v7 = vperm.slane %v6793_v6, 4  ;;  %v1347_v60 = vperm.slane %v6793_v6, 5 }
 0x1ed   :  { %1554 = vmatpush.bf16.msrb.mxu3 %v4815_v18 }
 0x1f1   :  { %1555 = vmatpush.bf16.msrb.mxu3 %v4807_v24 }
 0x247   :  { %v1016_v16 = vpop.f32.mrf.mxu0 }
 0x248   :  { %v1017_v25 = vadd.f32 %v1016_v16, %v845_v20  ;;  %v4811_v16 = vor.u32 %v6323_v14, %v4810_v13  ;;  %v6321_v20 = vld [vmem:[#allocation2 + $0x584] sm:$0xf0] }
 0x249   :  { %v4803_v22 = vor.u32 %v6321_v20, %v4802_v19 }
 0x24a   :  { %1528 = vmatpush.bf16.msrb.mxu1 %v4811_v16  ;;  %v6796_v16 = vld [vmem:[#allocation5 + $0x8] sm:$0xff] }
 0x24b   :  { %v1097_v17 = vperm.slane %v6796_v16, 4 }
 0x24d   :  { %v1029_v26 = vpop.f32.mrf.mxu1  ;;  %v1042_v27 = vpop.f32.mrf.mxu2 }
 0x24e   :  { %v1030_v28 = vadd.f32 %v1029_v26, %v1017_v25  ;;  %v1043_v43 = vadd.f32 %v1042_v27, %v846_v29  ;;  %1529 = vmatpush.bf16.msrb.mxu1 %v4803_v22  ;;  %v4922_v25 = vld [vmem:[#allocation2 + $0x670] sm:$0xf]  ;;  %v6351_v26 = vld [vmem:[#allocation2 + $0x674] sm:$0xf0]  ;;  %v6350_v27 = vld [vmem:[#allocation2 + $0x674] sm:$0xf] }
 0x24f   :  { %v1018_v30 = vpop.f32.mrf.mxu0  ;;  %v4924_v29 = vld [vmem:[#allocation2 + $0x678] sm:$0xf0] }
 0x250   :  { %v1059_v31 = vmax.f32 %v1030_v28, 0.0  ;;  %v4923_v28 = vor.u32 %v6351_v26, %v4922_v25  ;;  %v4914_v30 = vld [vmem:[#allocation2 + $0x660] sm:$0xf] }
 0x252   :  { %v1061_v32 = vpack.c.bf16 %v1059_v31, %v1059_v31  ;;  %v6349_v31 = vld [vmem:[#allocation2 + $0x664] sm:$0xf0] }
 0x253   :  { %v1055_v33 = vpop.f32.mrf.mxu3 }
 0x254   :  { %v1056_v34 = vadd.f32 %v1055_v33, %v1043_v43  ;;  %1266 = vmatmul.bf16.vlgmr.msra.gmra.mxu0 %v1061_v32  ;;  %1292 = vmatmul.bf16.vlgmr.msra.gmra.mxu2 %v1061_v32  ;;  %v4927_v32 = vor.u32 %v6350_v27, %v4924_v29  ;;  %v6348_v43 = vld [vmem:[#allocation2 + $0x664] sm:$0xf]  ;;  %v4916_v33 = vld [vmem:[#allocation2 + $0x668] sm:$0xf0]  ;;  %v4962_v29 = vld [vmem:[#allocation2 + $0x6c0] sm:$0xf] }
 0x255   :  { %v1031_v35 = vpop.f32.mrf.mxu1  ;;  %v1044_v36 = vpop.f32.mrf.mxu2  ;;  %1760 = vmatpush.bf16.msra.mxu0 %v4923_v28 }
 0x256   :  { %v1060_v37 = vmax.f32 %v1056_v34, 0.0  ;;  %v4986_v34 = vld [vmem:[#allocation2 + $0x6f0] sm:$0xf]  ;;  %v4915_v35 = vor.u32 %v6349_v31, %v4914_v30  ;;  %v6367_v36 = vld [vmem:[#allocation2 + $0x6f4] sm:$0xf0]  ;;  %1786 = vmatpush.bf16.msra.mxu2 %v4927_v32 }
 0x257   :  { %v4987_v40 = vor.u32 %v6367_v36, %v4986_v34  ;;  %v6361_v30 = vld [vmem:[#allocation2 + $0x6c4] sm:$0xf0]  ;;  %v6360_v31 = vld [vmem:[#allocation2 + $0x6c4] sm:$0xf]  ;;  %v4882_v34 = vld [vmem:[#allocation2 + $0x620] sm:$0xf] }
 0x258   :  { %v1062_v38 = vpack.c.bf16 %v1060_v37, %v1060_v37  ;;  %v6366_v37 = vld [vmem:[#allocation2 + $0x6f4] sm:$0xf]  ;;  %v4963_v32 = vor.u32 %v6361_v30, %v4962_v29  ;;  %v6340_v36 = vld [vmem:[#allocation2 + $0x624] sm:$0xf]  ;;  %v5116_v29 = vld [vmem:[#allocation2 + $0x7f8] sm:$0xf0] }
 0x259   :  { %1761 = vmatpush.bf16.msra.mxu0 %v4915_v35  ;;  %v6341_v35 = vld [vmem:[#allocation2 + $0x624] sm:$0xf0] }
 0x25a   :  { %1279 = vmatmul.bf16.vlgmr.msra.gmra.mxu1 %v1062_v38  ;;  %1305 = vmatmul.bf16.vlgmr.msra.gmra.mxu3 %v1062_v38  ;;  %v4988_v38 = vld [vmem:[#allocation2 + $0x6f8] sm:$0xf0] }
 0x25b   :  { %v1057_v39 = vpop.f32.mrf.mxu3  ;;  %v4991_v41 = vor.u32 %v6366_v37, %v4988_v38  ;;  %1773 = vmatpush.bf16.msra.mxu1 %v4987_v40  ;;  %v4883_v37 = vor.u32 %v6341_v35, %v4882_v34  ;;  %v4884_v38 = vld [vmem:[#allocation2 + $0x628] sm:$0xf0]  ;;  %v6359_v40 = vld [vmem:[#allocation2 + $0x6b4] sm:$0xf0]  ;;  %v6378_v34 = vld [vmem:[#allocation2 + $0x754] sm:$0xf] }
 0x25c   :  { %v4919_v39 = vor.u32 %v6348_v43, %v4916_v33  ;;  %v4964_v43 = vld [vmem:[#allocation2 + $0x6c8] sm:$0xf0]  ;;  %v5036_v35 = vld [vmem:[#allocation2 + $0x758] sm:$0xf0] }
 0x25d   :  { %1799 = vmatpush.bf16.msra.mxu3 %v4991_v41  ;;  %1762 = vmatpush.bf16.msra.mxu0 %v4907_v51  ;;  %v4967_v33 = vor.u32 %v6360_v31, %v4964_v43  ;;  %v4887_v41 = vor.u32 %v6340_v36, %v4884_v38  ;;  %v5034_v43 = vld [vmem:[#allocation2 + $0x750] sm:$0xf]  ;;  %v5106_v36 = vld [vmem:[#allocation2 + $0x7e0] sm:$0xf] }
 0x25e   :  { %1787 = vmatpush.bf16.msra.mxu2 %v4919_v39  ;;  %v4954_v39 = vld [vmem:[#allocation2 + $0x6b0] sm:$0xf] }
 0x25f   :  { %1774 = vmatpush.bf16.msra.mxu1 %v4979_v48  ;;  %v4955_v58 = vor.u32 %v6359_v40, %v4954_v39  ;;  %v6338_v48 = vld [vmem:[#allocation2 + $0x614] sm:$0xf]  ;;  %v6396_v39 = vld [vmem:[#allocation2 + $0x7e4] sm:$0xf]  ;;  %v5108_v40 = vld [vmem:[#allocation2 + $0x7e8] sm:$0xf0] }
 0x260   :  { %v4879_v51 = vor.u32 %v6338_v48, %v4876_v50  ;;  %v6394_v48 = vld [vmem:[#allocation2 + $0x7d4] sm:$0xf]  ;;  %v5028_v50 = vld [vmem:[#allocation2 + $0x748] sm:$0xf0] }
 0x261   :  { %1800 = vmatpush.bf16.msra.mxu3 %v4983_v52  ;;  %1763 = vmatpush.bf16.msra.mxu0 %v4899_v1  ;;  %v4946_v52 = vld [vmem:[#allocation2 + $0x6a0] sm:$0xf]  ;;  %v4938_v1 = vld [vmem:[#allocation2 + $0x690] sm:$0xf] }
 0x262   :  { %1788 = vmatpush.bf16.msra.mxu2 %v4911_v55  ;;  %v4947_v54 = vor.u32 %v6357_v53, %v4946_v52  ;;  %v6356_v55 = vld [vmem:[#allocation2 + $0x6a4] sm:$0xf]  ;;  %v5099_v52 = vor.u32 %v6395_v47, %v5098_v46  ;;  %v5076_v46 = vld [vmem:[#allocation2 + $0x7a8] sm:$0xf0] }
 0x263   :  { %1775 = vmatpush.bf16.msra.mxu1 %v4971_v63  ;;  %v4951_v57 = vor.u32 %v6356_v55, %v4948_v56  ;;  %v4868_v63 = vld [vmem:[#allocation2 + $0x608] sm:$0xf0] }
 0x265   :  { %1801 = vmatpush.bf16.msra.mxu3 %v4975_v0  ;;  %1764 = vmatpush.bf16.msra.mxu0 %v4891_v10  ;;  %v4871_v0 = vor.u32 %v6336_v61, %v4868_v63  ;;  %v6352_v10 = vld [vmem:[#allocation2 + $0x684] sm:$0xf]  ;;  %v6374_v61 = vld [vmem:[#allocation2 + $0x734] sm:$0xf] }
 0x266   :  { %1789 = vmatpush.bf16.msra.mxu2 %v4903_v3  ;;  %v6354_v3 = vld [vmem:[#allocation2 + $0x694] sm:$0xf] }
 0x267   :  { %1776 = vmatpush.bf16.msra.mxu1 %v4963_v32 }
 0x269   :  { %1802 = vmatpush.bf16.msra.mxu3 %v4967_v33  ;;  %1765 = vmatpush.bf16.msra.mxu0 %v4883_v37  ;;  %v6379_v33 = vld [vmem:[#allocation2 + $0x754] sm:$0xf0]  ;;  %v6397_v37 = vld [vmem:[#allocation2 + $0x7e4] sm:$0xf0] }
 0x26a   :  { %1790 = vmatpush.bf16.msra.mxu2 %v4895_v11  ;;  %v4931_v11 = vor.u32 %v6353_v9, %v4930_v8  ;;  %v5107_v38 = vor.u32 %v6397_v37, %v5106_v36  ;;  %v5002_v36 = vld [vmem:[#allocation2 + $0x710] sm:$0xf]  ;;  %v6371_v37 = vld [vmem:[#allocation2 + $0x714] sm:$0xf0] }
 0x26b   :  { %1777 = vmatpush.bf16.msra.mxu1 %v4955_v58  ;;  %v5111_v58 = vor.u32 %v6396_v39, %v5108_v40  ;;  %v5003_v39 = vor.u32 %v6371_v37, %v5002_v36  ;;  %v5004_v40 = vld [vmem:[#allocation2 + $0x718] sm:$0xf0]  ;;  %v5226_v36 = vld [vmem:[#allocation2 + $0x8d0] sm:$0xf]  ;;  %v6427_v37 = vld [vmem:[#allocation2 + $0x8d4] sm:$0xf0] }
 0x26d   :  { %1803 = vmatpush.bf16.msra.mxu3 %v4959_v45  ;;  %1766 = vmatpush.bf16.msra.mxu0 %v4875_v49  ;;  %v5039_v45 = vor.u32 %v6378_v34, %v5036_v35  ;;  %v6376_v49 = vld [vmem:[#allocation2 + $0x744] sm:$0xf]  ;;  %v5084_v34 = vld [vmem:[#allocation2 + $0x7b8] sm:$0xf0] }
 0x26e   :  { %1791 = vmatpush.bf16.msra.mxu2 %v4887_v41  ;;  %v5035_v41 = vor.u32 %v6379_v33, %v5034_v43  ;;  %v5031_v56 = vor.u32 %v6376_v49, %v5028_v50  ;;  %v6390_v33 = vld [vmem:[#allocation2 + $0x7b4] sm:$0xf]  ;;  %v6369_v49 = vld [vmem:[#allocation2 + $0x704] sm:$0xf0]  ;;  %v6368_v50 = vld [vmem:[#allocation2 + $0x704] sm:$0xf] }
 0x26f   :  { %1778 = vmatpush.bf16.msra.mxu1 %v4947_v54  ;;  %v5027_v54 = vor.u32 %v6377_v44, %v5026_v42  ;;  %v5087_v35 = vor.u32 %v6390_v33, %v5084_v34  ;;  %v6389_v42 = vld [vmem:[#allocation2 + $0x7a4] sm:$0xf0]  ;;  %v5154_v33 = vld [vmem:[#allocation2 + $0x840] sm:$0xf] }
 0x270   :  { %v6409_v34 = vld [vmem:[#allocation2 + $0x844] sm:$0xf0] }
 0x271   :  { %1804 = vmatpush.bf16.msra.mxu3 %v4951_v57  ;;  %1767 = vmatpush.bf16.msra.mxu0 %v4867_v62  ;;  %v5018_v57 = vld [vmem:[#allocation2 + $0x730] sm:$0xf]  ;;  %v5020_v62 = vld [vmem:[#allocation2 + $0x738] sm:$0xf0] }
 0x272   :  { %1792 = vmatpush.bf16.msra.mxu2 %v4879_v51  ;;  %v5100_v51 = vld [vmem:[#allocation2 + $0x7d8] sm:$0xf0]  ;;  %v5019_v63 = vor.u32 %v6375_v59, %v5018_v57 }
 0x273   :  { %v5103_v53 = vor.u32 %v6394_v48, %v5100_v51  ;;  %v4994_v48 = vld [vmem:[#allocation2 + $0x700] sm:$0xf]  ;;  %v5068_v59 = vld [vmem:[#allocation2 + $0x798] sm:$0xf0] }
 0x274   :  { %v4995_v51 = vor.u32 %v6369_v49, %v4994_v48  ;;  %v6407_v48 = vld [vmem:[#allocation2 + $0x834] sm:$0xf0]  ;;  %v1598_v49 = vperm.slane %v6793_v6, 6 }
 0x276   :  { %1793 = vmatpush.bf16.msra.mxu2 %v4871_v0  ;;  %v5023_v0 = vor.u32 %v6374_v61, %v5020_v62  ;;  %v5058_v61 = vld [vmem:[#allocation2 + $0x780] sm:$0xf]  ;;  %v6385_v62 = vld [vmem:[#allocation2 + $0x784] sm:$0xf0] }
 0x2d1   :  { %v1267_v2 = vpop.f32.mrf.mxu0 }
 0x2d2   :  { %v1268_v12 = vadd.f32 %v1267_v2, %v1096_v7  ;;  %v6355_v2 = vld [vmem:[#allocation2 + $0x694] sm:$0xf0]  ;;  %v4943_v7 = vor.u32 %v6354_v3, %v4940_v5  ;;  %v1348_v5 = vperm.slane %v6796_v16, 5 }
 0x2d3   :  { %v4939_v4 = vor.u32 %v6355_v2, %v4938_v1 }
 0x2d4   :  { %1805 = vmatpush.bf16.msra.mxu3 %v4943_v7 }
 0x2d5   :  { %1779 = vmatpush.bf16.msra.mxu1 %v4939_v4 }
 0x2d7   :  { %v1280_v13 = vpop.f32.mrf.mxu1  ;;  %v1293_v14 = vpop.f32.mrf.mxu2 }
 0x2d8   :  { %v1281_v15 = vadd.f32 %v1280_v13, %v1268_v12  ;;  %v1294_v21 = vadd.f32 %v1293_v14, %v1097_v17  ;;  %v4932_v12 = vld [vmem:[#allocation2 + $0x688] sm:$0xf0]  ;;  %v5050_v14 = vld [vmem:[#allocation2 + $0x770] sm:$0xf]  ;;  %v6382_v17 = vld [vmem:[#allocation2 + $0x774] sm:$0xf] }
 0x2d9   :  { %v1269_v18 = vpop.f32.mrf.mxu0  ;;  %v4935_v13 = vor.u32 %v6352_v10, %v4932_v12  ;;  %1780 = vmatpush.bf16.msra.mxu1 %v4931_v11 }
 0x2da   :  { %v1310_v19 = vmax.f32 %v1281_v15, 0.0  ;;  %v6383_v15 = vld [vmem:[#allocation2 + $0x774] sm:$0xf0] }
 0x2db   :  { %1806 = vmatpush.bf16.msra.mxu3 %v4935_v13  ;;  %v5051_v18 = vor.u32 %v6383_v15, %v5050_v14 }
 0x2dc   :  { %v1312_v20 = vpack.c.bf16 %v1310_v19, %v1310_v19  ;;  %v5052_v19 = vld [vmem:[#allocation2 + $0x778] sm:$0xf0] }
 0x2dd   :  { %v1306_v22 = vpop.f32.mrf.mxu3 }
 0x2de   :  { %v1307_v23 = vadd.f32 %v1306_v22, %v1294_v21  ;;  %1517 = vmatmul.bf16.vlgmr.msrb.gmra.mxu0 %v1312_v20  ;;  %1543 = vmatmul.bf16.vlgmr.msrb.gmra.mxu2 %v1312_v20  ;;  %v5042_v20 = vld [vmem:[#allocation2 + $0x760] sm:$0xf]  ;;  %v6381_v21 = vld [vmem:[#allocation2 + $0x764] sm:$0xf0]  ;;  %v5055_v22 = vor.u32 %v6382_v17, %v5052_v19 }
 0x2df   :  { %v1282_v24 = vpop.f32.mrf.mxu1  ;;  %v1295_v25 = vpop.f32.mrf.mxu2  ;;  %2011 = vmatpush.bf16.msrb.mxu0 %v5051_v18  ;;  %v5090_v19 = vld [vmem:[#allocation2 + $0x7c0] sm:$0xf] }
 0x2e0   :  { %v1311_v26 = vmax.f32 %v1307_v23, 0.0  ;;  %v6380_v23 = vld [vmem:[#allocation2 + $0x764] sm:$0xf]  ;;  %v5044_v24 = vld [vmem:[#allocation2 + $0x768] sm:$0xf0]  ;;  %2037 = vmatpush.bf16.msrb.mxu2 %v5055_v22 }
 0x2e1   :  { %v5114_v25 = vld [vmem:[#allocation2 + $0x7f0] sm:$0xf]  ;;  %v5047_v30 = vor.u32 %v6380_v23, %v5044_v24  ;;  %v5092_v23 = vld [vmem:[#allocation2 + $0x7c8] sm:$0xf0] }
 0x2e2   :  { %v1313_v27 = vpack.c.bf16 %v1311_v26, %v1311_v26  ;;  %v5043_v26 = vor.u32 %v6381_v21, %v5042_v20  ;;  %v6393_v20 = vld [vmem:[#allocation2 + $0x7c4] sm:$0xf0]  ;;  %v6392_v21 = vld [vmem:[#allocation2 + $0x7c4] sm:$0xf] }
 0x2e3   :  { %v5091_v22 = vor.u32 %v6393_v20, %v5090_v19  ;;  %v5095_v24 = vor.u32 %v6392_v21, %v5092_v23  ;;  %v5244_v19 = vld [vmem:[#allocation2 + $0x8f8] sm:$0xf0]  ;;  %v5162_v23 = vld [vmem:[#allocation2 + $0x850] sm:$0xf] }
 0x2e4   :  { %1530 = vmatmul.bf16.vlgmr.msrb.gmra.mxu1 %v1313_v27  ;;  %1556 = vmatmul.bf16.vlgmr.msrb.gmra.mxu3 %v1313_v27  ;;  %v6399_v27 = vld [vmem:[#allocation2 + $0x7f4] sm:$0xf0] }
 0x2e5   :  { %v1308_v28 = vpop.f32.mrf.mxu3  ;;  %v5115_v31 = vor.u32 %v6399_v27, %v5114_v25  ;;  %2012 = vmatpush.bf16.msrb.mxu0 %v5043_v26  ;;  %2038 = vmatpush.bf16.msrb.mxu2 %v5047_v30  ;;  %v5010_v25 = vld [vmem:[#allocation2 + $0x720] sm:$0xf]  ;;  %v6373_v26 = vld [vmem:[#allocation2 + $0x724] sm:$0xf0]  ;;  %v6372_v27 = vld [vmem:[#allocation2 + $0x724] sm:$0xf] }
 0x2e6   :  { %v6398_v28 = vld [vmem:[#allocation2 + $0x7f4] sm:$0xf]  ;;  %v5082_v30 = vld [vmem:[#allocation2 + $0x7b0] sm:$0xf] }
 0x2e7   :  { %v5119_v32 = vor.u32 %v6398_v28, %v5116_v29  ;;  %2024 = vmatpush.bf16.msrb.mxu1 %v5115_v31  ;;  %v5011_v28 = vor.u32 %v6373_v26, %v5010_v25  ;;  %v5012_v29 = vld [vmem:[#allocation2 + $0x728] sm:$0xf0]  ;;  %v6391_v31 = vld [vmem:[#allocation2 + $0x7b4] sm:$0xf0]  ;;  %v6410_v25 = vld [vmem:[#allocation2 + $0x854] sm:$0xf] }
 0x2e8   :  { %v5083_v43 = vor.u32 %v6391_v31, %v5082_v30  ;;  %v5164_v26 = vld [vmem:[#allocation2 + $0x858] sm:$0xf0]  ;;  %v6428_v30 = vld [vmem:[#allocation2 + $0x8e4] sm:$0xf]  ;;  %v5236_v31 = vld [vmem:[#allocation2 + $0x8e8] sm:$0xf0] }
 0x2e9   :  { %2050 = vmatpush.bf16.msrb.mxu3 %v5119_v32  ;;  %2013 = vmatpush.bf16.msrb.mxu0 %v5035_v41  ;;  %v5015_v32 = vor.u32 %v6372_v27, %v5012_v29  ;;  %v5234_v27 = vld [vmem:[#allocation2 + $0x8e0] sm:$0xf] }
 0x2ea   :  { %2039 = vmatpush.bf16.msrb.mxu2 %v5039_v45  ;;  %v6388_v45 = vld [vmem:[#allocation2 + $0x7a4] sm:$0xf] }
 0x2eb   :  { %2025 = vmatpush.bf16.msrb.mxu1 %v5107_v38  ;;  %v6370_v38 = vld [vmem:[#allocation2 + $0x714] sm:$0xf]  ;;  %v5079_v47 = vor.u32 %v6388_v45, %v5076_v46 }
 0x2ec   :  { %v5007_v41 = vor.u32 %v6370_v38, %v5004_v40  ;;  %v6426_v38 = vld [vmem:[#allocation2 + $0x8d4] sm:$0xf]  ;;  %v5156_v40 = vld [vmem:[#allocation2 + $0x848] sm:$0xf0] }
 0x2ed   :  { %2051 = vmatpush.bf16.msrb.mxu3 %v5111_v58  ;;  %2014 = vmatpush.bf16.msrb.mxu0 %v5027_v54  ;;  %v5074_v58 = vld [vmem:[#allocation2 + $0x7a0] sm:$0xf]  ;;  %v5066_v54 = vld [vmem:[#allocation2 + $0x790] sm:$0xf] }
 0x2ee   :  { %2040 = vmatpush.bf16.msrb.mxu2 %v5031_v56  ;;  %v5075_v44 = vor.u32 %v6389_v42, %v5074_v58  ;;  %v6386_v56 = vld [vmem:[#allocation2 + $0x794] sm:$0xf]  ;;  %v5227_v58 = vor.u32 %v6427_v37, %v5226_v36  ;;  %v5204_v36 = vld [vmem:[#allocation2 + $0x8a8] sm:$0xf0] }
 0x2ef   :  { %2026 = vmatpush.bf16.msrb.mxu1 %v5099_v52  ;;  %v4996_v52 = vld [vmem:[#allocation2 + $0x708] sm:$0xf0] }
 0x2f1   :  { %2052 = vmatpush.bf16.msrb.mxu3 %v5103_v53  ;;  %2015 = vmatpush.bf16.msrb.mxu0 %v5019_v63  ;;  %v4999_v53 = vor.u32 %v6368_v50, %v4996_v52  ;;  %v6384_v63 = vld [vmem:[#allocation2 + $0x784] sm:$0xf]  ;;  %v6406_v50 = vld [vmem:[#allocation2 + $0x834] sm:$0xf] }
 0x2f2   :  { %2041 = vmatpush.bf16.msrb.mxu2 %v5023_v0  ;;  %v5059_v0 = vor.u32 %v6385_v62, %v5058_v61 }
 0x2f3   :  { %2027 = vmatpush.bf16.msrb.mxu1 %v5091_v22 }
 0x2f5   :  { %2053 = vmatpush.bf16.msrb.mxu3 %v5095_v24  ;;  %2016 = vmatpush.bf16.msrb.mxu0 %v5011_v28  ;;  %v6411_v24 = vld [vmem:[#allocation2 + $0x854] sm:$0xf0]  ;;  %v6429_v28 = vld [vmem:[#allocation2 + $0x8e4] sm:$0xf0] }
 0x2f6   :  { %2042 = vmatpush.bf16.msrb.mxu2 %v5015_v32  ;;  %v5235_v29 = vor.u32 %v6429_v28, %v5234_v27  ;;  %v5163_v32 = vor.u32 %v6411_v24, %v5162_v23  ;;  %v6422_v24 = vld [vmem:[#allocation2 + $0x8b4] sm:$0xf]  ;;  %v5130_v27 = vld [vmem:[#allocation2 + $0x810] sm:$0xf]  ;;  %v6403_v28 = vld [vmem:[#allocation2 + $0x814] sm:$0xf0] }
 0x2f7   :  { %2028 = vmatpush.bf16.msrb.mxu1 %v5083_v43  ;;  %v5239_v43 = vor.u32 %v6428_v30, %v5236_v31  ;;  %v5131_v30 = vor.u32 %v6403_v28, %v5130_v27  ;;  %v5132_v31 = vld [vmem:[#allocation2 + $0x818] sm:$0xf0]  ;;  %v5354_v27 = vld [vmem:[#allocation2 + $0x9d0] sm:$0xf]  ;;  %v6459_v28 = vld [vmem:[#allocation2 + $0x9d4] sm:$0xf0] }
 0x2f9   :  { %2054 = vmatpush.bf16.msrb.mxu3 %v5087_v35  ;;  %2017 = vmatpush.bf16.msrb.mxu0 %v5003_v39  ;;  %v5167_v35 = vor.u32 %v6410_v25, %v5164_v26  ;;  %v6408_v39 = vld [vmem:[#allocation2 + $0x844] sm:$0xf]  ;;  %v5212_v25 = vld [vmem:[#allocation2 + $0x8b8] sm:$0xf0] }
 0x2fa   :  { %2043 = vmatpush.bf16.msrb.mxu2 %v5007_v41  ;;  %v5228_v41 = vld [vmem:[#allocation2 + $0x8d8] sm:$0xf0]  ;;  %v5159_v46 = vor.u32 %v6408_v39, %v5156_v40  ;;  %v5215_v26 = vor.u32 %v6422_v24, %v5212_v25  ;;  %v6401_v39 = vld [vmem:[#allocation2 + $0x804] sm:$0xf0]  ;;  %v6400_v40 = vld [vmem:[#allocation2 + $0x804] sm:$0xf] }
 0x2fb   :  { %2029 = vmatpush.bf16.msrb.mxu1 %v5075_v44  ;;  %v5231_v42 = vor.u32 %v6426_v38, %v5228_v41  ;;  %v5155_v44 = vor.u32 %v6409_v34, %v5154_v33  ;;  %v6421_v33 = vld [vmem:[#allocation2 + $0x8a4] sm:$0xf0]  ;;  %v5122_v38 = vld [vmem:[#allocation2 + $0x800] sm:$0xf] }
 0x2fc   :  { %v5123_v41 = vor.u32 %v6401_v39, %v5122_v38  ;;  %v5282_v24 = vld [vmem:[#allocation2 + $0x940] sm:$0xf]  ;;  %v6441_v25 = vld [vmem:[#allocation2 + $0x944] sm:$0xf0]  ;;  %v6439_v38 = vld [vmem:[#allocation2 + $0x934] sm:$0xf0] }
 0x2fd   :  { %2055 = vmatpush.bf16.msrb.mxu3 %v5079_v47  ;;  %2018 = vmatpush.bf16.msrb.mxu0 %v4995_v51  ;;  %v5146_v47 = vld [vmem:[#allocation2 + $0x830] sm:$0xf]  ;;  %v5148_v51 = vld [vmem:[#allocation2 + $0x838] sm:$0xf0]  ;;  %v1849_v39 = vperm.slane %v6793_v6, 7 }
 0x2fe   :  { %2044 = vmatpush.bf16.msrb.mxu2 %v4999_v53  ;;  %v5147_v52 = vor.u32 %v6407_v48, %v5146_v47  ;;  %v5151_v53 = vor.u32 %v6406_v50, %v5148_v51  ;;  %v5196_v48 = vld [vmem:[#allocation2 + $0x898] sm:$0xf0]  ;;  %v5186_v50 = vld [vmem:[#allocation2 + $0x880] sm:$0xf]  ;;  %v6417_v51 = vld [vmem:[#allocation2 + $0x884] sm:$0xf0] }
 0x35b   :  { %v1518_v55 = vpop.f32.mrf.mxu0 }
 0x35c   :  { %v1519_v1 = vadd.f32 %v1518_v55, %v1347_v60  ;;  %v6387_v55 = vld [vmem:[#allocation2 + $0x794] sm:$0xf0]  ;;  %v5071_v60 = vor.u32 %v6386_v56, %v5068_v59  ;;  %v1599_v59 = vperm.slane %v6796_v16, 6 }
 0x35d   :  { %v5067_v57 = vor.u32 %v6387_v55, %v5066_v54 }
 0x35e   :  { %2056 = vmatpush.bf16.msrb.mxu3 %v5071_v60 }
 0x35f   :  { %2030 = vmatpush.bf16.msrb.mxu1 %v5067_v57 }
 0x361   :  { %v1531_v2 = vpop.f32.mrf.mxu1  ;;  %v1544_v3 = vpop.f32.mrf.mxu2 }
 0x362   :  { %v1532_v4 = vadd.f32 %v1531_v2, %v1519_v1  ;;  %v1545_v10 = vadd.f32 %v1544_v3, %v1348_v5  ;;  %v5060_v1 = vld [vmem:[#allocation2 + $0x788] sm:$0xf0]  ;;  %v5178_v3 = vld [vmem:[#allocation2 + $0x870] sm:$0xf]  ;;  %v6414_v5 = vld [vmem:[#allocation2 + $0x874] sm:$0xf] }
 0x363   :  { %v1520_v7 = vpop.f32.mrf.mxu0  ;;  %v5063_v2 = vor.u32 %v6384_v63, %v5060_v1  ;;  %2031 = vmatpush.bf16.msrb.mxu1 %v5059_v0 }
 0x364   :  { %v1561_v8 = vmax.f32 %v1532_v4, 0.0  ;;  %v6415_v4 = vld [vmem:[#allocation2 + $0x874] sm:$0xf0] }
 0x365   :  { %2057 = vmatpush.bf16.msrb.mxu3 %v5063_v2  ;;  %v5179_v7 = vor.u32 %v6415_v4, %v5178_v3 }
 0x366   :  { %v1563_v9 = vpack.c.bf16 %v1561_v8, %v1561_v8  ;;  %v5180_v8 = vld [vmem:[#allocation2 + $0x878] sm:$0xf0] }
 0x367   :  { %v1557_v11 = vpop.f32.mrf.mxu3 }
 0x368   :  { %v1558_v12 = vadd.f32 %v1557_v11, %v1545_v10  ;;  %1768 = vmatmul.bf16.vlgmr.msra.gmra.mxu0 %v1563_v9  ;;  %1794 = vmatmul.bf16.vlgmr.msra.gmra.mxu2 %v1563_v9  ;;  %v5170_v9 = vld [vmem:[#allocation2 + $0x860] sm:$0xf]  ;;  %v6413_v10 = vld [vmem:[#allocation2 + $0x864] sm:$0xf0]  ;;  %v5183_v11 = vor.u32 %v6414_v5, %v5180_v8 }
 0x369   :  { %v1533_v13 = vpop.f32.mrf.mxu1  ;;  %v1546_v14 = vpop.f32.mrf.mxu2  ;;  %2262 = vmatpush.bf16.msra.mxu0 %v5179_v7  ;;  %v5218_v8 = vld [vmem:[#allocation2 + $0x8c0] sm:$0xf] }
 0x36a   :  { %v1562_v15 = vmax.f32 %v1558_v12, 0.0  ;;  %v6412_v12 = vld [vmem:[#allocation2 + $0x864] sm:$0xf]  ;;  %v5172_v13 = vld [vmem:[#allocation2 + $0x868] sm:$0xf0]  ;;  %2288 = vmatpush.bf16.msra.mxu2 %v5183_v11 }
 0x36b   :  { %v5242_v14 = vld [vmem:[#allocation2 + $0x8f0] sm:$0xf]  ;;  %v5175_v20 = vor.u32 %v6412_v12, %v5172_v13  ;;  %v5220_v12 = vld [vmem:[#allocation2 + $0x8c8] sm:$0xf0] }
 0x36c   :  { %v1564_v17 = vpack.c.bf16 %v1562_v15, %v1562_v15  ;;  %v5171_v15 = vor.u32 %v6413_v10, %v5170_v9  ;;  %v6425_v9 = vld [vmem:[#allocation2 + $0x8c4] sm:$0xf0]  ;;  %v6424_v10 = vld [vmem:[#allocation2 + $0x8c4] sm:$0xf] }
 0x36d   :  { %v5219_v11 = vor.u32 %v6425_v9, %v5218_v8  ;;  %v5223_v13 = vor.u32 %v6424_v10, %v5220_v12  ;;  %v5372_v8 = vld [vmem:[#allocation2 + $0x9f8] sm:$0xf0]  ;;  %v5290_v12 = vld [vmem:[#allocation2 + $0x950] sm:$0xf] }
 0x36e   :  { %1781 = vmatmul.bf16.vlgmr.msra.gmra.mxu1 %v1564_v17  ;;  %1807 = vmatmul.bf16.vlgmr.msra.gmra.mxu3 %v1564_v17  ;;  %v6431_v17 = vld [vmem:[#allocation2 + $0x8f4] sm:$0xf0] }
 0x36f   :  { %v1559_v18 = vpop.f32.mrf.mxu3  ;;  %v5243_v21 = vor.u32 %v6431_v17, %v5242_v14  ;;  %2263 = vmatpush.bf16.msra.mxu0 %v5171_v15  ;;  %2289 = vmatpush.bf16.msra.mxu2 %v5175_v20  ;;  %v5138_v14 = vld [vmem:[#allocation2 + $0x820] sm:$0xf]  ;;  %v6405_v15 = vld [vmem:[#allocation2 + $0x824] sm:$0xf0]  ;;  %v6404_v17 = vld [vmem:[#allocation2 + $0x824] sm:$0xf] }
 0x370   :  { %v6430_v18 = vld [vmem:[#allocation2 + $0x8f4] sm:$0xf]  ;;  %v5210_v20 = vld [vmem:[#allocation2 + $0x8b0] sm:$0xf] }
 0x371   :  { %v5247_v22 = vor.u32 %v6430_v18, %v5244_v19  ;;  %2275 = vmatpush.bf16.msra.mxu1 %v5243_v21  ;;  %v5139_v18 = vor.u32 %v6405_v15, %v5138_v14  ;;  %v5140_v19 = vld [vmem:[#allocation2 + $0x828] sm:$0xf0]  ;;  %v6423_v21 = vld [vmem:[#allocation2 + $0x8b4] sm:$0xf0]  ;;  %v6442_v14 = vld [vmem:[#allocation2 + $0x954] sm:$0xf] }
 0x372   :  { %v5211_v23 = vor.u32 %v6423_v21, %v5210_v20  ;;  %v5292_v15 = vld [vmem:[#allocation2 + $0x958] sm:$0xf0]  ;;  %v6460_v20 = vld [vmem:[#allocation2 + $0x9e4] sm:$0xf]  ;;  %v5364_v21 = vld [vmem:[#allocation2 + $0x9e8] sm:$0xf0] }
 0x373   :  { %2301 = vmatpush.bf16.msra.mxu3 %v5247_v22  ;;  %2264 = vmatpush.bf16.msra.mxu0 %v5163_v32  ;;  %v5143_v22 = vor.u32 %v6404_v17, %v5140_v19  ;;  %v5362_v17 = vld [vmem:[#allocation2 + $0x9e0] sm:$0xf] }
 0x374   :  { %2290 = vmatpush.bf16.msra.mxu2 %v5167_v35  ;;  %v6420_v35 = vld [vmem:[#allocation2 + $0x8a4] sm:$0xf] }
 0x375   :  { %2276 = vmatpush.bf16.msra.mxu1 %v5235_v29  ;;  %v6402_v29 = vld [vmem:[#allocation2 + $0x814] sm:$0xf]  ;;  %v5207_v37 = vor.u32 %v6420_v35, %v5204_v36 }
 0x376   :  { %v5135_v32 = vor.u32 %v6402_v29, %v5132_v31  ;;  %v6458_v29 = vld [vmem:[#allocation2 + $0x9d4] sm:$0xf]  ;;  %v5284_v31 = vld [vmem:[#allocation2 + $0x948] sm:$0xf0] }
 0x377   :  { %2302 = vmatpush.bf16.msra.mxu3 %v5239_v43  ;;  %2265 = vmatpush.bf16.msra.mxu0 %v5155_v44  ;;  %v5202_v43 = vld [vmem:[#allocation2 + $0x8a0] sm:$0xf]  ;;  %v5194_v44 = vld [vmem:[#allocation2 + $0x890] sm:$0xf] }
 0x378   :  { %2291 = vmatpush.bf16.msra.mxu2 %v5159_v46  ;;  %v5203_v34 = vor.u32 %v6421_v33, %v5202_v43  ;;  %v6418_v46 = vld [vmem:[#allocation2 + $0x894] sm:$0xf]  ;;  %v5355_v43 = vor.u32 %v6459_v28, %v5354_v27  ;;  %v5250_v27 = vld [vmem:[#allocation2 + $0x900] sm:$0xf]  ;;  %v6433_v28 = vld [vmem:[#allocation2 + $0x904] sm:$0xf0] }
 0x379   :  { %2277 = vmatpush.bf16.msra.mxu1 %v5227_v58  ;;  %v5124_v58 = vld [vmem:[#allocation2 + $0x808] sm:$0xf0] }
 0x37b   :  { %2303 = vmatpush.bf16.msra.mxu3 %v5231_v42  ;;  %2266 = vmatpush.bf16.msra.mxu0 %v5147_v52  ;;  %v5127_v42 = vor.u32 %v6400_v40, %v5124_v58  ;;  %v6416_v52 = vld [vmem:[#allocation2 + $0x884] sm:$0xf]  ;;  %v6438_v40 = vld [vmem:[#allocation2 + $0x934] sm:$0xf] }
 0x37c   :  { %2292 = vmatpush.bf16.msra.mxu2 %v5151_v53  ;;  %v5187_v53 = vor.u32 %v6417_v51, %v5186_v50 }
 0x37d   :  { %2278 = vmatpush.bf16.msra.mxu1 %v5219_v11 }
 0x37f   :  { %2304 = vmatpush.bf16.msra.mxu3 %v5223_v13  ;;  %2267 = vmatpush.bf16.msra.mxu0 %v5139_v18  ;;  %v6443_v13 = vld [vmem:[#allocation2 + $0x954] sm:$0xf0]  ;;  %v6461_v18 = vld [vmem:[#allocation2 + $0x9e4] sm:$0xf0] }
 0x380   :  { %2293 = vmatpush.bf16.msra.mxu2 %v5143_v22  ;;  %v5363_v19 = vor.u32 %v6461_v18, %v5362_v17  ;;  %v5291_v22 = vor.u32 %v6443_v13, %v5290_v12  ;;  %v5340_v12 = vld [vmem:[#allocation2 + $0x9b8] sm:$0xf0]  ;;  %v6434_v17 = vld [vmem:[#allocation2 + $0x914] sm:$0xf] }
 0x381   :  { %2279 = vmatpush.bf16.msra.mxu1 %v5211_v23  ;;  %v5367_v23 = vor.u32 %v6460_v20, %v5364_v21  ;;  %v5330_v21 = vld [vmem:[#allocation2 + $0x9a0] sm:$0xf] }
 0x383   :  { %2305 = vmatpush.bf16.msra.mxu3 %v5215_v26  ;;  %2268 = vmatpush.bf16.msra.mxu0 %v5131_v30  ;;  %v5295_v26 = vor.u32 %v6442_v14, %v5292_v15  ;;  %v6440_v30 = vld [vmem:[#allocation2 + $0x944] sm:$0xf]  ;;  %v5258_v14 = vld [vmem:[#allocation2 + $0x910] sm:$0xf]  ;;  %v6435_v15 = vld [vmem:[#allocation2 + $0x914] sm:$0xf0] }
 0x384   :  { %2294 = vmatpush.bf16.msra.mxu2 %v5135_v32  ;;  %v5356_v32 = vld [vmem:[#allocation2 + $0x9d8] sm:$0xf0]  ;;  %v5287_v36 = vor.u32 %v6440_v30, %v5284_v31  ;;  %v5259_v18 = vor.u32 %v6435_v15, %v5258_v14  ;;  %v5251_v30 = vor.u32 %v6433_v28, %v5250_v27  ;;  %v5252_v31 = vld [vmem:[#allocation2 + $0x908] sm:$0xf0]  ;;  %v6490_v14 = vld [vmem:[#allocation2 + $0xad4] sm:$0xf] }
 0x385   :  { %2280 = vmatpush.bf16.msra.mxu1 %v5203_v34  ;;  %v5359_v33 = vor.u32 %v6458_v29, %v5356_v32  ;;  %v5283_v34 = vor.u32 %v6441_v25, %v5282_v24  ;;  %v6452_v24 = vld [vmem:[#allocation2 + $0x9a4] sm:$0xf]  ;;  %v5332_v25 = vld [vmem:[#allocation2 + $0x9a8] sm:$0xf0]  ;;  %v6470_v28 = vld [vmem:[#allocation2 + $0xa34] sm:$0xf] }
 0x386   :  { %v6432_v29 = vld [vmem:[#allocation2 + $0x904] sm:$0xf] }
 0x387   :  { %2306 = vmatpush.bf16.msra.mxu3 %v5207_v37  ;;  %2269 = vmatpush.bf16.msra.mxu0 %v5123_v41  ;;  %v5274_v37 = vld [vmem:[#allocation2 + $0x930] sm:$0xf]  ;;  %v5276_v41 = vld [vmem:[#allocation2 + $0x938] sm:$0xf0]  ;;  %v5255_v32 = vor.u32 %v6432_v29, %v5252_v31  ;;  %v6472_v15 = vld [vmem:[#allocation2 + $0xa44] sm:$0xf] }
 0x388   :  { %2295 = vmatpush.bf16.msra.mxu2 %v5127_v42  ;;  %v5275_v58 = vor.u32 %v6439_v38, %v5274_v37  ;;  %v5279_v42 = vor.u32 %v6438_v40, %v5276_v41  ;;  %v5314_v38 = vld [vmem:[#allocation2 + $0x980] sm:$0xf]  ;;  %v6448_v40 = vld [vmem:[#allocation2 + $0x984] sm:$0xf]  ;;  %v5404_v29 = vld [vmem:[#allocation2 + $0xa38] sm:$0xf0] }
 0x389   :  { %v6808_v31 = vld [vmem:[#allocation5 + $0x18] sm:$0xff] }
 0x3e5   :  { %v1769_v45 = vpop.f32.mrf.mxu0 }
 0x3e6   :  { %v1770_v54 = vadd.f32 %v1769_v45, %v1598_v49  ;;  %v6419_v45 = vld [vmem:[#allocation2 + $0x894] sm:$0xf0]  ;;  %v5199_v49 = vor.u32 %v6418_v46, %v5196_v48  ;;  %v1850_v48 = vperm.slane %v6796_v16, 7  ;;  %v6456_v16 = vld [vmem:[#allocation2 + $0x9c4] sm:$0xf] }
 0x3e7   :  { %v5195_v47 = vor.u32 %v6419_v45, %v5194_v44 }
 0x3e8   :  { %2307 = vmatpush.bf16.msra.mxu3 %v5199_v49 }
 0x3e9   :  { %2281 = vmatpush.bf16.msra.mxu1 %v5195_v47 }
 0x3eb   :  { %v1782_v55 = vpop.f32.mrf.mxu1  ;;  %v1795_v56 = vpop.f32.mrf.mxu2 }
 0x3ec   :  { %v1783_v57 = vadd.f32 %v1782_v55, %v1770_v54  ;;  %v1796_v63 = vadd.f32 %v1795_v56, %v1599_v59  ;;  %v5188_v54 = vld [vmem:[#allocation2 + $0x888] sm:$0xf0]  ;;  %v5306_v56 = vld [vmem:[#allocation2 + $0x970] sm:$0xf]  ;;  %v6446_v59 = vld [vmem:[#allocation2 + $0x974] sm:$0xf] }
 0x3ed   :  { %v1771_v60 = vpop.f32.mrf.mxu0  ;;  %v5191_v55 = vor.u32 %v6416_v52, %v5188_v54  ;;  %2282 = vmatpush.bf16.msra.mxu1 %v5187_v53 }
 0x3ee   :  { %v1812_v61 = vmax.f32 %v1783_v57, 0.0  ;;  %v6447_v57 = vld [vmem:[#allocation2 + $0x974] sm:$0xf0] }
 0x3ef   :  { %2308 = vmatpush.bf16.msra.mxu3 %v5191_v55  ;;  %v5307_v60 = vor.u32 %v6447_v57, %v5306_v56 }
 0x3f0   :  { %v1814_v62 = vpack.c.bf16 %v1812_v61, %v1812_v61  ;;  %v5308_v61 = vld [vmem:[#allocation2 + $0x978] sm:$0xf0] }
 0x3f1   :  { %v1808_v0 = vpop.f32.mrf.mxu3 }
 0x3f2   :  { %v1809_v1 = vadd.f32 %v1808_v0, %v1796_v63  ;;  %2019 = vmatmul.bf16.vlgmr.msrb.gmra.mxu0 %v1814_v62  ;;  %2045 = vmatmul.bf16.vlgmr.msrb.gmra.mxu2 %v1814_v62  ;;  %v5298_v62 = vld [vmem:[#allocation2 + $0x960] sm:$0xf]  ;;  %v6445_v63 = vld [vmem:[#allocation2 + $0x964] sm:$0xf0]  ;;  %v5311_v0 = vor.u32 %v6446_v59, %v5308_v61 }
 0x3f3   :  { %v1784_v2 = vpop.f32.mrf.mxu1  ;;  %v1797_v3 = vpop.f32.mrf.mxu2  ;;  %2513 = vmatpush.bf16.msrb.mxu0 %v5307_v60  ;;  %v5346_v60 = vld [vmem:[#allocation2 + $0x9c0] sm:$0xf]  ;;  %v6457_v61 = vld [vmem:[#allocation2 + $0x9c4] sm:$0xf0] }
 0x3f4   :  { %v1813_v4 = vmax.f32 %v1809_v1, 0.0  ;;  %v6444_v1 = vld [vmem:[#allocation2 + $0x964] sm:$0xf]  ;;  %v5300_v2 = vld [vmem:[#allocation2 + $0x968] sm:$0xf0]  ;;  %2539 = vmatpush.bf16.msrb.mxu2 %v5311_v0 }
 0x3f5   :  { %v5370_v3 = vld [vmem:[#allocation2 + $0x9f0] sm:$0xf]  ;;  %v5303_v9 = vor.u32 %v6444_v1, %v5300_v2  ;;  %v5266_v1 = vld [vmem:[#allocation2 + $0x920] sm:$0xf]  ;;  %v6437_v2 = vld [vmem:[#allocation2 + $0x924] sm:$0xf0] }
 0x3f6   :  { %v1815_v5 = vpack.c.bf16 %v1813_v4, %v1813_v4  ;;  %v5299_v4 = vor.u32 %v6445_v63, %v5298_v62  ;;  %v5347_v62 = vor.u32 %v6457_v61, %v5346_v60  ;;  %v5348_v63 = vld [vmem:[#allocation2 + $0x9c8] sm:$0xf0] }
 0x3f7   :  { %v5351_v0 = vor.u32 %v6456_v16, %v5348_v63  ;;  %v5418_v16 = vld [vmem:[#allocation2 + $0xa50] sm:$0xf]  ;;  %v6474_v63 = vld [vmem:[#allocation2 + $0xa54] sm:$0xf] }
 0x3f8   :  { %2032 = vmatmul.bf16.vlgmr.msrb.gmra.mxu1 %v1815_v5  ;;  %2058 = vmatmul.bf16.vlgmr.msrb.gmra.mxu3 %v1815_v5  ;;  %v6463_v5 = vld [vmem:[#allocation2 + $0x9f4] sm:$0xf0] }
 0x3f9   :  { %v1810_v7 = vpop.f32.mrf.mxu3  ;;  %v5371_v10 = vor.u32 %v6463_v5, %v5370_v3  ;;  %2514 = vmatpush.bf16.msrb.mxu0 %v5299_v4  ;;  %2540 = vmatpush.bf16.msrb.mxu2 %v5303_v9  ;;  %v6436_v3 = vld [vmem:[#allocation2 + $0x924] sm:$0xf]  ;;  %v5267_v4 = vor.u32 %v6437_v2, %v5266_v1  ;;  %v5268_v5 = vld [vmem:[#allocation2 + $0x928] sm:$0xf0]  ;;  %v5490_v1 = vld [vmem:[#allocation2 + $0xae0] sm:$0xf] }
 0x3fa   :  { %v6462_v7 = vld [vmem:[#allocation2 + $0x9f4] sm:$0xf]  ;;  %v5271_v9 = vor.u32 %v6436_v3, %v5268_v5  ;;  %v6493_v2 = vld [vmem:[#allocation2 + $0xae4] sm:$0xf0]  ;;  %v5492_v5 = vld [vmem:[#allocation2 + $0xae8] sm:$0xf0] }
 0x3fb   :  { %v5375_v11 = vor.u32 %v6462_v7, %v5372_v8  ;;  %2526 = vmatpush.bf16.msrb.mxu1 %v5371_v10  ;;  %v5338_v7 = vld [vmem:[#allocation2 + $0x9b0] sm:$0xf]  ;;  %v6455_v8 = vld [vmem:[#allocation2 + $0x9b4] sm:$0xf0]  ;;  %v5491_v3 = vor.u32 %v6493_v2, %v5490_v1 }
 0x3fc   :  { %v5339_v10 = vor.u32 %v6455_v8, %v5338_v7  ;;  %v5386_v1 = vld [vmem:[#allocation2 + $0xa10] sm:$0xf]  ;;  %v6467_v2 = vld [vmem:[#allocation2 + $0xa14] sm:$0xf0] }
 0x3fd   :  { %2552 = vmatpush.bf16.msrb.mxu3 %v5375_v11  ;;  %2515 = vmatpush.bf16.msrb.mxu0 %v5291_v22  ;;  %v6454_v11 = vld [vmem:[#allocation2 + $0x9b4] sm:$0xf]  ;;  %v6453_v22 = vld [vmem:[#allocation2 + $0x9a4] sm:$0xf0] }
 0x3fe   :  { %2541 = vmatpush.bf16.msrb.mxu2 %v5295_v26  ;;  %v5343_v13 = vor.u32 %v6454_v11, %v5340_v12  ;;  %v5335_v26 = vor.u32 %v6452_v24, %v5332_v25  ;;  %v5482_v12 = vld [vmem:[#allocation2 + $0xad0] sm:$0xf] }
 0x3ff   :  { %2527 = vmatpush.bf16.msrb.mxu1 %v5363_v19  ;;  %v5260_v19 = vld [vmem:[#allocation2 + $0x918] sm:$0xf0]  ;;  %v5402_v25 = vld [vmem:[#allocation2 + $0xa30] sm:$0xf] }
 0x400   :  { %v5263_v20 = vor.u32 %v6434_v17, %v5260_v19  ;;  %v5412_v17 = vld [vmem:[#allocation2 + $0xa48] sm:$0xf0]  ;;  %v6805_v19 = vld [vmem:[#allocation5 + $0x10] sm:$0xff] }
 0x401   :  { %2553 = vmatpush.bf16.msrb.mxu3 %v5367_v23  ;;  %2516 = vmatpush.bf16.msrb.mxu0 %v5283_v34  ;;  %v5331_v23 = vor.u32 %v6453_v22, %v5330_v21  ;;  %v6450_v34 = vld [vmem:[#allocation2 + $0x994] sm:$0xf]  ;;  %v5415_v24 = vor.u32 %v6472_v15, %v5412_v17  ;;  %v2100_v27 = vperm.slane %v6805_v19, 0  ;;  %v6465_v15 = vld [vmem:[#allocation2 + $0xa04] sm:$0xf0] }
 0x402   :  { %2542 = vmatpush.bf16.msrb.mxu2 %v5287_v36  ;;  %v5324_v36 = vld [vmem:[#allocation2 + $0x998] sm:$0xf0]  ;;  %v6464_v17 = vld [vmem:[#allocation2 + $0xa04] sm:$0xf] }
 0x403   :  { %2528 = vmatpush.bf16.msrb.mxu1 %v5355_v43  ;;  %v5322_v43 = vld [vmem:[#allocation2 + $0x990] sm:$0xf]  ;;  %v5327_v37 = vor.u32 %v6450_v34, %v5324_v36  ;;  %v2101_v36 = vperm.slane %v6808_v31, 0 }
 0x405   :  { %2554 = vmatpush.bf16.msrb.mxu3 %v5359_v33  ;;  %2517 = vmatpush.bf16.msrb.mxu0 %v5275_v58  ;;  %v6451_v33 = vld [vmem:[#allocation2 + $0x994] sm:$0xf0]  ;;  %v5316_v58 = vld [vmem:[#allocation2 + $0x988] sm:$0xf0] }
 0x406   :  { %2543 = vmatpush.bf16.msrb.mxu2 %v5279_v42  ;;  %v5319_v42 = vor.u32 %v6448_v40, %v5316_v58 }
 0x407   :  { %2529 = vmatpush.bf16.msrb.mxu1 %v5347_v62  ;;  %v6475_v62 = vld [vmem:[#allocation2 + $0xa54] sm:$0xf0] }
 0x408   :  { %v5419_v7 = vor.u32 %v6475_v62, %v5418_v16  ;;  %v6486_v62 = vld [vmem:[#allocation2 + $0xab4] sm:$0xf] }
 0x409   :  { %2555 = vmatpush.bf16.msrb.mxu3 %v5351_v0  ;;  %2518 = vmatpush.bf16.msrb.mxu0 %v5267_v4  ;;  %v5420_v0 = vld [vmem:[#allocation2 + $0xa58] sm:$0xf0]  ;;  %v6492_v4 = vld [vmem:[#allocation2 + $0xae4] sm:$0xf] }
 0x40a   :  { %2544 = vmatpush.bf16.msrb.mxu2 %v5271_v9  ;;  %v5495_v8 = vor.u32 %v6492_v4, %v5492_v5  ;;  %v5410_v9 = vld [vmem:[#allocation2 + $0xa40] sm:$0xf]  ;;  %v5423_v11 = vor.u32 %v6474_v63, %v5420_v0  ;;  %v5468_v63 = vld [vmem:[#allocation2 + $0xab8] sm:$0xf0]  ;;  %v5387_v4 = vor.u32 %v6467_v2, %v5386_v1  ;;  %v5610_v1 = vld [vmem:[#allocation2 + $0xbd0] sm:$0xf] }
 0x40b   :  { %2530 = vmatpush.bf16.msrb.mxu1 %v5339_v10  ;;  %v6473_v10 = vld [vmem:[#allocation2 + $0xa44] sm:$0xf0]  ;;  %v5471_v0 = vor.u32 %v6486_v62, %v5468_v63  ;;  %v5388_v5 = vld [vmem:[#allocation2 + $0xa18] sm:$0xf0]  ;;  %v5538_v62 = vld [vmem:[#allocation2 + $0xb40] sm:$0xf] }
 0x40c   :  { %v5411_v22 = vor.u32 %v6473_v10, %v5410_v9  ;;  %v6485_v9 = vld [vmem:[#allocation2 + $0xaa4] sm:$0xf0]  ;;  %v6523_v2 = vld [vmem:[#allocation2 + $0xbd4] sm:$0xf0] }
 0x40d   :  { %2556 = vmatpush.bf16.msrb.mxu3 %v5343_v13  ;;  %2519 = vmatpush.bf16.msrb.mxu0 %v5259_v18  ;;  %v6491_v13 = vld [vmem:[#allocation2 + $0xad4] sm:$0xf0]  ;;  %v5484_v18 = vld [vmem:[#allocation2 + $0xad8] sm:$0xf0]  ;;  %v6505_v63 = vld [vmem:[#allocation2 + $0xb44] sm:$0xf0] }
 0x40e   :  { %2545 = vmatpush.bf16.msrb.mxu2 %v5263_v20  ;;  %v5483_v20 = vor.u32 %v6491_v13, %v5482_v12  ;;  %v5487_v21 = vor.u32 %v6490_v14, %v5484_v18  ;;  %v5460_v12 = vld [vmem:[#allocation2 + $0xaa8] sm:$0xf0]  ;;  %v5378_v14 = vld [vmem:[#allocation2 + $0xa00] sm:$0xf] }
 0x40f   :  { %2531 = vmatpush.bf16.msrb.mxu1 %v5331_v23  ;;  %v5379_v18 = vor.u32 %v6465_v15, %v5378_v14  ;;  %v6503_v14 = vld [vmem:[#allocation2 + $0xb34] sm:$0xf0]  ;;  %v2351_v15 = vperm.slane %v6805_v19, 1 }
 0x411   :  { %2557 = vmatpush.bf16.msrb.mxu3 %v5335_v26  ;;  %2520 = vmatpush.bf16.msrb.mxu0 %v5251_v30  ;;  %v6471_v26 = vld [vmem:[#allocation2 + $0xa34] sm:$0xf0] }
 0x412   :  { %2546 = vmatpush.bf16.msrb.mxu2 %v5255_v32  ;;  %v5403_v30 = vor.u32 %v6471_v26, %v5402_v25  ;;  %v5407_v32 = vor.u32 %v6470_v28, %v5404_v29  ;;  %v5452_v26 = vld [vmem:[#allocation2 + $0xa98] sm:$0xf0]  ;;  %v5442_v28 = vld [vmem:[#allocation2 + $0xa80] sm:$0xf]  ;;  %v6481_v29 = vld [vmem:[#allocation2 + $0xa84] sm:$0xf0] }
 0x415   :  { %2558 = vmatpush.bf16.msrb.mxu3 %v5327_v37 }
 0x419   :  { %2559 = vmatpush.bf16.msrb.mxu3 %v5319_v42 }
 0x46f   :  { %v2020_v35 = vpop.f32.mrf.mxu0 }
 0x470   :  { %v2021_v44 = vadd.f32 %v2020_v35, %v1849_v39  ;;  %v5323_v35 = vor.u32 %v6451_v33, %v5322_v43  ;;  %v6449_v39 = vld [vmem:[#allocation2 + $0x984] sm:$0xf0] }
 0x471   :  { %v5315_v41 = vor.u32 %v6449_v39, %v5314_v38 }
 0x472   :  { %2532 = vmatpush.bf16.msrb.mxu1 %v5323_v35 }
 0x475   :  { %v2033_v45 = vpop.f32.mrf.mxu1  ;;  %v2046_v46 = vpop.f32.mrf.mxu2 }
 0x476   :  { %v2034_v47 = vadd.f32 %v2033_v45, %v2021_v44  ;;  %v2047_v6 = vadd.f32 %v2046_v46, %v1850_v48  ;;  %2533 = vmatpush.bf16.msrb.mxu1 %v5315_v41  ;;  %v5434_v44 = vld [vmem:[#allocation2 + $0xa70] sm:$0xf]  ;;  %v6479_v45 = vld [vmem:[#allocation2 + $0xa74] sm:$0xf0]  ;;  %v6478_v46 = vld [vmem:[#allocation2 + $0xa74] sm:$0xf] }
 0x477   :  { %v2022_v49 = vpop.f32.mrf.mxu0  ;;  %v5436_v48 = vld [vmem:[#allocation2 + $0xa78] sm:$0xf0] }
 0x478   :  { %v2063_v50 = vmax.f32 %v2034_v47, 0.0  ;;  %v5435_v47 = vor.u32 %v6479_v45, %v5434_v44  ;;  %v5426_v49 = vld [vmem:[#allocation2 + $0xa60] sm:$0xf] }
 0x47a   :  { %v2065_v51 = vpack.c.bf16 %v2063_v50, %v2063_v50  ;;  %v6477_v50 = vld [vmem:[#allocation2 + $0xa64] sm:$0xf0] }
 0x47b   :  { %v2059_v52 = vpop.f32.mrf.mxu3 }
 0x47c   :  { %v2060_v53 = vadd.f32 %v2059_v52, %v2047_v6  ;;  %2270 = vmatmul.bf16.vlgmr.msra.gmra.mxu0 %v2065_v51  ;;  %2296 = vmatmul.bf16.vlgmr.msra.gmra.mxu2 %v2065_v51  ;;  %v5439_v51 = vor.u32 %v6478_v46, %v5436_v48  ;;  %v6476_v6 = vld [vmem:[#allocation2 + $0xa64] sm:$0xf]  ;;  %v5428_v52 = vld [vmem:[#allocation2 + $0xa68] sm:$0xf0]  ;;  %v5474_v48 = vld [vmem:[#allocation2 + $0xac0] sm:$0xf] }
 0x47d   :  { %v2035_v54 = vpop.f32.mrf.mxu1  ;;  %v2048_v55 = vpop.f32.mrf.mxu2  ;;  %2764 = vmatpush.bf16.msra.mxu0 %v5435_v47 }
 0x47e   :  { %v2064_v56 = vmax.f32 %v2060_v53, 0.0  ;;  %v5498_v53 = vld [vmem:[#allocation2 + $0xaf0] sm:$0xf]  ;;  %v5427_v54 = vor.u32 %v6477_v50, %v5426_v49  ;;  %v6495_v55 = vld [vmem:[#allocation2 + $0xaf4] sm:$0xf0]  ;;  %2790 = vmatpush.bf16.msra.mxu2 %v5439_v51 }
 0x47f   :  { %v5499_v60 = vor.u32 %v6495_v55, %v5498_v53  ;;  %v6489_v49 = vld [vmem:[#allocation2 + $0xac4] sm:$0xf0]  ;;  %v6488_v50 = vld [vmem:[#allocation2 + $0xac4] sm:$0xf]  ;;  %v5394_v53 = vld [vmem:[#allocation2 + $0xa20] sm:$0xf] }
 0x480   :  { %v2066_v57 = vpack.c.bf16 %v2064_v56, %v2064_v56  ;;  %v6494_v56 = vld [vmem:[#allocation2 + $0xaf4] sm:$0xf]  ;;  %v5475_v51 = vor.u32 %v6489_v49, %v5474_v48  ;;  %v6468_v55 = vld [vmem:[#allocation2 + $0xa24] sm:$0xf]  ;;  %v5628_v48 = vld [vmem:[#allocation2 + $0xbf8] sm:$0xf0] }
 0x481   :  { %2765 = vmatpush.bf16.msra.mxu0 %v5427_v54  ;;  %v6469_v54 = vld [vmem:[#allocation2 + $0xa24] sm:$0xf0] }
 0x482   :  { %2283 = vmatmul.bf16.vlgmr.msra.gmra.mxu1 %v2066_v57  ;;  %2309 = vmatmul.bf16.vlgmr.msra.gmra.mxu3 %v2066_v57  ;;  %v5500_v57 = vld [vmem:[#allocation2 + $0xaf8] sm:$0xf0] }
 0x483   :  { %v2061_v59 = vpop.f32.mrf.mxu3  ;;  %v5503_v61 = vor.u32 %v6494_v56, %v5500_v57  ;;  %2777 = vmatpush.bf16.msra.mxu1 %v5499_v60  ;;  %v5395_v56 = vor.u32 %v6469_v54, %v5394_v53  ;;  %v5396_v57 = vld [vmem:[#allocation2 + $0xa28] sm:$0xf0]  ;;  %v6487_v60 = vld [vmem:[#allocation2 + $0xab4] sm:$0xf0]  ;;  %v6506_v53 = vld [vmem:[#allocation2 + $0xb54] sm:$0xf] }
 0x484   :  { %v5431_v59 = vor.u32 %v6476_v6, %v5428_v52  ;;  %v5476_v6 = vld [vmem:[#allocation2 + $0xac8] sm:$0xf0]  ;;  %v5548_v54 = vld [vmem:[#allocation2 + $0xb58] sm:$0xf0] }
 0x485   :  { %2803 = vmatpush.bf16.msra.mxu3 %v5503_v61  ;;  %2766 = vmatpush.bf16.msra.mxu0 %v5419_v7  ;;  %v5479_v52 = vor.u32 %v6488_v50, %v5476_v6  ;;  %v5399_v61 = vor.u32 %v6468_v55, %v5396_v57  ;;  %v5546_v6 = vld [vmem:[#allocation2 + $0xb50] sm:$0xf]  ;;  %v5618_v55 = vld [vmem:[#allocation2 + $0xbe0] sm:$0xf] }
 0x486   :  { %2791 = vmatpush.bf16.msra.mxu2 %v5431_v59  ;;  %v5466_v59 = vld [vmem:[#allocation2 + $0xab0] sm:$0xf] }
 0x487   :  { %2778 = vmatpush.bf16.msra.mxu1 %v5491_v3  ;;  %v5467_v16 = vor.u32 %v6487_v60, %v5466_v59  ;;  %v6466_v3 = vld [vmem:[#allocation2 + $0xa14] sm:$0xf]  ;;  %v6524_v59 = vld [vmem:[#allocation2 + $0xbe4] sm:$0xf]  ;;  %v5620_v60 = vld [vmem:[#allocation2 + $0xbe8] sm:$0xf0] }
 0x488   :  { %v5391_v7 = vor.u32 %v6466_v3, %v5388_v5  ;;  %v6522_v3 = vld [vmem:[#allocation2 + $0xbd4] sm:$0xf]  ;;  %v5540_v5 = vld [vmem:[#allocation2 + $0xb48] sm:$0xf0] }
 0x489   :  { %2804 = vmatpush.bf16.msra.mxu3 %v5495_v8  ;;  %2767 = vmatpush.bf16.msra.mxu0 %v5411_v22  ;;  %v5458_v8 = vld [vmem:[#allocation2 + $0xaa0] sm:$0xf]  ;;  %v5450_v22 = vld [vmem:[#allocation2 + $0xa90] sm:$0xf] }
 0x48a   :  { %2792 = vmatpush.bf16.msra.mxu2 %v5423_v11  ;;  %v5459_v10 = vor.u32 %v6485_v9, %v5458_v8  ;;  %v6484_v11 = vld [vmem:[#allocation2 + $0xaa4] sm:$0xf]  ;;  %v5611_v8 = vor.u32 %v6523_v2, %v5610_v1  ;;  %v5588_v1 = vld [vmem:[#allocation2 + $0xba8] sm:$0xf0] }
 0x48b   :  { %2779 = vmatpush.bf16.msra.mxu1 %v5483_v20  ;;  %v5463_v13 = vor.u32 %v6484_v11, %v5460_v12  ;;  %v5380_v20 = vld [vmem:[#allocation2 + $0xa08] sm:$0xf0] }
 0x48d   :  { %2805 = vmatpush.bf16.msra.mxu3 %v5487_v21  ;;  %2768 = vmatpush.bf16.msra.mxu0 %v5403_v30  ;;  %v5383_v21 = vor.u32 %v6464_v17, %v5380_v20  ;;  %v6480_v30 = vld [vmem:[#allocation2 + $0xa84] sm:$0xf]  ;;  %v6502_v17 = vld [vmem:[#allocation2 + $0xb34] sm:$0xf] }
 0x48e   :  { %2793 = vmatpush.bf16.msra.mxu2 %v5415_v24  ;;  %v6482_v24 = vld [vmem:[#allocation2 + $0xa94] sm:$0xf] }
 0x48f   :  { %2780 = vmatpush.bf16.msra.mxu1 %v5475_v51 }
 0x491   :  { %2806 = vmatpush.bf16.msra.mxu3 %v5479_v52  ;;  %2769 = vmatpush.bf16.msra.mxu0 %v5395_v56  ;;  %v6507_v52 = vld [vmem:[#allocation2 + $0xb54] sm:$0xf0]  ;;  %v6525_v56 = vld [vmem:[#allocation2 + $0xbe4] sm:$0xf0] }
 0x492   :  { %2794 = vmatpush.bf16.msra.mxu2 %v5407_v32  ;;  %v5443_v32 = vor.u32 %v6481_v29, %v5442_v28  ;;  %v5619_v57 = vor.u32 %v6525_v56, %v5618_v55  ;;  %v5514_v55 = vld [vmem:[#allocation2 + $0xb10] sm:$0xf]  ;;  %v6499_v56 = vld [vmem:[#allocation2 + $0xb14] sm:$0xf0] }
 0x493   :  { %2781 = vmatpush.bf16.msra.mxu1 %v5467_v16  ;;  %v5623_v16 = vor.u32 %v6524_v59, %v5620_v60  ;;  %v5515_v59 = vor.u32 %v6499_v56, %v5514_v55  ;;  %v5516_v60 = vld [vmem:[#allocation2 + $0xb18] sm:$0xf0]  ;;  %v5738_v55 = vld [vmem:[#allocation2 + $0xcd0] sm:$0xf]  ;;  %v6555_v56 = vld [vmem:[#allocation2 + $0xcd4] sm:$0xf0] }
 0x495   :  { %2807 = vmatpush.bf16.msra.mxu3 %v5471_v0  ;;  %2770 = vmatpush.bf16.msra.mxu0 %v5387_v4  ;;  %v5551_v0 = vor.u32 %v6506_v53, %v5548_v54  ;;  %v6504_v4 = vld [vmem:[#allocation2 + $0xb44] sm:$0xf]  ;;  %v5596_v53 = vld [vmem:[#allocation2 + $0xbb8] sm:$0xf0] }
 0x496   :  { %2795 = vmatpush.bf16.msra.mxu2 %v5399_v61  ;;  %v5547_v61 = vor.u32 %v6507_v52, %v5546_v6  ;;  %v5543_v12 = vor.u32 %v6504_v4, %v5540_v5  ;;  %v6518_v52 = vld [vmem:[#allocation2 + $0xbb4] sm:$0xf]  ;;  %v6497_v4 = vld [vmem:[#allocation2 + $0xb04] sm:$0xf0]  ;;  %v6496_v5 = vld [vmem:[#allocation2 + $0xb04] sm:$0xf] }
 0x497   :  { %2782 = vmatpush.bf16.msra.mxu1 %v5459_v10  ;;  %v5539_v10 = vor.u32 %v6505_v63, %v5538_v62  ;;  %v5599_v54 = vor.u32 %v6518_v52, %v5596_v53  ;;  %v6517_v62 = vld [vmem:[#allocation2 + $0xba4] sm:$0xf0]  ;;  %v5666_v52 = vld [vmem:[#allocation2 + $0xc40] sm:$0xf] }
 0x498   :  { %v6537_v53 = vld [vmem:[#allocation2 + $0xc44] sm:$0xf0] }
 0x499   :  { %2808 = vmatpush.bf16.msra.mxu3 %v5463_v13  ;;  %2771 = vmatpush.bf16.msra.mxu0 %v5379_v18  ;;  %v5530_v13 = vld [vmem:[#allocation2 + $0xb30] sm:$0xf]  ;;  %v5532_v18 = vld [vmem:[#allocation2 + $0xb38] sm:$0xf0] }
 0x49a   :  { %2796 = vmatpush.bf16.msra.mxu2 %v5391_v7  ;;  %v5612_v7 = vld [vmem:[#allocation2 + $0xbd8] sm:$0xf0]  ;;  %v5531_v20 = vor.u32 %v6503_v14, %v5530_v13 }
 0x49b   :  { %v5615_v9 = vor.u32 %v6522_v3, %v5612_v7  ;;  %v5506_v3 = vld [vmem:[#allocation2 + $0xb00] sm:$0xf]  ;;  %v5580_v14 = vld [vmem:[#allocation2 + $0xb98] sm:$0xf0] }
 0x49c   :  { %v5507_v7 = vor.u32 %v6497_v4, %v5506_v3  ;;  %v6535_v3 = vld [vmem:[#allocation2 + $0xc34] sm:$0xf0]  ;;  %v2602_v4 = vperm.slane %v6805_v19, 2 }
 0x49e   :  { %2797 = vmatpush.bf16.msra.mxu2 %v5383_v21  ;;  %v5535_v21 = vor.u32 %v6502_v17, %v5532_v18  ;;  %v5570_v17 = vld [vmem:[#allocation2 + $0xb80] sm:$0xf]  ;;  %v6513_v18 = vld [vmem:[#allocation2 + $0xb84] sm:$0xf0] }
 0x4f9   :  { %v2271_v23 = vpop.f32.mrf.mxu0 }
 0x4fa   :  { %v2272_v43 = vadd.f32 %v2271_v23, %v2100_v27  ;;  %v6483_v23 = vld [vmem:[#allocation2 + $0xa94] sm:$0xf0]  ;;  %v5455_v27 = vor.u32 %v6482_v24, %v5452_v26  ;;  %v2352_v26 = vperm.slane %v6808_v31, 1 }
 0x4fb   :  { %v5451_v25 = vor.u32 %v6483_v23, %v5450_v22 }
 0x4fc   :  { %2809 = vmatpush.bf16.msra.mxu3 %v5455_v27 }
 0x4fd   :  { %2783 = vmatpush.bf16.msra.mxu1 %v5451_v25 }
 0x4ff   :  { %v2284_v33 = vpop.f32.mrf.mxu1  ;;  %v2297_v34 = vpop.f32.mrf.mxu2 }
 0x500   :  { %v2285_v35 = vadd.f32 %v2284_v33, %v2272_v43  ;;  %v2298_v40 = vadd.f32 %v2297_v34, %v2101_v36  ;;  %v5444_v43 = vld [vmem:[#allocation2 + $0xa88] sm:$0xf0]  ;;  %v5562_v34 = vld [vmem:[#allocation2 + $0xb70] sm:$0xf]  ;;  %v6510_v36 = vld [vmem:[#allocation2 + $0xb74] sm:$0xf] }
 0x501   :  { %v2273_v37 = vpop.f32.mrf.mxu0  ;;  %v5447_v33 = vor.u32 %v6480_v30, %v5444_v43  ;;  %2784 = vmatpush.bf16.msra.mxu1 %v5443_v32 }
 0x502   :  { %v2314_v38 = vmax.f32 %v2285_v35, 0.0  ;;  %v6511_v35 = vld [vmem:[#allocation2 + $0xb74] sm:$0xf0] }
 0x503   :  { %2810 = vmatpush.bf16.msra.mxu3 %v5447_v33  ;;  %v5563_v37 = vor.u32 %v6511_v35, %v5562_v34 }
 0x504   :  { %v2316_v39 = vpack.c.bf16 %v2314_v38, %v2314_v38  ;;  %v5564_v38 = vld [vmem:[#allocation2 + $0xb78] sm:$0xf0] }
 0x505   :  { %v2310_v41 = vpop.f32.mrf.mxu3 }
 0x506   :  { %v2311_v58 = vadd.f32 %v2310_v41, %v2298_v40  ;;  %2521 = vmatmul.bf16.vlgmr.msrb.gmra.mxu0 %v2316_v39  ;;  %2547 = vmatmul.bf16.vlgmr.msrb.gmra.mxu2 %v2316_v39  ;;  %v5554_v39 = vld [vmem:[#allocation2 + $0xb60] sm:$0xf]  ;;  %v6509_v40 = vld [vmem:[#allocation2 + $0xb64] sm:$0xf0]  ;;  %v5567_v41 = vor.u32 %v6510_v36, %v5564_v38 }
 0x507   :  { %v2286_v42 = vpop.f32.mrf.mxu1  ;;  %v2299_v44 = vpop.f32.mrf.mxu2  ;;  %3015 = vmatpush.bf16.msrb.mxu0 %v5563_v37  ;;  %v5602_v38 = vld [vmem:[#allocation2 + $0xbc0] sm:$0xf] }
 0x508   :  { %v2315_v45 = vmax.f32 %v2311_v58, 0.0  ;;  %v6508_v58 = vld [vmem:[#allocation2 + $0xb64] sm:$0xf]  ;;  %v5556_v42 = vld [vmem:[#allocation2 + $0xb68] sm:$0xf0]  ;;  %3041 = vmatpush.bf16.msrb.mxu2 %v5567_v41 }
 0x509   :  { %v5626_v44 = vld [vmem:[#allocation2 + $0xbf0] sm:$0xf]  ;;  %v5559_v49 = vor.u32 %v6508_v58, %v5556_v42  ;;  %v5604_v58 = vld [vmem:[#allocation2 + $0xbc8] sm:$0xf0] }
 0x50a   :  { %v2317_v46 = vpack.c.bf16 %v2315_v45, %v2315_v45  ;;  %v5555_v45 = vor.u32 %v6509_v40, %v5554_v39  ;;  %v6521_v39 = vld [vmem:[#allocation2 + $0xbc4] sm:$0xf0]  ;;  %v6520_v40 = vld [vmem:[#allocation2 + $0xbc4] sm:$0xf] }
 0x50b   :  { %v5603_v41 = vor.u32 %v6521_v39, %v5602_v38  ;;  %v5607_v42 = vor.u32 %v6520_v40, %v5604_v58  ;;  %v5756_v38 = vld [vmem:[#allocation2 + $0xcf8] sm:$0xf0]  ;;  %v5674_v58 = vld [vmem:[#allocation2 + $0xc50] sm:$0xf] }
 0x50c   :  { %2534 = vmatmul.bf16.vlgmr.msrb.gmra.mxu1 %v2317_v46  ;;  %2560 = vmatmul.bf16.vlgmr.msrb.gmra.mxu3 %v2317_v46  ;;  %v6527_v46 = vld [vmem:[#allocation2 + $0xbf4] sm:$0xf0] }
 0x50d   :  { %v2312_v47 = vpop.f32.mrf.mxu3  ;;  %v5627_v50 = vor.u32 %v6527_v46, %v5626_v44  ;;  %3016 = vmatpush.bf16.msrb.mxu0 %v5555_v45  ;;  %3042 = vmatpush.bf16.msrb.mxu2 %v5559_v49  ;;  %v5522_v44 = vld [vmem:[#allocation2 + $0xb20] sm:$0xf]  ;;  %v6501_v45 = vld [vmem:[#allocation2 + $0xb24] sm:$0xf0]  ;;  %v6500_v46 = vld [vmem:[#allocation2 + $0xb24] sm:$0xf] }
 0x50e   :  { %v6526_v47 = vld [vmem:[#allocation2 + $0xbf4] sm:$0xf]  ;;  %v5594_v49 = vld [vmem:[#allocation2 + $0xbb0] sm:$0xf] }
 0x50f   :  { %v5631_v51 = vor.u32 %v6526_v47, %v5628_v48  ;;  %3028 = vmatpush.bf16.msrb.mxu1 %v5627_v50  ;;  %v5523_v47 = vor.u32 %v6501_v45, %v5522_v44  ;;  %v5524_v48 = vld [vmem:[#allocation2 + $0xb28] sm:$0xf0]  ;;  %v6519_v50 = vld [vmem:[#allocation2 + $0xbb4] sm:$0xf0]  ;;  %v6538_v44 = vld [vmem:[#allocation2 + $0xc54] sm:$0xf] }
 0x510   :  { %v5595_v6 = vor.u32 %v6519_v50, %v5594_v49  ;;  %v5676_v45 = vld [vmem:[#allocation2 + $0xc58] sm:$0xf0]  ;;  %v6556_v49 = vld [vmem:[#allocation2 + $0xce4] sm:$0xf]  ;;  %v5748_v50 = vld [vmem:[#allocation2 + $0xce8] sm:$0xf0] }
 0x511   :  { %3054 = vmatpush.bf16.msrb.mxu3 %v5631_v51  ;;  %3017 = vmatpush.bf16.msrb.mxu0 %v5547_v61  ;;  %v5527_v51 = vor.u32 %v6500_v46, %v5524_v48  ;;  %v5746_v46 = vld [vmem:[#allocation2 + $0xce0] sm:$0xf] }
 0x512   :  { %3043 = vmatpush.bf16.msrb.mxu2 %v5551_v0  ;;  %v6516_v0 = vld [vmem:[#allocation2 + $0xba4] sm:$0xf] }
 0x513   :  { %3029 = vmatpush.bf16.msrb.mxu1 %v5619_v57  ;;  %v6498_v57 = vld [vmem:[#allocation2 + $0xb14] sm:$0xf]  ;;  %v5591_v2 = vor.u32 %v6516_v0, %v5588_v1 }
 0x514   :  { %v5519_v61 = vor.u32 %v6498_v57, %v5516_v60  ;;  %v6554_v57 = vld [vmem:[#allocation2 + $0xcd4] sm:$0xf]  ;;  %v5668_v60 = vld [vmem:[#allocation2 + $0xc48] sm:$0xf0] }
 0x515   :  { %3055 = vmatpush.bf16.msrb.mxu3 %v5623_v16  ;;  %3018 = vmatpush.bf16.msrb.mxu0 %v5539_v10  ;;  %v5586_v16 = vld [vmem:[#allocation2 + $0xba0] sm:$0xf]  ;;  %v5578_v10 = vld [vmem:[#allocation2 + $0xb90] sm:$0xf] }
 0x516   :  { %3044 = vmatpush.bf16.msrb.mxu2 %v5543_v12  ;;  %v5587_v63 = vor.u32 %v6517_v62, %v5586_v16  ;;  %v6514_v12 = vld [vmem:[#allocation2 + $0xb94] sm:$0xf]  ;;  %v5739_v16 = vor.u32 %v6555_v56, %v5738_v55  ;;  %v5716_v55 = vld [vmem:[#allocation2 + $0xca8] sm:$0xf0] }
 0x517   :  { %3030 = vmatpush.bf16.msrb.mxu1 %v5611_v8  ;;  %v5508_v8 = vld [vmem:[#allocation2 + $0xb08] sm:$0xf0] }
 0x519   :  { %3056 = vmatpush.bf16.msrb.mxu3 %v5615_v9  ;;  %3019 = vmatpush.bf16.msrb.mxu0 %v5531_v20  ;;  %v5511_v9 = vor.u32 %v6496_v5, %v5508_v8  ;;  %v6512_v20 = vld [vmem:[#allocation2 + $0xb84] sm:$0xf]  ;;  %v6534_v5 = vld [vmem:[#allocation2 + $0xc34] sm:$0xf] }
 0x51a   :  { %3045 = vmatpush.bf16.msrb.mxu2 %v5535_v21  ;;  %v5571_v21 = vor.u32 %v6513_v18, %v5570_v17 }
 0x51b   :  { %3031 = vmatpush.bf16.msrb.mxu1 %v5603_v41 }
 0x51d   :  { %3057 = vmatpush.bf16.msrb.mxu3 %v5607_v42  ;;  %3020 = vmatpush.bf16.msrb.mxu0 %v5523_v47  ;;  %v6539_v42 = vld [vmem:[#allocation2 + $0xc54] sm:$0xf0]  ;;  %v6557_v47 = vld [vmem:[#allocation2 + $0xce4] sm:$0xf0] }
 0x51e   :  { %3046 = vmatpush.bf16.msrb.mxu2 %v5527_v51  ;;  %v5747_v48 = vor.u32 %v6557_v47, %v5746_v46  ;;  %v5675_v51 = vor.u32 %v6539_v42, %v5674_v58  ;;  %v6550_v42 = vld [vmem:[#allocation2 + $0xcb4] sm:$0xf]  ;;  %v5642_v46 = vld [vmem:[#allocation2 + $0xc10] sm:$0xf]  ;;  %v6531_v47 = vld [vmem:[#allocation2 + $0xc14] sm:$0xf0] }
 0x51f   :  { %3032 = vmatpush.bf16.msrb.mxu1 %v5595_v6  ;;  %v5751_v6 = vor.u32 %v6556_v49, %v5748_v50  ;;  %v5643_v49 = vor.u32 %v6531_v47, %v5642_v46  ;;  %v5644_v50 = vld [vmem:[#allocation2 + $0xc18] sm:$0xf0]  ;;  %v5866_v46 = vld [vmem:[#allocation2 + $0xdd0] sm:$0xf]  ;;  %v6587_v47 = vld [vmem:[#allocation2 + $0xdd4] sm:$0xf0] }
 0x521   :  { %3058 = vmatpush.bf16.msrb.mxu3 %v5599_v54  ;;  %3021 = vmatpush.bf16.msrb.mxu0 %v5515_v59  ;;  %v5679_v54 = vor.u32 %v6538_v44, %v5676_v45  ;;  %v6536_v59 = vld [vmem:[#allocation2 + $0xc44] sm:$0xf]  ;;  %v5724_v44 = vld [vmem:[#allocation2 + $0xcb8] sm:$0xf0] }
 0x522   :  { %3047 = vmatpush.bf16.msrb.mxu2 %v5519_v61  ;;  %v5740_v61 = vld [vmem:[#allocation2 + $0xcd8] sm:$0xf0]  ;;  %v5671_v1 = vor.u32 %v6536_v59, %v5668_v60  ;;  %v5727_v45 = vor.u32 %v6550_v42, %v5724_v44  ;;  %v6529_v59 = vld [vmem:[#allocation2 + $0xc04] sm:$0xf0]  ;;  %v6528_v60 = vld [vmem:[#allocation2 + $0xc04] sm:$0xf] }
 0x523   :  { %3033 = vmatpush.bf16.msrb.mxu1 %v5587_v63  ;;  %v5743_v62 = vor.u32 %v6554_v57, %v5740_v61  ;;  %v5667_v63 = vor.u32 %v6537_v53, %v5666_v52  ;;  %v6549_v52 = vld [vmem:[#allocation2 + $0xca4] sm:$0xf0]  ;;  %v5634_v57 = vld [vmem:[#allocation2 + $0xc00] sm:$0xf] }
 0x524   :  { %v5635_v61 = vor.u32 %v6529_v59, %v5634_v57  ;;  %v5794_v42 = vld [vmem:[#allocation2 + $0xd40] sm:$0xf]  ;;  %v6569_v44 = vld [vmem:[#allocation2 + $0xd44] sm:$0xf0]  ;;  %v6567_v57 = vld [vmem:[#allocation2 + $0xd34] sm:$0xf0] }
 0x525   :  { %3059 = vmatpush.bf16.msrb.mxu3 %v5591_v2  ;;  %3022 = vmatpush.bf16.msrb.mxu0 %v5507_v7  ;;  %v5658_v2 = vld [vmem:[#allocation2 + $0xc30] sm:$0xf]  ;;  %v5660_v7 = vld [vmem:[#allocation2 + $0xc38] sm:$0xf0]  ;;  %v2853_v59 = vperm.slane %v6805_v19, 3 }
 0x526   :  { %3048 = vmatpush.bf16.msrb.mxu2 %v5511_v9  ;;  %v5659_v8 = vor.u32 %v6535_v3, %v5658_v2  ;;  %v5663_v9 = vor.u32 %v6534_v5, %v5660_v7  ;;  %v5708_v3 = vld [vmem:[#allocation2 + $0xc98] sm:$0xf0]  ;;  %v5698_v5 = vld [vmem:[#allocation2 + $0xc80] sm:$0xf]  ;;  %v6545_v7 = vld [vmem:[#allocation2 + $0xc84] sm:$0xf0] }
 0x583   :  { %v2522_v11 = vpop.f32.mrf.mxu0 }
 0x584   :  { %v2523_v22 = vadd.f32 %v2522_v11, %v2351_v15  ;;  %v6515_v11 = vld [vmem:[#allocation2 + $0xb94] sm:$0xf0]  ;;  %v5583_v15 = vor.u32 %v6514_v12, %v5580_v14  ;;  %v2603_v14 = vperm.slane %v6808_v31, 2 }
 0x585   :  { %v5579_v13 = vor.u32 %v6515_v11, %v5578_v10 }
 0x586   :  { %3060 = vmatpush.bf16.msrb.mxu3 %v5583_v15 }
 0x587   :  { %3034 = vmatpush.bf16.msrb.mxu1 %v5579_v13 }
 0x589   :  { %v2535_v23 = vpop.f32.mrf.mxu1  ;;  %v2548_v24 = vpop.f32.mrf.mxu2 }
 0x58a   :  { %v2536_v25 = vadd.f32 %v2535_v23, %v2523_v22  ;;  %v2549_v30 = vadd.f32 %v2548_v24, %v2352_v26  ;;  %v5572_v22 = vld [vmem:[#allocation2 + $0xb88] sm:$0xf0]  ;;  %v5690_v24 = vld [vmem:[#allocation2 + $0xc70] sm:$0xf]  ;;  %v6542_v26 = vld [vmem:[#allocation2 + $0xc74] sm:$0xf] }
 0x58b   :  { %v2524_v27 = vpop.f32.mrf.mxu0  ;;  %v5575_v23 = vor.u32 %v6512_v20, %v5572_v22  ;;  %3035 = vmatpush.bf16.msrb.mxu1 %v5571_v21 }
 0x58c   :  { %v2565_v28 = vmax.f32 %v2536_v25, 0.0  ;;  %v6543_v25 = vld [vmem:[#allocation2 + $0xc74] sm:$0xf0] }
 0x58d   :  { %3061 = vmatpush.bf16.msrb.mxu3 %v5575_v23  ;;  %v5691_v27 = vor.u32 %v6543_v25, %v5690_v24 }
 0x58e   :  { %v2567_v29 = vpack.c.bf16 %v2565_v28, %v2565_v28  ;;  %v5692_v28 = vld [vmem:[#allocation2 + $0xc78] sm:$0xf0] }
 0x58f   :  { %v2561_v32 = vpop.f32.mrf.mxu3 }
 0x590   :  { %v2562_v43 = vadd.f32 %v2561_v32, %v2549_v30  ;;  %2772 = vmatmul.bf16.vlgmr.msra.gmra.mxu0 %v2567_v29  ;;  %2798 = vmatmul.bf16.vlgmr.msra.gmra.mxu2 %v2567_v29  ;;  %v5682_v29 = vld [vmem:[#allocation2 + $0xc60] sm:$0xf]  ;;  %v6541_v30 = vld [vmem:[#allocation2 + $0xc64] sm:$0xf0]  ;;  %v5695_v32 = vor.u32 %v6542_v26, %v5692_v28 }
 0x591   :  { %v2537_v33 = vpop.f32.mrf.mxu1  ;;  %v2550_v34 = vpop.f32.mrf.mxu2  ;;  %3266 = vmatpush.bf16.msra.mxu0 %v5691_v27  ;;  %v5730_v28 = vld [vmem:[#allocation2 + $0xcc0] sm:$0xf] }
 0x592   :  { %v2566_v35 = vmax.f32 %v2562_v43, 0.0  ;;  %v6540_v43 = vld [vmem:[#allocation2 + $0xc64] sm:$0xf]  ;;  %v5684_v33 = vld [vmem:[#allocation2 + $0xc68] sm:$0xf0]  ;;  %3292 = vmatpush.bf16.msra.mxu2 %v5695_v32 }
 0x593   :  { %v5754_v34 = vld [vmem:[#allocation2 + $0xcf0] sm:$0xf]  ;;  %v5687_v39 = vor.u32 %v6540_v43, %v5684_v33  ;;  %v5732_v43 = vld [vmem:[#allocation2 + $0xcc8] sm:$0xf0] }
 0x594   :  { %v2568_v36 = vpack.c.bf16 %v2566_v35, %v2566_v35  ;;  %v5683_v35 = vor.u32 %v6541_v30, %v5682_v29  ;;  %v6553_v29 = vld [vmem:[#allocation2 + $0xcc4] sm:$0xf0]  ;;  %v6552_v30 = vld [vmem:[#allocation2 + $0xcc4] sm:$0xf] }
 0x595   :  { %v5731_v32 = vor.u32 %v6553_v29, %v5730_v28  ;;  %v5735_v33 = vor.u32 %v6552_v30, %v5732_v43  ;;  %v5884_v28 = vld [vmem:[#allocation2 + $0xdf8] sm:$0xf0]  ;;  %v5802_v43 = vld [vmem:[#allocation2 + $0xd50] sm:$0xf] }
 0x596   :  { %2785 = vmatmul.bf16.vlgmr.msra.gmra.mxu1 %v2568_v36  ;;  %2811 = vmatmul.bf16.vlgmr.msra.gmra.mxu3 %v2568_v36  ;;  %v6559_v36 = vld [vmem:[#allocation2 + $0xcf4] sm:$0xf0] }
 0x597   :  { %v2563_v37 = vpop.f32.mrf.mxu3  ;;  %v5755_v40 = vor.u32 %v6559_v36, %v5754_v34  ;;  %3267 = vmatpush.bf16.msra.mxu0 %v5683_v35  ;;  %3293 = vmatpush.bf16.msra.mxu2 %v5687_v39  ;;  %v5650_v34 = vld [vmem:[#allocation2 + $0xc20] sm:$0xf]  ;;  %v6533_v35 = vld [vmem:[#allocation2 + $0xc24] sm:$0xf0]  ;;  %v6532_v36 = vld [vmem:[#allocation2 + $0xc24] sm:$0xf] }
 0x598   :  { %v6558_v37 = vld [vmem:[#allocation2 + $0xcf4] sm:$0xf]  ;;  %v5722_v39 = vld [vmem:[#allocation2 + $0xcb0] sm:$0xf] }
 0x599   :  { %v5759_v41 = vor.u32 %v6558_v37, %v5756_v38  ;;  %3279 = vmatpush.bf16.msra.mxu1 %v5755_v40  ;;  %v5651_v37 = vor.u32 %v6533_v35, %v5650_v34  ;;  %v5652_v38 = vld [vmem:[#allocation2 + $0xc28] sm:$0xf0]  ;;  %v6551_v40 = vld [vmem:[#allocation2 + $0xcb4] sm:$0xf0]  ;;  %v6570_v34 = vld [vmem:[#allocation2 + $0xd54] sm:$0xf] }
 0x59a   :  { %v5723_v58 = vor.u32 %v6551_v40, %v5722_v39  ;;  %v5804_v35 = vld [vmem:[#allocation2 + $0xd58] sm:$0xf0]  ;;  %v6588_v39 = vld [vmem:[#allocation2 + $0xde4] sm:$0xf]  ;;  %v5876_v40 = vld [vmem:[#allocation2 + $0xde8] sm:$0xf0] }
 0x59b   :  { %3305 = vmatpush.bf16.msra.mxu3 %v5759_v41  ;;  %3268 = vmatpush.bf16.msra.mxu0 %v5675_v51  ;;  %v5655_v41 = vor.u32 %v6532_v36, %v5652_v38  ;;  %v5874_v36 = vld [vmem:[#allocation2 + $0xde0] sm:$0xf] }
 0x59c   :  { %3294 = vmatpush.bf16.msra.mxu2 %v5679_v54  ;;  %v6548_v54 = vld [vmem:[#allocation2 + $0xca4] sm:$0xf] }
 0x59d   :  { %3280 = vmatpush.bf16.msra.mxu1 %v5747_v48  ;;  %v6530_v48 = vld [vmem:[#allocation2 + $0xc14] sm:$0xf]  ;;  %v5719_v56 = vor.u32 %v6548_v54, %v5716_v55 }
 0x59e   :  { %v5647_v51 = vor.u32 %v6530_v48, %v5644_v50  ;;  %v6586_v48 = vld [vmem:[#allocation2 + $0xdd4] sm:$0xf]  ;;  %v5796_v50 = vld [vmem:[#allocation2 + $0xd48] sm:$0xf0] }
 0x59f   :  { %3306 = vmatpush.bf16.msra.mxu3 %v5751_v6  ;;  %3269 = vmatpush.bf16.msra.mxu0 %v5667_v63  ;;  %v5714_v6 = vld [vmem:[#allocation2 + $0xca0] sm:$0xf]  ;;  %v5706_v63 = vld [vmem:[#allocation2 + $0xc90] sm:$0xf] }
 0x5a0   :  { %3295 = vmatpush.bf16.msra.mxu2 %v5671_v1  ;;  %v5715_v53 = vor.u32 %v6549_v52, %v5714_v6  ;;  %v6546_v1 = vld [vmem:[#allocation2 + $0xc94] sm:$0xf]  ;;  %v5867_v6 = vor.u32 %v6587_v47, %v5866_v46  ;;  %v5762_v46 = vld [vmem:[#allocation2 + $0xd00] sm:$0xf]  ;;  %v6561_v47 = vld [vmem:[#allocation2 + $0xd04] sm:$0xf0] }
 0x5a1   :  { %3281 = vmatpush.bf16.msra.mxu1 %v5739_v16  ;;  %v5636_v16 = vld [vmem:[#allocation2 + $0xc08] sm:$0xf0] }
 0x5a3   :  { %3307 = vmatpush.bf16.msra.mxu3 %v5743_v62  ;;  %3270 = vmatpush.bf16.msra.mxu0 %v5659_v8  ;;  %v5639_v62 = vor.u32 %v6528_v60, %v5636_v16  ;;  %v6544_v8 = vld [vmem:[#allocation2 + $0xc84] sm:$0xf]  ;;  %v6566_v60 = vld [vmem:[#allocation2 + $0xd34] sm:$0xf] }
 0x5a4   :  { %3296 = vmatpush.bf16.msra.mxu2 %v5663_v9  ;;  %v5699_v9 = vor.u32 %v6545_v7, %v5698_v5 }
 0x5a5   :  { %3282 = vmatpush.bf16.msra.mxu1 %v5731_v32 }
 0x5a7   :  { %3308 = vmatpush.bf16.msra.mxu3 %v5735_v33  ;;  %3271 = vmatpush.bf16.msra.mxu0 %v5651_v37  ;;  %v6571_v33 = vld [vmem:[#allocation2 + $0xd54] sm:$0xf0]  ;;  %v6589_v37 = vld [vmem:[#allocation2 + $0xde4] sm:$0xf0] }
 0x5a8   :  { %3297 = vmatpush.bf16.msra.mxu2 %v5655_v41  ;;  %v5875_v38 = vor.u32 %v6589_v37, %v5874_v36  ;;  %v5803_v41 = vor.u32 %v6571_v33, %v5802_v43  ;;  %v5852_v43 = vld [vmem:[#allocation2 + $0xdb8] sm:$0xf0]  ;;  %v6562_v36 = vld [vmem:[#allocation2 + $0xd14] sm:$0xf] }
 0x5a9   :  { %3283 = vmatpush.bf16.msra.mxu1 %v5723_v58  ;;  %v5879_v58 = vor.u32 %v6588_v39, %v5876_v40  ;;  %v5842_v40 = vld [vmem:[#allocation2 + $0xda0] sm:$0xf] }
 0x5ab   :  { %3309 = vmatpush.bf16.msra.mxu3 %v5727_v45  ;;  %3272 = vmatpush.bf16.msra.mxu0 %v5643_v49  ;;  %v5807_v45 = vor.u32 %v6570_v34, %v5804_v35  ;;  %v6568_v49 = vld [vmem:[#allocation2 + $0xd44] sm:$0xf]  ;;  %v5770_v34 = vld [vmem:[#allocation2 + $0xd10] sm:$0xf]  ;;  %v6563_v35 = vld [vmem:[#allocation2 + $0xd14] sm:$0xf0] }
 0x5ac   :  { %3298 = vmatpush.bf16.msra.mxu2 %v5647_v51  ;;  %v5868_v51 = vld [vmem:[#allocation2 + $0xdd8] sm:$0xf0]  ;;  %v5799_v55 = vor.u32 %v6568_v49, %v5796_v50  ;;  %v5771_v37 = vor.u32 %v6563_v35, %v5770_v34  ;;  %v5763_v49 = vor.u32 %v6561_v47, %v5762_v46  ;;  %v5764_v50 = vld [vmem:[#allocation2 + $0xd08] sm:$0xf0]  ;;  %v6618_v34 = vld [vmem:[#allocation2 + $0xed4] sm:$0xf] }
 0x5ad   :  { %3284 = vmatpush.bf16.msra.mxu1 %v5715_v53  ;;  %v5871_v52 = vor.u32 %v6586_v48, %v5868_v51  ;;  %v5795_v53 = vor.u32 %v6569_v44, %v5794_v42  ;;  %v6580_v42 = vld [vmem:[#allocation2 + $0xda4] sm:$0xf]  ;;  %v5844_v44 = vld [vmem:[#allocation2 + $0xda8] sm:$0xf0]  ;;  %v6598_v47 = vld [vmem:[#allocation2 + $0xe34] sm:$0xf] }
 0x5ae   :  { %v6560_v48 = vld [vmem:[#allocation2 + $0xd04] sm:$0xf] }
 0x5af   :  { %3310 = vmatpush.bf16.msra.mxu3 %v5719_v56  ;;  %3273 = vmatpush.bf16.msra.mxu0 %v5635_v61  ;;  %v5786_v56 = vld [vmem:[#allocation2 + $0xd30] sm:$0xf]  ;;  %v5788_v61 = vld [vmem:[#allocation2 + $0xd38] sm:$0xf0]  ;;  %v5767_v51 = vor.u32 %v6560_v48, %v5764_v50  ;;  %v6600_v35 = vld [vmem:[#allocation2 + $0xe44] sm:$0xf] }
 0x5b0   :  { %3299 = vmatpush.bf16.msra.mxu2 %v5639_v62  ;;  %v5787_v16 = vor.u32 %v6567_v57, %v5786_v56  ;;  %v5791_v62 = vor.u32 %v6566_v60, %v5788_v61  ;;  %v5826_v57 = vld [vmem:[#allocation2 + $0xd80] sm:$0xf]  ;;  %v6576_v60 = vld [vmem:[#allocation2 + $0xd84] sm:$0xf]  ;;  %v5916_v48 = vld [vmem:[#allocation2 + $0xe38] sm:$0xf0] }
 0x5b1   :  { %v5919_v50 = vor.u32 %v6598_v47, %v5916_v48  ;;  %v5954_v47 = vld [vmem:[#allocation2 + $0xe80] sm:$0xf]  ;;  %v6609_v48 = vld [vmem:[#allocation2 + $0xe84] sm:$0xf0] }
 0x60d   :  { %v2773_v0 = vpop.f32.mrf.mxu0 }
 0x60e   :  { %v2774_v10 = vadd.f32 %v2773_v0, %v2602_v4  ;;  %v6547_v0 = vld [vmem:[#allocation2 + $0xc94] sm:$0xf0]  ;;  %v5711_v4 = vor.u32 %v6546_v1, %v5708_v3  ;;  %v2854_v3 = vperm.slane %v6808_v31, 3  ;;  %v6584_v31 = vld [vmem:[#allocation2 + $0xdc4] sm:$0xf] }
 0x60f   :  { %v5707_v2 = vor.u32 %v6547_v0, %v5706_v63 }
 0x610   :  { %3311 = vmatpush.bf16.msra.mxu3 %v5711_v4 }
 0x611   :  { %3285 = vmatpush.bf16.msra.mxu1 %v5707_v2 }
 0x613   :  { %v2786_v11 = vpop.f32.mrf.mxu1  ;;  %v2799_v12 = vpop.f32.mrf.mxu2 }
 0x614   :  { %v2787_v13 = vadd.f32 %v2786_v11, %v2774_v10  ;;  %v2800_v20 = vadd.f32 %v2799_v12, %v2603_v14  ;;  %v5700_v10 = vld [vmem:[#allocation2 + $0xc88] sm:$0xf0]  ;;  %v5818_v12 = vld [vmem:[#allocation2 + $0xd70] sm:$0xf]  ;;  %v6574_v14 = vld [vmem:[#allocation2 + $0xd74] sm:$0xf] }
 0x615   :  { %v2775_v15 = vpop.f32.mrf.mxu0  ;;  %v5703_v11 = vor.u32 %v6544_v8, %v5700_v10  ;;  %3286 = vmatpush.bf16.msra.mxu1 %v5699_v9 }
 0x616   :  { %v2816_v17 = vmax.f32 %v2787_v13, 0.0  ;;  %v6575_v13 = vld [vmem:[#allocation2 + $0xd74] sm:$0xf0] }
 0x617   :  { %3312 = vmatpush.bf16.msra.mxu3 %v5703_v11  ;;  %v5819_v15 = vor.u32 %v6575_v13, %v5818_v12 }
 0x618   :  { %v2818_v18 = vpack.c.bf16 %v2816_v17, %v2816_v17  ;;  %v5820_v17 = vld [vmem:[#allocation2 + $0xd78] sm:$0xf0] }
 0x619   :  { %v2812_v21 = vpop.f32.mrf.mxu3 }
 0x61a   :  { %v2813_v22 = vadd.f32 %v2812_v21, %v2800_v20  ;;  %3023 = vmatmul.bf16.vlgmr.msrb.gmra.mxu0 %v2818_v18  ;;  %3049 = vmatmul.bf16.vlgmr.msrb.gmra.mxu2 %v2818_v18  ;;  %v5810_v18 = vld [vmem:[#allocation2 + $0xd60] sm:$0xf]  ;;  %v6573_v20 = vld [vmem:[#allocation2 + $0xd64] sm:$0xf0]  ;;  %v5823_v21 = vor.u32 %v6574_v14, %v5820_v17 }
 0x61b   :  { %v2788_v23 = vpop.f32.mrf.mxu1  ;;  %v2801_v24 = vpop.f32.mrf.mxu2  ;;  %3517 = vmatpush.bf16.msrb.mxu0 %v5819_v15  ;;  %v5858_v15 = vld [vmem:[#allocation2 + $0xdc0] sm:$0xf]  ;;  %v6585_v17 = vld [vmem:[#allocation2 + $0xdc4] sm:$0xf0] }
 0x61c   :  { %v2817_v25 = vmax.f32 %v2813_v22, 0.0  ;;  %v6572_v22 = vld [vmem:[#allocation2 + $0xd64] sm:$0xf]  ;;  %v5812_v23 = vld [vmem:[#allocation2 + $0xd68] sm:$0xf0]  ;;  %3543 = vmatpush.bf16.msrb.mxu2 %v5823_v21 }
 0x61d   :  { %v5882_v24 = vld [vmem:[#allocation2 + $0xdf0] sm:$0xf]  ;;  %v5815_v29 = vor.u32 %v6572_v22, %v5812_v23  ;;  %v5778_v22 = vld [vmem:[#allocation2 + $0xd20] sm:$0xf]  ;;  %v6565_v23 = vld [vmem:[#allocation2 + $0xd24] sm:$0xf0] }
 0x61e   :  { %v2819_v26 = vpack.c.bf16 %v2817_v25, %v2817_v25  ;;  %v5811_v25 = vor.u32 %v6573_v20, %v5810_v18  ;;  %v5859_v18 = vor.u32 %v6585_v17, %v5858_v15  ;;  %v5860_v20 = vld [vmem:[#allocation2 + $0xdc8] sm:$0xf0] }
 0x61f   :  { %v5863_v21 = vor.u32 %v6584_v31, %v5860_v20  ;;  %v5930_v31 = vld [vmem:[#allocation2 + $0xe50] sm:$0xf]  ;;  %v6602_v20 = vld [vmem:[#allocation2 + $0xe54] sm:$0xf] }
 0x620   :  { %3036 = vmatmul.bf16.vlgmr.msrb.gmra.mxu1 %v2819_v26  ;;  %3062 = vmatmul.bf16.vlgmr.msrb.gmra.mxu3 %v2819_v26  ;;  %v6591_v26 = vld [vmem:[#allocation2 + $0xdf4] sm:$0xf0] }
 0x621   :  { %v2814_v27 = vpop.f32.mrf.mxu3  ;;  %v5883_v30 = vor.u32 %v6591_v26, %v5882_v24  ;;  %3518 = vmatpush.bf16.msrb.mxu0 %v5811_v25  ;;  %3544 = vmatpush.bf16.msrb.mxu2 %v5815_v29  ;;  %v6564_v24 = vld [vmem:[#allocation2 + $0xd24] sm:$0xf]  ;;  %v5779_v25 = vor.u32 %v6565_v23, %v5778_v22  ;;  %v5780_v26 = vld [vmem:[#allocation2 + $0xd28] sm:$0xf0]  ;;  %v6002_v22 = vld [vmem:[#allocation2 + $0xee0] sm:$0xf] }
 0x622   :  { %v6590_v27 = vld [vmem:[#allocation2 + $0xdf4] sm:$0xf]  ;;  %v5783_v29 = vor.u32 %v6564_v24, %v5780_v26  ;;  %v6621_v23 = vld [vmem:[#allocation2 + $0xee4] sm:$0xf0]  ;;  %v6004_v26 = vld [vmem:[#allocation2 + $0xee8] sm:$0xf0] }
 0x623   :  { %v5887_v32 = vor.u32 %v6590_v27, %v5884_v28  ;;  %3530 = vmatpush.bf16.msrb.mxu1 %v5883_v30  ;;  %v5850_v27 = vld [vmem:[#allocation2 + $0xdb0] sm:$0xf]  ;;  %v6583_v28 = vld [vmem:[#allocation2 + $0xdb4] sm:$0xf0]  ;;  %v6003_v24 = vor.u32 %v6621_v23, %v6002_v22 }
 0x624   :  { %v5851_v30 = vor.u32 %v6583_v28, %v5850_v27  ;;  %v5898_v22 = vld [vmem:[#allocation2 + $0xe10] sm:$0xf]  ;;  %v6595_v23 = vld [vmem:[#allocation2 + $0xe14] sm:$0xf0] }
 0x625   :  { %3556 = vmatpush.bf16.msrb.mxu3 %v5887_v32  ;;  %3519 = vmatpush.bf16.msrb.mxu0 %v5803_v41  ;;  %v6582_v32 = vld [vmem:[#allocation2 + $0xdb4] sm:$0xf]  ;;  %v6581_v41 = vld [vmem:[#allocation2 + $0xda4] sm:$0xf0] }
 0x626   :  { %3545 = vmatpush.bf16.msrb.mxu2 %v5807_v45  ;;  %v5855_v33 = vor.u32 %v6582_v32, %v5852_v43  ;;  %v5847_v45 = vor.u32 %v6580_v42, %v5844_v44  ;;  %v5994_v43 = vld [vmem:[#allocation2 + $0xed0] sm:$0xf]  ;;  %v6599_v44 = vld [vmem:[#allocation2 + $0xe34] sm:$0xf0] }
 0x627   :  { %3531 = vmatpush.bf16.msrb.mxu1 %v5875_v38  ;;  %v5772_v38 = vld [vmem:[#allocation2 + $0xd18] sm:$0xf0]  ;;  %v5914_v42 = vld [vmem:[#allocation2 + $0xe30] sm:$0xf] }
 0x628   :  { %v5775_v39 = vor.u32 %v6562_v36, %v5772_v38  ;;  %v5924_v36 = vld [vmem:[#allocation2 + $0xe48] sm:$0xf0] }
 0x629   :  { %3557 = vmatpush.bf16.msrb.mxu3 %v5879_v58  ;;  %3520 = vmatpush.bf16.msrb.mxu0 %v5795_v53  ;;  %v5843_v58 = vor.u32 %v6581_v41, %v5842_v40  ;;  %v6578_v53 = vld [vmem:[#allocation2 + $0xd94] sm:$0xf] }
 0x62a   :  { %3546 = vmatpush.bf16.msrb.mxu2 %v5799_v55  ;;  %v5836_v55 = vld [vmem:[#allocation2 + $0xd98] sm:$0xf0] }
 0x62b   :  { %3532 = vmatpush.bf16.msrb.mxu1 %v5867_v6  ;;  %v5834_v6 = vld [vmem:[#allocation2 + $0xd90] sm:$0xf]  ;;  %v5839_v56 = vor.u32 %v6578_v53, %v5836_v55 }
 0x62d   :  { %3558 = vmatpush.bf16.msrb.mxu3 %v5871_v52  ;;  %3521 = vmatpush.bf16.msrb.mxu0 %v5787_v16  ;;  %v6579_v52 = vld [vmem:[#allocation2 + $0xd94] sm:$0xf0]  ;;  %v5828_v16 = vld [vmem:[#allocation2 + $0xd88] sm:$0xf0] }
 0x62e   :  { %3547 = vmatpush.bf16.msrb.mxu2 %v5791_v62  ;;  %v5831_v62 = vor.u32 %v6576_v60, %v5828_v16 }
 0x62f   :  { %3533 = vmatpush.bf16.msrb.mxu1 %v5859_v18  ;;  %v6603_v18 = vld [vmem:[#allocation2 + $0xe54] sm:$0xf0] }
 0x630   :  { %v5931_v27 = vor.u32 %v6603_v18, %v5930_v31  ;;  %v6614_v18 = vld [vmem:[#allocation2 + $0xeb4] sm:$0xf] }
 0x631   :  { %3559 = vmatpush.bf16.msrb.mxu3 %v5863_v21  ;;  %3522 = vmatpush.bf16.msrb.mxu0 %v5779_v25  ;;  %v5932_v21 = vld [vmem:[#allocation2 + $0xe58] sm:$0xf0]  ;;  %v6620_v25 = vld [vmem:[#allocation2 + $0xee4] sm:$0xf] }
 0x632   :  { %3548 = vmatpush.bf16.msrb.mxu2 %v5783_v29  ;;  %v6007_v28 = vor.u32 %v6620_v25, %v6004_v26  ;;  %v5922_v29 = vld [vmem:[#allocation2 + $0xe40] sm:$0xf]  ;;  %v5935_v32 = vor.u32 %v6602_v20, %v5932_v21  ;;  %v5980_v20 = vld [vmem:[#allocation2 + $0xeb8] sm:$0xf0]  ;;  %v5899_v25 = vor.u32 %v6595_v23, %v5898_v22  ;;  %v6122_v22 = vld [vmem:[#allocation2 + $0xfd0] sm:$0xf] }
 0x633   :  { %3534 = vmatpush.bf16.msrb.mxu1 %v5851_v30  ;;  %v6601_v30 = vld [vmem:[#allocation2 + $0xe44] sm:$0xf0]  ;;  %v5983_v21 = vor.u32 %v6614_v18, %v5980_v20  ;;  %v5900_v26 = vld [vmem:[#allocation2 + $0xe18] sm:$0xf0]  ;;  %v6050_v18 = vld [vmem:[#allocation2 + $0xf40] sm:$0xf] }
 0x634   :  { %v5923_v40 = vor.u32 %v6601_v30, %v5922_v29  ;;  %v6613_v29 = vld [vmem:[#allocation2 + $0xea4] sm:$0xf0]  ;;  %v6651_v23 = vld [vmem:[#allocation2 + $0xfd4] sm:$0xf0] }
 0x635   :  { %3560 = vmatpush.bf16.msrb.mxu3 %v5855_v33  ;;  %3523 = vmatpush.bf16.msrb.mxu0 %v5771_v37  ;;  %v6619_v33 = vld [vmem:[#allocation2 + $0xed4] sm:$0xf0]  ;;  %v5996_v37 = vld [vmem:[#allocation2 + $0xed8] sm:$0xf0]  ;;  %v6633_v20 = vld [vmem:[#allocation2 + $0xf44] sm:$0xf0] }
 0x636   :  { %3549 = vmatpush.bf16.msrb.mxu2 %v5775_v39  ;;  %v5995_v38 = vor.u32 %v6619_v33, %v5994_v43  ;;  %v5999_v39 = vor.u32 %v6618_v34, %v5996_v37  ;;  %v5972_v43 = vld [vmem:[#allocation2 + $0xea8] sm:$0xf0]  ;;  %v5890_v34 = vld [vmem:[#allocation2 + $0xe00] sm:$0xf] }
 0x637   :  { %3535 = vmatpush.bf16.msrb.mxu1 %v5843_v58  ;;  %v5927_v58 = vor.u32 %v6600_v35, %v5924_v36  ;;  %v6593_v35 = vld [vmem:[#allocation2 + $0xe04] sm:$0xf0]  ;;  %v6592_v36 = vld [vmem:[#allocation2 + $0xe04] sm:$0xf] }
 0x638   :  { %v5891_v37 = vor.u32 %v6593_v35, %v5890_v34  ;;  %v6631_v34 = vld [vmem:[#allocation2 + $0xf34] sm:$0xf0] }
 0x639   :  { %3561 = vmatpush.bf16.msrb.mxu3 %v5847_v45  ;;  %3524 = vmatpush.bf16.msrb.mxu0 %v5763_v49  ;;  %v6817_v45 = vld [vmem:[#allocation5 + $0x10] sm:$0xff]  ;;  %v5915_v49 = vor.u32 %v6599_v44, %v5914_v42  ;;  %v5964_v44 = vld [vmem:[#allocation2 + $0xe98] sm:$0xf0] }
 0x63a   :  { %3550 = vmatpush.bf16.msrb.mxu2 %v5767_v51  ;;  %v3104_v46 = vperm.slane %v6817_v45, 4  ;;  %v3355_v35 = vperm.slane %v6817_v45, 5 }
 0x63d   :  { %3562 = vmatpush.bf16.msrb.mxu3 %v5839_v56 }
 0x641   :  { %3563 = vmatpush.bf16.msrb.mxu3 %v5831_v62 }
 0x697   :  { %v3024_v54 = vpop.f32.mrf.mxu0 }
 0x698   :  { %v3025_v63 = vadd.f32 %v3024_v54, %v2853_v59  ;;  %v5835_v54 = vor.u32 %v6579_v52, %v5834_v6  ;;  %v6577_v59 = vld [vmem:[#allocation2 + $0xd84] sm:$0xf0] }
 0x699   :  { %v5827_v61 = vor.u32 %v6577_v59, %v5826_v57 }
 0x69a   :  { %3536 = vmatpush.bf16.msrb.mxu1 %v5835_v54  ;;  %v6820_v54 = vld [vmem:[#allocation5 + $0x18] sm:$0xff] }
 0x69b   :  { %v3105_v55 = vperm.slane %v6820_v54, 4 }
 0x69d   :  { %v3037_v0 = vpop.f32.mrf.mxu1  ;;  %v3050_v1 = vpop.f32.mrf.mxu2 }
 0x69e   :  { %v3038_v2 = vadd.f32 %v3037_v0, %v3025_v63  ;;  %v3051_v19 = vadd.f32 %v3050_v1, %v2854_v3  ;;  %3537 = vmatpush.bf16.msrb.mxu1 %v5827_v61  ;;  %v5946_v63 = vld [vmem:[#allocation2 + $0xe70] sm:$0xf]  ;;  %v6607_v0 = vld [vmem:[#allocation2 + $0xe74] sm:$0xf0]  ;;  %v6606_v1 = vld [vmem:[#allocation2 + $0xe74] sm:$0xf] }
 0x69f   :  { %v3026_v4 = vpop.f32.mrf.mxu0  ;;  %v5948_v3 = vld [vmem:[#allocation2 + $0xe78] sm:$0xf0] }
 0x6a0   :  { %v3067_v5 = vmax.f32 %v3038_v2, 0.0  ;;  %v5947_v2 = vor.u32 %v6607_v0, %v5946_v63  ;;  %v5938_v4 = vld [vmem:[#allocation2 + $0xe60] sm:$0xf] }
 0x6a2   :  { %v3069_v7 = vpack.c.bf16 %v3067_v5, %v3067_v5  ;;  %v6605_v5 = vld [vmem:[#allocation2 + $0xe64] sm:$0xf0] }
 0x6a3   :  { %v3063_v8 = vpop.f32.mrf.mxu3 }
 0x6a4   :  { %v3064_v9 = vadd.f32 %v3063_v8, %v3051_v19  ;;  %3274 = vmatmul.bf16.vlgmr.msra.gmra.mxu0 %v3069_v7  ;;  %3300 = vmatmul.bf16.vlgmr.msra.gmra.mxu2 %v3069_v7  ;;  %v5951_v7 = vor.u32 %v6606_v1, %v5948_v3  ;;  %v6604_v19 = vld [vmem:[#allocation2 + $0xe64] sm:$0xf]  ;;  %v5940_v8 = vld [vmem:[#allocation2 + $0xe68] sm:$0xf0]  ;;  %v5986_v3 = vld [vmem:[#allocation2 + $0xec0] sm:$0xf] }
 0x6a5   :  { %v3039_v10 = vpop.f32.mrf.mxu1  ;;  %v3052_v11 = vpop.f32.mrf.mxu2  ;;  %3768 = vmatpush.bf16.msra.mxu0 %v5947_v2 }
 0x6a6   :  { %v3068_v12 = vmax.f32 %v3064_v9, 0.0  ;;  %v6010_v9 = vld [vmem:[#allocation2 + $0xef0] sm:$0xf]  ;;  %v5939_v10 = vor.u32 %v6605_v5, %v5938_v4  ;;  %v6623_v11 = vld [vmem:[#allocation2 + $0xef4] sm:$0xf0]  ;;  %3794 = vmatpush.bf16.msra.mxu2 %v5951_v7 }
 0x6a7   :  { %v6011_v15 = vor.u32 %v6623_v11, %v6010_v9  ;;  %v6617_v4 = vld [vmem:[#allocation2 + $0xec4] sm:$0xf0]  ;;  %v6616_v5 = vld [vmem:[#allocation2 + $0xec4] sm:$0xf]  ;;  %v5906_v9 = vld [vmem:[#allocation2 + $0xe20] sm:$0xf] }
 0x6a8   :  { %v3070_v13 = vpack.c.bf16 %v3068_v12, %v3068_v12  ;;  %v6622_v12 = vld [vmem:[#allocation2 + $0xef4] sm:$0xf]  ;;  %v5987_v7 = vor.u32 %v6617_v4, %v5986_v3  ;;  %v6596_v11 = vld [vmem:[#allocation2 + $0xe24] sm:$0xf]  ;;  %v6140_v3 = vld [vmem:[#allocation2 + $0xff8] sm:$0xf0] }
 0x6a9   :  { %3769 = vmatpush.bf16.msra.mxu0 %v5939_v10  ;;  %v6597_v10 = vld [vmem:[#allocation2 + $0xe24] sm:$0xf0] }
 0x6aa   :  { %3287 = vmatmul.bf16.vlgmr.msra.gmra.mxu1 %v3070_v13  ;;  %3313 = vmatmul.bf16.vlgmr.msra.gmra.mxu3 %v3070_v13  ;;  %v6012_v13 = vld [vmem:[#allocation2 + $0xef8] sm:$0xf0] }
 0x6ab   :  { %v3065_v14 = vpop.f32.mrf.mxu3  ;;  %v6015_v17 = vor.u32 %v6622_v12, %v6012_v13  ;;  %3781 = vmatpush.bf16.msra.mxu1 %v6011_v15  ;;  %v5907_v12 = vor.u32 %v6597_v10, %v5906_v9  ;;  %v5908_v13 = vld [vmem:[#allocation2 + $0xe28] sm:$0xf0]  ;;  %v6615_v15 = vld [vmem:[#allocation2 + $0xeb4] sm:$0xf0]  ;;  %v6634_v9 = vld [vmem:[#allocation2 + $0xf54] sm:$0xf] }
 0x6ac   :  { %v5943_v14 = vor.u32 %v6604_v19, %v5940_v8  ;;  %v5988_v19 = vld [vmem:[#allocation2 + $0xec8] sm:$0xf0]  ;;  %v6060_v10 = vld [vmem:[#allocation2 + $0xf58] sm:$0xf0] }
 0x6ad   :  { %3807 = vmatpush.bf16.msra.mxu3 %v6015_v17  ;;  %3770 = vmatpush.bf16.msra.mxu0 %v5931_v27  ;;  %v5991_v8 = vor.u32 %v6616_v5, %v5988_v19  ;;  %v5911_v17 = vor.u32 %v6596_v11, %v5908_v13  ;;  %v6058_v19 = vld [vmem:[#allocation2 + $0xf50] sm:$0xf]  ;;  %v6130_v11 = vld [vmem:[#allocation2 + $0xfe0] sm:$0xf] }
 0x6ae   :  { %3795 = vmatpush.bf16.msra.mxu2 %v5943_v14  ;;  %v5978_v14 = vld [vmem:[#allocation2 + $0xeb0] sm:$0xf] }
 0x6af   :  { %3782 = vmatpush.bf16.msra.mxu1 %v6003_v24  ;;  %v5979_v31 = vor.u32 %v6615_v15, %v5978_v14  ;;  %v6594_v24 = vld [vmem:[#allocation2 + $0xe14] sm:$0xf]  ;;  %v6652_v14 = vld [vmem:[#allocation2 + $0xfe4] sm:$0xf]  ;;  %v6132_v15 = vld [vmem:[#allocation2 + $0xfe8] sm:$0xf0] }
 0x6b0   :  { %v5903_v27 = vor.u32 %v6594_v24, %v5900_v26  ;;  %v6650_v24 = vld [vmem:[#allocation2 + $0xfd4] sm:$0xf]  ;;  %v6052_v26 = vld [vmem:[#allocation2 + $0xf48] sm:$0xf0] }
 0x6b1   :  { %3808 = vmatpush.bf16.msra.mxu3 %v6007_v28  ;;  %3771 = vmatpush.bf16.msra.mxu0 %v5923_v40  ;;  %v5970_v28 = vld [vmem:[#allocation2 + $0xea0] sm:$0xf]  ;;  %v5962_v40 = vld [vmem:[#allocation2 + $0xe90] sm:$0xf] }
 0x6b2   :  { %3796 = vmatpush.bf16.msra.mxu2 %v5935_v32  ;;  %v5971_v30 = vor.u32 %v6613_v29, %v5970_v28  ;;  %v6612_v32 = vld [vmem:[#allocation2 + $0xea4] sm:$0xf]  ;;  %v6123_v28 = vor.u32 %v6651_v23, %v6122_v22  ;;  %v6100_v22 = vld [vmem:[#allocation2 + $0xfa8] sm:$0xf0] }
 0x6b3   :  { %3783 = vmatpush.bf16.msra.mxu1 %v5995_v38  ;;  %v5975_v33 = vor.u32 %v6612_v32, %v5972_v43  ;;  %v5892_v38 = vld [vmem:[#allocation2 + $0xe08] sm:$0xf0] }
 0x6b5   :  { %3809 = vmatpush.bf16.msra.mxu3 %v5999_v39  ;;  %3772 = vmatpush.bf16.msra.mxu0 %v5915_v49  ;;  %v5895_v39 = vor.u32 %v6592_v36, %v5892_v38  ;;  %v6608_v49 = vld [vmem:[#allocation2 + $0xe84] sm:$0xf]  ;;  %v6630_v36 = vld [vmem:[#allocation2 + $0xf34] sm:$0xf] }
 0x6b6   :  { %3797 = vmatpush.bf16.msra.mxu2 %v5927_v58  ;;  %v6610_v58 = vld [vmem:[#allocation2 + $0xe94] sm:$0xf] }
 0x6b7   :  { %3784 = vmatpush.bf16.msra.mxu1 %v5987_v7 }
 0x6b9   :  { %3810 = vmatpush.bf16.msra.mxu3 %v5991_v8  ;;  %3773 = vmatpush.bf16.msra.mxu0 %v5907_v12  ;;  %v6635_v8 = vld [vmem:[#allocation2 + $0xf54] sm:$0xf0]  ;;  %v6653_v12 = vld [vmem:[#allocation2 + $0xfe4] sm:$0xf0] }
 0x6ba   :  { %3798 = vmatpush.bf16.msra.mxu2 %v5919_v50  ;;  %v5955_v50 = vor.u32 %v6609_v48, %v5954_v47  ;;  %v6131_v13 = vor.u32 %v6653_v12, %v6130_v11  ;;  %v6026_v11 = vld [vmem:[#allocation2 + $0xf10] sm:$0xf]  ;;  %v6627_v12 = vld [vmem:[#allocation2 + $0xf14] sm:$0xf0] }
 0x6bb   :  { %3785 = vmatpush.bf16.msra.mxu1 %v5979_v31  ;;  %v6135_v31 = vor.u32 %v6652_v14, %v6132_v15  ;;  %v6027_v14 = vor.u32 %v6627_v12, %v6026_v11  ;;  %v6028_v15 = vld [vmem:[#allocation2 + $0xf18] sm:$0xf0] }
 0x6bd   :  { %3811 = vmatpush.bf16.msra.mxu3 %v5983_v21  ;;  %3774 = vmatpush.bf16.msra.mxu0 %v5899_v25  ;;  %v6063_v21 = vor.u32 %v6634_v9, %v6060_v10  ;;  %v6632_v25 = vld [vmem:[#allocation2 + $0xf44] sm:$0xf]  ;;  %v6108_v9 = vld [vmem:[#allocation2 + $0xfb8] sm:$0xf0] }
 0x6be   :  { %3799 = vmatpush.bf16.msra.mxu2 %v5911_v17  ;;  %v6059_v17 = vor.u32 %v6635_v8, %v6058_v19  ;;  %v6055_v43 = vor.u32 %v6632_v25, %v6052_v26  ;;  %v6646_v8 = vld [vmem:[#allocation2 + $0xfb4] sm:$0xf]  ;;  %v6625_v25 = vld [vmem:[#allocation2 + $0xf04] sm:$0xf0]  ;;  %v6624_v26 = vld [vmem:[#allocation2 + $0xf04] sm:$0xf] }
 0x6bf   :  { %3786 = vmatpush.bf16.msra.mxu1 %v5971_v30  ;;  %v6051_v30 = vor.u32 %v6633_v20, %v6050_v18  ;;  %v6111_v10 = vor.u32 %v6646_v8, %v6108_v9  ;;  %v6645_v18 = vld [vmem:[#allocation2 + $0xfa4] sm:$0xf0] }
 0x6c1   :  { %3812 = vmatpush.bf16.msra.mxu3 %v5975_v33  ;;  %3775 = vmatpush.bf16.msra.mxu0 %v5891_v37  ;;  %v6042_v33 = vld [vmem:[#allocation2 + $0xf30] sm:$0xf]  ;;  %v6044_v37 = vld [vmem:[#allocation2 + $0xf38] sm:$0xf0] }
 0x6c2   :  { %3800 = vmatpush.bf16.msra.mxu2 %v5903_v27  ;;  %v6124_v27 = vld [vmem:[#allocation2 + $0xfd8] sm:$0xf0]  ;;  %v6043_v38 = vor.u32 %v6631_v34, %v6042_v33 }
 0x6c3   :  { %v6127_v29 = vor.u32 %v6650_v24, %v6124_v27  ;;  %v6018_v24 = vld [vmem:[#allocation2 + $0xf00] sm:$0xf]  ;;  %v6092_v34 = vld [vmem:[#allocation2 + $0xf98] sm:$0xf0] }
 0x6c4   :  { %v6019_v27 = vor.u32 %v6625_v25, %v6018_v24 }
 0x6c6   :  { %3801 = vmatpush.bf16.msra.mxu2 %v5895_v39  ;;  %v6047_v39 = vor.u32 %v6630_v36, %v6044_v37  ;;  %v6082_v36 = vld [vmem:[#allocation2 + $0xf80] sm:$0xf]  ;;  %v6641_v37 = vld [vmem:[#allocation2 + $0xf84] sm:$0xf0] }
 0x721   :  { %v3275_v41 = vpop.f32.mrf.mxu0 }
 0x722   :  { %v3276_v51 = vadd.f32 %v3275_v41, %v3104_v46  ;;  %v6611_v41 = vld [vmem:[#allocation2 + $0xe94] sm:$0xf0]  ;;  %v5967_v46 = vor.u32 %v6610_v58, %v5964_v44  ;;  %v3356_v44 = vperm.slane %v6820_v54, 5 }
 0x723   :  { %v5963_v42 = vor.u32 %v6611_v41, %v5962_v40 }
 0x724   :  { %3813 = vmatpush.bf16.msra.mxu3 %v5967_v46 }
 0x725   :  { %3787 = vmatpush.bf16.msra.mxu1 %v5963_v42 }
 0x727   :  { %v3288_v6 = vpop.f32.mrf.mxu1  ;;  %v3301_v52 = vpop.f32.mrf.mxu2 }
 0x728   :  { %v3289_v53 = vadd.f32 %v3288_v6, %v3276_v51  ;;  %v3302_v60 = vadd.f32 %v3301_v52, %v3105_v55  ;;  %v5956_v51 = vld [vmem:[#allocation2 + $0xe88] sm:$0xf0]  ;;  %v6074_v52 = vld [vmem:[#allocation2 + $0xf70] sm:$0xf]  ;;  %v6638_v55 = vld [vmem:[#allocation2 + $0xf74] sm:$0xf] }
 0x729   :  { %v3277_v56 = vpop.f32.mrf.mxu0  ;;  %v5959_v6 = vor.u32 %v6608_v49, %v5956_v51  ;;  %3788 = vmatpush.bf16.msra.mxu1 %v5955_v50 }
 0x72a   :  { %v3318_v57 = vmax.f32 %v3289_v53, 0.0  ;;  %v6639_v53 = vld [vmem:[#allocation2 + $0xf74] sm:$0xf0] }
 0x72b   :  { %3814 = vmatpush.bf16.msra.mxu3 %v5959_v6  ;;  %v6075_v56 = vor.u32 %v6639_v53, %v6074_v52 }
 0x72c   :  { %v3320_v59 = vpack.c.bf16 %v3318_v57, %v3318_v57  ;;  %v6076_v57 = vld [vmem:[#allocation2 + $0xf78] sm:$0xf0] }
 0x72d   :  { %v3314_v61 = vpop.f32.mrf.mxu3 }
 0x72e   :  { %v3315_v16 = vadd.f32 %v3314_v61, %v3302_v60  ;;  %3525 = vmatmul.bf16.vlgmr.msrb.gmra.mxu0 %v3320_v59  ;;  %3551 = vmatmul.bf16.vlgmr.msrb.gmra.mxu2 %v3320_v59  ;;  %v6066_v59 = vld [vmem:[#allocation2 + $0xf60] sm:$0xf]  ;;  %v6637_v60 = vld [vmem:[#allocation2 + $0xf64] sm:$0xf0]  ;;  %v6079_v61 = vor.u32 %v6638_v55, %v6076_v57 }
 0x72f   :  { %v3290_v62 = vpop.f32.mrf.mxu1  ;;  %v3303_v63 = vpop.f32.mrf.mxu2  ;;  %4019 = vmatpush.bf16.msrb.mxu0 %v6075_v56  ;;  %v6114_v57 = vld [vmem:[#allocation2 + $0xfc0] sm:$0xf] }
 0x730   :  { %v3319_v0 = vmax.f32 %v3315_v16, 0.0  ;;  %v6636_v16 = vld [vmem:[#allocation2 + $0xf64] sm:$0xf]  ;;  %v6068_v62 = vld [vmem:[#allocation2 + $0xf68] sm:$0xf0]  ;;  %4045 = vmatpush.bf16.msrb.mxu2 %v6079_v61 }
 0x731   :  { %v6138_v63 = vld [vmem:[#allocation2 + $0xff0] sm:$0xf]  ;;  %v6071_v4 = vor.u32 %v6636_v16, %v6068_v62  ;;  %v6116_v16 = vld [vmem:[#allocation2 + $0xfc8] sm:$0xf0] }
 0x732   :  { %v3321_v1 = vpack.c.bf16 %v3319_v0, %v3319_v0  ;;  %v6067_v0 = vor.u32 %v6637_v60, %v6066_v59  ;;  %v6649_v59 = vld [vmem:[#allocation2 + $0xfc4] sm:$0xf0]  ;;  %v6648_v60 = vld [vmem:[#allocation2 + $0xfc4] sm:$0xf] }
 0x733   :  { %v6115_v61 = vor.u32 %v6649_v59, %v6114_v57  ;;  %v6119_v62 = vor.u32 %v6648_v60, %v6116_v16 }
 0x734   :  { %3538 = vmatmul.bf16.vlgmr.msrb.gmra.mxu1 %v3321_v1  ;;  %3564 = vmatmul.bf16.vlgmr.msrb.gmra.mxu3 %v3321_v1  ;;  %v6655_v1 = vld [vmem:[#allocation2 + $0xff4] sm:$0xf0] }
 0x735   :  { %v3316_v2 = vpop.f32.mrf.mxu3  ;;  %v6139_v5 = vor.u32 %v6655_v1, %v6138_v63  ;;  %4020 = vmatpush.bf16.msrb.mxu0 %v6067_v0  ;;  %4046 = vmatpush.bf16.msrb.mxu2 %v6071_v4  ;;  %v6034_v63 = vld [vmem:[#allocation2 + $0xf20] sm:$0xf]  ;;  %v6629_v0 = vld [vmem:[#allocation2 + $0xf24] sm:$0xf0]  ;;  %v6628_v1 = vld [vmem:[#allocation2 + $0xf24] sm:$0xf] }
 0x736   :  { %v6654_v2 = vld [vmem:[#allocation2 + $0xff4] sm:$0xf]  ;;  %v6106_v4 = vld [vmem:[#allocation2 + $0xfb0] sm:$0xf] }
 0x737   :  { %v6143_v7 = vor.u32 %v6654_v2, %v6140_v3  ;;  %4032 = vmatpush.bf16.msrb.mxu1 %v6139_v5  ;;  %v6035_v2 = vor.u32 %v6629_v0, %v6034_v63  ;;  %v6036_v3 = vld [vmem:[#allocation2 + $0xf28] sm:$0xf0]  ;;  %v6647_v5 = vld [vmem:[#allocation2 + $0xfb4] sm:$0xf0]  ;;  %v3858_v0 = vperm.slane %v6820_v54, 7 }
 0x738   :  { %v6107_v19 = vor.u32 %v6647_v5, %v6106_v4 }
 0x739   :  { %4058 = vmatpush.bf16.msrb.mxu3 %v6143_v7  ;;  %4021 = vmatpush.bf16.msrb.mxu0 %v6059_v17  ;;  %v6039_v7 = vor.u32 %v6628_v1, %v6036_v3 }
 0x73a   :  { %4047 = vmatpush.bf16.msrb.mxu2 %v6063_v21  ;;  %v6644_v21 = vld [vmem:[#allocation2 + $0xfa4] sm:$0xf] }
 0x73b   :  { %4033 = vmatpush.bf16.msrb.mxu1 %v6131_v13  ;;  %v6626_v13 = vld [vmem:[#allocation2 + $0xf14] sm:$0xf]  ;;  %v6103_v23 = vor.u32 %v6644_v21, %v6100_v22 }
 0x73c   :  { %v6031_v17 = vor.u32 %v6626_v13, %v6028_v15 }
 0x73d   :  { %4059 = vmatpush.bf16.msrb.mxu3 %v6135_v31  ;;  %4022 = vmatpush.bf16.msrb.mxu0 %v6051_v30  ;;  %v6098_v31 = vld [vmem:[#allocation2 + $0xfa0] sm:$0xf]  ;;  %v6090_v30 = vld [vmem:[#allocation2 + $0xf90] sm:$0xf] }
 0x73e   :  { %4048 = vmatpush.bf16.msrb.mxu2 %v6055_v43  ;;  %v6099_v20 = vor.u32 %v6645_v18, %v6098_v31  ;;  %v6642_v43 = vld [vmem:[#allocation2 + $0xf94] sm:$0xf] }
 0x73f   :  { %4034 = vmatpush.bf16.msrb.mxu1 %v6123_v28  ;;  %v6020_v28 = vld [vmem:[#allocation2 + $0xf08] sm:$0xf0] }
 0x741   :  { %4060 = vmatpush.bf16.msrb.mxu3 %v6127_v29  ;;  %4023 = vmatpush.bf16.msrb.mxu0 %v6043_v38  ;;  %v6023_v29 = vor.u32 %v6624_v26, %v6020_v28  ;;  %v6640_v38 = vld [vmem:[#allocation2 + $0xf84] sm:$0xf] }
 0x742   :  { %4049 = vmatpush.bf16.msrb.mxu2 %v6047_v39  ;;  %v6083_v39 = vor.u32 %v6641_v37, %v6082_v36 }
 0x743   :  { %4035 = vmatpush.bf16.msrb.mxu1 %v6115_v61 }
 0x745   :  { %4061 = vmatpush.bf16.msrb.mxu3 %v6119_v62  ;;  %4024 = vmatpush.bf16.msrb.mxu0 %v6035_v2  ;;  %v3857_v2 = vperm.slane %v6817_v45, 7 }
 0x746   :  { %4050 = vmatpush.bf16.msrb.mxu2 %v6039_v7 }
 0x747   :  { %4036 = vmatpush.bf16.msrb.mxu1 %v6107_v19 }
 0x749   :  { %4062 = vmatpush.bf16.msrb.mxu3 %v6111_v10  ;;  %4025 = vmatpush.bf16.msrb.mxu0 %v6027_v14 }
 0x74a   :  { %4051 = vmatpush.bf16.msrb.mxu2 %v6031_v17 }
 0x74b   :  { %4037 = vmatpush.bf16.msrb.mxu1 %v6099_v20 }
 0x74d   :  { %4063 = vmatpush.bf16.msrb.mxu3 %v6103_v23  ;;  %4026 = vmatpush.bf16.msrb.mxu0 %v6019_v27 }
 0x74e   :  { %4052 = vmatpush.bf16.msrb.mxu2 %v6023_v29 }
 0x7ab   :  { %v3526_v32 = vpop.f32.mrf.mxu0 }
 0x7ac   :  { %v3527_v40 = vadd.f32 %v3526_v32, %v3355_v35  ;;  %v6643_v32 = vld [vmem:[#allocation2 + $0xf94] sm:$0xf0]  ;;  %v6095_v35 = vor.u32 %v6642_v43, %v6092_v34 }
 0x7ad   :  { %v6091_v33 = vor.u32 %v6643_v32, %v6090_v30 }
 0x7ae   :  { %4064 = vmatpush.bf16.msrb.mxu3 %v6095_v35 }
 0x7af   :  { %4038 = vmatpush.bf16.msrb.mxu1 %v6091_v33 }
 0x7b1   :  { %v3539_v41 = vpop.f32.mrf.mxu1  ;;  %v3552_v58 = vpop.f32.mrf.mxu2 }
 0x7b2   :  { %v3540_v42 = vadd.f32 %v3539_v41, %v3527_v40  ;;  %v3553_v49 = vadd.f32 %v3552_v58, %v3356_v44  ;;  %v6084_v40 = vld [vmem:[#allocation2 + $0xf88] sm:$0xf0] }
 0x7b3   :  { %v3528_v46 = vpop.f32.mrf.mxu0  ;;  %v6087_v41 = vor.u32 %v6640_v38, %v6084_v40  ;;  %4039 = vmatpush.bf16.msrb.mxu1 %v6083_v39 }
 0x7b4   :  { %v3569_v47 = vmax.f32 %v3540_v42, 0.0  ;;  %v3606_v42 = vperm.slane %v6817_v45, 6 }
 0x7b5   :  { %4065 = vmatpush.bf16.msrb.mxu3 %v6087_v41 }
 0x7b6   :  { %v3571_v48 = vpack.c.bf16 %v3569_v47, %v3569_v47 }
 0x7b7   :  { %v3565_v50 = vpop.f32.mrf.mxu3 }
 0x7b8   :  { %v3566_v51 = vadd.f32 %v3565_v50, %v3553_v49  ;;  %3776 = vmatmul.bf16.vlgmr.msra.gmra.mxu0 %v3571_v48  ;;  %3802 = vmatmul.bf16.vlgmr.msra.gmra.mxu2 %v3571_v48  ;;  %v3607_v49 = vperm.slane %v6820_v54, 6 }
 0x7b9   :  { %v3541_v6 = vpop.f32.mrf.mxu1  ;;  %v3554_v52 = vpop.f32.mrf.mxu2 }
 0x7ba   :  { %v3570_v53 = vmax.f32 %v3566_v51, 0.0 }
 0x7bc   :  { %v3572_v55 = vpack.c.bf16 %v3570_v53, %v3570_v53 }
 0x7be   :  { %3789 = vmatmul.bf16.vlgmr.msra.gmra.mxu1 %v3572_v55  ;;  %3815 = vmatmul.bf16.vlgmr.msra.gmra.mxu3 %v3572_v55 }
 0x7bf   :  { %v3567_v56 = vpop.f32.mrf.mxu3 }
 0x835   :  { %v3777_v58 = vpop.f32.mrf.mxu0 }
 0x836   :  { %v3778_v44 = vadd.f32 %v3777_v58, %v3606_v42 }
 0x83b   :  { %v3790_v46 = vpop.f32.mrf.mxu1  ;;  %v3803_v47 = vpop.f32.mrf.mxu2 }
 0x83c   :  { %v3791_v48 = vadd.f32 %v3790_v46, %v3778_v44  ;;  %v3804_v52 = vadd.f32 %v3803_v47, %v3607_v49 }
 0x83d   :  { %v3779_v50 = vpop.f32.mrf.mxu0 }
 0x83e   :  { %v3820_v51 = vmax.f32 %v3791_v48, 0.0 }
 0x840   :  { %v3822_v6 = vpack.c.bf16 %v3820_v51, %v3820_v51 }
 0x841   :  { %v3816_v53 = vpop.f32.mrf.mxu3 }
 0x842   :  { %v3817_v55 = vadd.f32 %v3816_v53, %v3804_v52  ;;  %4027 = vmatmul.bf16.vlgmr.msrb.gmra.mxu0 %v3822_v6  ;;  %4053 = vmatmul.bf16.vlgmr.msrb.gmra.mxu2 %v3822_v6 }
 0x843   :  { %v3792_v56 = vpop.f32.mrf.mxu1  ;;  %v3805_v57 = vpop.f32.mrf.mxu2 }
 0x844   :  { %v3821_v59 = vmax.f32 %v3817_v55, 0.0 }
 0x846   :  { %v3823_v60 = vpack.c.bf16 %v3821_v59, %v3821_v59 }
 0x848   :  { %4040 = vmatmul.bf16.vlgmr.msrb.gmra.mxu1 %v3823_v60  ;;  %4066 = vmatmul.bf16.vlgmr.msrb.gmra.mxu3 %v3823_v60 }
 0x849   :  { %v3818_v61 = vpop.f32.mrf.mxu3 }
 0x8bf   :  { %v4028_v16 = vpop.f32.mrf.mxu0 }
 0x8c0   :  { %v4029_v5 = vadd.f32 %v4028_v16, %v3857_v2 }
 0x8c5   :  { %v4041_v62 = vpop.f32.mrf.mxu1  ;;  %v4054_v63 = vpop.f32.mrf.mxu2 }
 0x8c6   :  { %v4055_v3 = vadd.f32 %v4054_v63, %v3858_v0  ;;  %v4042_v9 = vadd.f32 %v4041_v62, %v4029_v5 }
 0x8c7   :  { %v4030_v1 = vpop.f32.mrf.mxu0 }
 0x8cb   :  { %v4067_v4 = vpop.f32.mrf.mxu3 }
 0x8cc   :  { %v4068_v7 = vadd.f32 %v4067_v4, %v4055_v3 }
 0x8cd   :  { %v4043_v19 = vpop.f32.mrf.mxu1  ;;  %v4056_v8 = vpop.f32.mrf.mxu2 }
 0x8ce   :  { %v4073_v10 = vrot.slane %v4068_v7, 4 }
 0x8d0   :  { %v4075_v54 = vsel %vm4074_vm0, %v4042_v9, %v4073_v10 }
 0x8d1   :  { %4077 = vst [vmem:[#allocation7] sm:$0x77] %v4075_v54 }
 0x8d2   :  { %4088 = dma.vmem_to_hbm [thread:$0]  %s4084_s26, 128, %s4086_s29, [#allocation4]  }
 0x8d3   :  { %v4069_v45 = vpop.f32.mrf.mxu3 }
 0x8d4   :  { %6743 = dma.done.wait [#allocation4], 128  }
 0x8d5   :  { %6744 = vsyncadd [#allocation4], 4294967168 }
 0x8d6   :  { %4093 = vsyncpa [#allocation3], 1 }
 0x8d7   :  { %4094 = vsyncpa [#allocation6], 1 }
 0x8d8   :  { %4095 = vsyncpa [#allocation4], 1 }

</bundles_post_ra>
